<compile_context>
chip_gen: v7x
topology: tpu7x:2x2x1
jax: 0.10.0
libtpu: 0.0.40
codegen_flags: <defaults>
</compile_context>

<pallas_src>
import numpy as np
import jax
import jax.numpy as jnp
from jax.experimental import pallas as pl
from jax.experimental.pallas import tpu as pltpu


# ----------------------------------------------------------------------------
# Parameter setup (plain JAX glue) -- mirrors OrthogonalResamplingLayer.__init__
# with method='cayley', init='haar', stride=(2, 2, 2), dim=3.
# ----------------------------------------------------------------------------
def haar_cayley_weight_3d(num_matrices: int) -> jnp.ndarray:
    p = 1.0 / np.sqrt(2.0)
    w = np.array(
        [[0, -p, -p, 0, -p, 0, 0, 1 - p],
         [0, 0, 0, -p, 0, -p, p - 1, 0],
         [0, 0, 0, -p, 0, p - 1, -p, 0],
         [0, 0, 0, 0, 1 - p, 0, 0, -p],
         [0, 0, 0, 0, 0, -p, -p, 0],
         [0, 0, 0, 0, 0, 0, 0, -p],
         [0, 0, 0, 0, 0, 0, 0, -p],
         [0, 0, 0, 0, 0, 0, 0, 0]], dtype=np.float32)
    return jnp.asarray(np.tile(w[None], (num_matrices, 1, 1)))


def cayley_kernel_matrix(weight: jnp.ndarray) -> jnp.ndarray:
    """Q = (I + A)^{-1} (I - A) with A = W - W^T (matches iunets' cayley.apply)."""
    a = weight - jnp.swapaxes(weight, -1, -2)
    i = jnp.eye(a.shape[-1], dtype=a.dtype)
    return jnp.linalg.solve(i + a, i - a)


# ----------------------------------------------------------------------------
# Pallas kernel: fused per-group channel mix + pixel shuffle.
# ----------------------------------------------------------------------------
def _upsample_kernel(k_ref, x_ref, o_ref):
    # k_ref: (G, 64) f32 in SMEM.  k_ref[g, c*8 + s] = K[g][c, s], s = 4*kd+2*kh+kw.
    # x_ref: (8, R, W) VMEM block, R = d_tile * H rows of the flattened (D*H) axis.
    # o_ref: (d_tile, 2, H, 4*W) VMEM block; last dim is (kh, w, kw) flattened.
    g = pl.program_id(1)
    cm, _, W = x_ref.shape
    d_t, _, H, _ = o_ref.shape
    w2 = 2 * W
    f32 = jnp.float32

    # Lane-interleave ("riffle") selector matrices, chunked at B lanes so the MXU
    # cost stays O(128) per output lane even for large W.
    B = 128 if W % 128 == 0 else W
    lane = jax.lax.broadcasted_iota(jnp.int32, (B, 2 * B), 1)
    row = jax.lax.broadcasted_iota(jnp.int32, (B, 2 * B), 0)
    e_even = (lane == 2 * row).astype(f32)      # puts y_even[w] at lane 2w
    e_odd = (lane == 2 * row + 1).astype(f32)   # puts y_odd[w]  at lane 2w+1

    for kd in range(2):
        for kh in range(2):
            s0 = 4 * kd + 2 * kh          # kw == 0
            s1 = s0 + 1                   # kw == 1
            for j in range(W // B):
                lo = j * B
                # Channel mix on the VPU: y_kw = sum_c K[c, s] * x_c  (scalars
                # broadcast straight from SMEM -- the 8x8 never touches the MXU).
                xc = x_ref[0, :, lo:lo + B].astype(f32)
                y0 = k_ref[g, s0] * xc
                y1 = k_ref[g, s1] * xc
                for c in range(1, cm):
                    xc = x_ref[c, :, lo:lo + B].astype(f32)
                    y0 = y0 + k_ref[g, c * cm + s0] * xc
                    y1 = y1 + k_ref[g, c * cm + s1] * xc
                # Interleave kw along lanes: res[:, 2w+kw] = y_kw[:, w].  Exact,
                # since e_even / e_odd are 0/1 selectors.
                res = (jnp.dot(y0, e_even, preferred_element_type=f32) +
                       jnp.dot(y1, e_odd, preferred_element_type=f32))
                res = res.reshape(d_t, H, 2 * B).astype(o_ref.dtype)
                lane0 = kh * w2 + 2 * lo
                o_ref[:, kd, :, lane0:lane0 + 2 * B] = res


def _round_up(v, m):
    return ((v + m - 1) // m) * m


def _pick_d_tile(D, H, W, cm, itemsize, target_bytes=4 << 20):
    """Largest divisor of D whose (input + output) block stays under target_bytes
    (sizes counted with TPU (8, 128) tile padding)."""
    w_in = _round_up(W, 128)
    w_out = _round_up(4 * W, 128)
    best = 1
    for cand in range(1, D + 1):
        if D % cand:
            continue
        x_bytes = cm * _round_up(cand * H, 8) * w_in * itemsize
        o_bytes = cand * 2 * _round_up(H, 8) * w_out * itemsize
        if cand == 1 or x_bytes + o_bytes <= target_bytes:
            best = cand
    return best


def invertible_upsampling_3d(x, kernel_matrix, stride=(2, 2, 2)):
    """= F.conv_transpose3d(x, kernel_matrix.reshape(C,1,2,2,2), stride=2, groups=C//8)."""
    N, C, D, H, W = x.shape
    G, cm, cm2 = kernel_matrix.shape
    sd, sh, sw = stride
    assert (sd, sh, sw) == (2, 2, 2), "kernel is specialized to stride (2, 2, 2)"
    assert cm == cm2 == sd * sh * sw == 8
    assert C == G * cm, "in_channels must equal groups * prod(stride)"

    itemsize = jnp.dtype(x.dtype).itemsize
    d_t = _pick_d_tile(D, H, W, cm, itemsize)
    # TODO(synk): for very large H*W planes (a single-D-slice block > ~4 MiB) the H
    # axis should be tiled as well; only D is tiled here.
    grid = (N, G, D // d_t)

    # Free reshapes (adjacent-dim splits/merges only): channels -> (group, c),
    # spatial -> ((D*H) rows, W lanes).
    x_r = x.reshape(N, G, cm, D * H, W)
    k_flat = kernel_matrix.astype(jnp.float32).reshape(G, cm * cm)

    out = pl.pallas_call(
        _upsample_kernel,
        out_shape=jax.ShapeDtypeStruct((N, G, D, 2, H, 4 * W), x.dtype),
        grid_spec=pltpu.PrefetchScalarGridSpec(
            num_scalar_prefetch=0,
            grid=grid,
            in_specs=[
                # 8x8 mixing matrices: tiny, resident in SMEM for the whole grid.
                pl.BlockSpec(memory_space=pltpu.MemorySpace.SMEM),
                pl.BlockSpec((None, None, cm, d_t * H, W),
                             lambda n, g, t: (n, g, 0, t, 0)),
            ],
            out_specs=pl.BlockSpec((None, None, d_t, 2, H, 4 * W),
                                   lambda n, g, t: (n, g, t, 0, 0, 0)),
        ),
        compiler_params=pltpu.CompilerParams(
            dimension_semantics=("parallel", "parallel", "parallel"),
            vmem_limit_bytes=48 * 1024 * 1024),
    )(k_flat, x_r)

    # (N, G, D, kd, H, (kh, w, kw)) -> (N, G, 2D, 2H, 2W): pure merge/split of
    # adjacent dims in flat order, i.e. a free reshape (no extra HBM pass).
    return out.reshape(N, G, sd * D, sh * H, sw * W)


if __name__ == "__main__":
    # Small shapes consistent with the module: in_channels must be a multiple of
    # prod(stride) = 8.  x: (N, in_channels, D, H, W) in NCDHW.
    N, in_channels, D, H, W = 2, 16, 8, 8, 8
    stride = (2, 2, 2)
    cm = int(np.prod(stride))            # channel_multiplier = 8
    G = in_channels // cm                # out_channels = low_channel_number

    # Deterministic parameter init (module __init__ with init='haar',
    # method='cayley'), then the Cayley orthogonal kernel matrices.
    weight = haar_cayley_weight_3d(G)            # (G, 8, 8)
    km = cayley_kernel_matrix(weight)            # (G, 8, 8), orthogonal

    x = jax.random.normal(jax.random.PRNGKey(0),
                          (N, in_channels, D, H, W), dtype=jnp.float32)

    fwd = jax.jit(lambda xx, kk: invertible_upsampling_3d(xx, kk, (2, 2, 2)))
    y = jax.block_until_ready(fwd(x, km))
    assert y.shape == (N, G, 2 * D, 2 * H, 2 * W)

    # Pure-JAX reference of the grouped conv_transpose3d (stride == kernel size).
    x_g = x.reshape(N, G, cm, D, H, W)
    y_ref = jnp.einsum('gcs,ngcdhw->ngsdhw', km, x_g)
    y_ref = y_ref.reshape(N, G, 2, 2, 2, D, H, W)
    y_ref = jnp.transpose(y_ref, (0, 1, 5, 2, 6, 3, 7, 4)).reshape(y.shape)
    assert np.allclose(np.asarray(y), np.asarray(y_ref), atol=1e-5, rtol=1e-5)

    print("KERNEL_OK")
</pallas_src>

<mosaic_0001>
module attributes {stable_mosaic.version = 11 : i64} {
  func.func @_upsample_kernel(%arg0: i32, %arg1: i32, %arg2: i32, %arg3: memref<2x64xf32, #tpu.memory_space<smem>>, %arg4: memref<1x1x8x64x8xf32, #tpu.memory_space<vmem>>, %arg5: memref<1x1x8x2x8x32xf32, #tpu.memory_space<vmem>>) attributes {dimension_semantics = [#tpu.dimension_semantics<parallel>, #tpu.dimension_semantics<parallel>, #tpu.dimension_semantics<parallel>], iteration_bounds = array<i64: 2, 2, 1>, scalar_prefetch = 0 : i64, scratch_operands = 0 : i64, tpu.core_type = #tpu.core_type<tc>, window_params = [{transform_indices = @transform_0, window_bounds = array<i64: 2, 64>}, {transform_indices = @transform_1, window_bounds = array<i64: 1, 1, 8, 64, 8>}, {transform_indices = @transform_2, window_bounds = array<i64: 1, 1, 8, 2, 8, 32>}]} {
    %0 = tpu.iota {dimensions = array<i32: 1>} : vector<8x16xi32>
    %1 = tpu.iota {dimensions = array<i32: 0>} : vector<8x16xi32>
    %c2_i32 = arith.constant 2 : i32
    %2 = vector.broadcast %c2_i32 : i32 to vector<8x16xi32>
    %3 = arith.muli %2, %1 : vector<8x16xi32>
    %4 = arith.cmpi eq, %0, %3 : vector<8x16xi32>
    %5 = arith.extui %4 : vector<8x16xi1> to vector<8x16xi32>
    %6 = arith.sitofp %5 : vector<8x16xi32> to vector<8x16xf32>
    %c2_i32_0 = arith.constant 2 : i32
    %7 = vector.broadcast %c2_i32_0 : i32 to vector<8x16xi32>
    %8 = arith.muli %7, %1 : vector<8x16xi32>
    %c1_i32 = arith.constant 1 : i32
    %9 = vector.broadcast %c1_i32 : i32 to vector<8x16xi32>
    %10 = arith.addi %8, %9 : vector<8x16xi32>
    %11 = arith.cmpi eq, %0, %10 : vector<8x16xi32>
    %12 = arith.extui %11 : vector<8x16xi1> to vector<8x16xi32>
    %13 = arith.sitofp %12 : vector<8x16xi32> to vector<8x16xf32>
    %c0 = arith.constant 0 : index
    %c0_1 = arith.constant 0 : index
    %c0_2 = arith.constant 0 : index
    %c0_3 = arith.constant 0 : index
    %c0_4 = arith.constant 0 : index
    %14 = vector.load %arg4[%c0, %c0_1, %c0_2, %c0_3, %c0_4] : memref<1x1x8x64x8xf32, #tpu.memory_space<vmem>>, vector<1x1x1x64x8xf32>
    %15 = vector.shape_cast %14 : vector<1x1x1x64x8xf32> to vector<64x8xf32>
    %16 = arith.index_cast %arg1 : i32 to index
    %c0_5 = arith.constant 0 : index
    %17 = memref.load %arg3[%16, %c0_5] : memref<2x64xf32, #tpu.memory_space<smem>>
    %18 = vector.broadcast %17 : f32 to vector<64x8xf32>
    %19 = arith.mulf %18, %15 : vector<64x8xf32>
    %20 = arith.index_cast %arg1 : i32 to index
    %c1 = arith.constant 1 : index
    %21 = memref.load %arg3[%20, %c1] : memref<2x64xf32, #tpu.memory_space<smem>>
    %22 = vector.broadcast %21 : f32 to vector<64x8xf32>
    %23 = arith.mulf %22, %15 : vector<64x8xf32>
    %c0_6 = arith.constant 0 : index
    %c0_7 = arith.constant 0 : index
    %c1_8 = arith.constant 1 : index
    %c0_9 = arith.constant 0 : index
    %c0_10 = arith.constant 0 : index
    %24 = vector.load %arg4[%c0_6, %c0_7, %c1_8, %c0_9, %c0_10] : memref<1x1x8x64x8xf32, #tpu.memory_space<vmem>>, vector<1x1x1x64x8xf32>
    %25 = vector.shape_cast %24 : vector<1x1x1x64x8xf32> to vector<64x8xf32>
    %26 = arith.index_cast %arg1 : i32 to index
    %c8 = arith.constant 8 : index
    %27 = memref.load %arg3[%26, %c8] : memref<2x64xf32, #tpu.memory_space<smem>>
    %28 = vector.broadcast %27 : f32 to vector<64x8xf32>
    %29 = arith.mulf %28, %25 : vector<64x8xf32>
    %30 = arith.addf %19, %29 : vector<64x8xf32>
    %31 = arith.index_cast %arg1 : i32 to index
    %c9 = arith.constant 9 : index
    %32 = memref.load %arg3[%31, %c9] : memref<2x64xf32, #tpu.memory_space<smem>>
    %33 = vector.broadcast %32 : f32 to vector<64x8xf32>
    %34 = arith.mulf %33, %25 : vector<64x8xf32>
    %35 = arith.addf %23, %34 : vector<64x8xf32>
    %c0_11 = arith.constant 0 : index
    %c0_12 = arith.constant 0 : index
    %c2 = arith.constant 2 : index
    %c0_13 = arith.constant 0 : index
    %c0_14 = arith.constant 0 : index
    %36 = vector.load %arg4[%c0_11, %c0_12, %c2, %c0_13, %c0_14] : memref<1x1x8x64x8xf32, #tpu.memory_space<vmem>>, vector<1x1x1x64x8xf32>
    %37 = vector.shape_cast %36 : vector<1x1x1x64x8xf32> to vector<64x8xf32>
    %38 = arith.index_cast %arg1 : i32 to index
    %c16 = arith.constant 16 : index
    %39 = memref.load %arg3[%38, %c16] : memref<2x64xf32, #tpu.memory_space<smem>>
    %40 = vector.broadcast %39 : f32 to vector<64x8xf32>
    %41 = arith.mulf %40, %37 : vector<64x8xf32>
    %42 = arith.addf %30, %41 : vector<64x8xf32>
    %43 = arith.index_cast %arg1 : i32 to index
    %c17 = arith.constant 17 : index
    %44 = memref.load %arg3[%43, %c17] : memref<2x64xf32, #tpu.memory_space<smem>>
    %45 = vector.broadcast %44 : f32 to vector<64x8xf32>
    %46 = arith.mulf %45, %37 : vector<64x8xf32>
    %47 = arith.addf %35, %46 : vector<64x8xf32>
    %c0_15 = arith.constant 0 : index
    %c0_16 = arith.constant 0 : index
    %c3 = arith.constant 3 : index
    %c0_17 = arith.constant 0 : index
    %c0_18 = arith.constant 0 : index
    %48 = vector.load %arg4[%c0_15, %c0_16, %c3, %c0_17, %c0_18] : memref<1x1x8x64x8xf32, #tpu.memory_space<vmem>>, vector<1x1x1x64x8xf32>
    %49 = vector.shape_cast %48 : vector<1x1x1x64x8xf32> to vector<64x8xf32>
    %50 = arith.index_cast %arg1 : i32 to index
    %c24 = arith.constant 24 : index
    %51 = memref.load %arg3[%50, %c24] : memref<2x64xf32, #tpu.memory_space<smem>>
    %52 = vector.broadcast %51 : f32 to vector<64x8xf32>
    %53 = arith.mulf %52, %49 : vector<64x8xf32>
    %54 = arith.addf %42, %53 : vector<64x8xf32>
    %55 = arith.index_cast %arg1 : i32 to index
    %c25 = arith.constant 25 : index
    %56 = memref.load %arg3[%55, %c25] : memref<2x64xf32, #tpu.memory_space<smem>>
    %57 = vector.broadcast %56 : f32 to vector<64x8xf32>
    %58 = arith.mulf %57, %49 : vector<64x8xf32>
    %59 = arith.addf %47, %58 : vector<64x8xf32>
    %c0_19 = arith.constant 0 : index
    %c0_20 = arith.constant 0 : index
    %c4 = arith.constant 4 : index
    %c0_21 = arith.constant 0 : index
    %c0_22 = arith.constant 0 : index
    %60 = vector.load %arg4[%c0_19, %c0_20, %c4, %c0_21, %c0_22] : memref<1x1x8x64x8xf32, #tpu.memory_space<vmem>>, vector<1x1x1x64x8xf32>
    %61 = vector.shape_cast %60 : vector<1x1x1x64x8xf32> to vector<64x8xf32>
    %62 = arith.index_cast %arg1 : i32 to index
    %c32 = arith.constant 32 : index
    %63 = memref.load %arg3[%62, %c32] : memref<2x64xf32, #tpu.memory_space<smem>>
    %64 = vector.broadcast %63 : f32 to vector<64x8xf32>
    %65 = arith.mulf %64, %61 : vector<64x8xf32>
    %66 = arith.addf %54, %65 : vector<64x8xf32>
    %67 = arith.index_cast %arg1 : i32 to index
    %c33 = arith.constant 33 : index
    %68 = memref.load %arg3[%67, %c33] : memref<2x64xf32, #tpu.memory_space<smem>>
    %69 = vector.broadcast %68 : f32 to vector<64x8xf32>
    %70 = arith.mulf %69, %61 : vector<64x8xf32>
    %71 = arith.addf %59, %70 : vector<64x8xf32>
    %c0_23 = arith.constant 0 : index
    %c0_24 = arith.constant 0 : index
    %c5 = arith.constant 5 : index
    %c0_25 = arith.constant 0 : index
    %c0_26 = arith.constant 0 : index
    %72 = vector.load %arg4[%c0_23, %c0_24, %c5, %c0_25, %c0_26] : memref<1x1x8x64x8xf32, #tpu.memory_space<vmem>>, vector<1x1x1x64x8xf32>
    %73 = vector.shape_cast %72 : vector<1x1x1x64x8xf32> to vector<64x8xf32>
    %74 = arith.index_cast %arg1 : i32 to index
    %c40 = arith.constant 40 : index
    %75 = memref.load %arg3[%74, %c40] : memref<2x64xf32, #tpu.memory_space<smem>>
    %76 = vector.broadcast %75 : f32 to vector<64x8xf32>
    %77 = arith.mulf %76, %73 : vector<64x8xf32>
    %78 = arith.addf %66, %77 : vector<64x8xf32>
    %79 = arith.index_cast %arg1 : i32 to index
    %c41 = arith.constant 41 : index
    %80 = memref.load %arg3[%79, %c41] : memref<2x64xf32, #tpu.memory_space<smem>>
    %81 = vector.broadcast %80 : f32 to vector<64x8xf32>
    %82 = arith.mulf %81, %73 : vector<64x8xf32>
    %83 = arith.addf %71, %82 : vector<64x8xf32>
    %c0_27 = arith.constant 0 : index
    %c0_28 = arith.constant 0 : index
    %c6 = arith.constant 6 : index
    %c0_29 = arith.constant 0 : index
    %c0_30 = arith.constant 0 : index
    %84 = vector.load %arg4[%c0_27, %c0_28, %c6, %c0_29, %c0_30] : memref<1x1x8x64x8xf32, #tpu.memory_space<vmem>>, vector<1x1x1x64x8xf32>
    %85 = vector.shape_cast %84 : vector<1x1x1x64x8xf32> to vector<64x8xf32>
    %86 = arith.index_cast %arg1 : i32 to index
    %c48 = arith.constant 48 : index
    %87 = memref.load %arg3[%86, %c48] : memref<2x64xf32, #tpu.memory_space<smem>>
    %88 = vector.broadcast %87 : f32 to vector<64x8xf32>
    %89 = arith.mulf %88, %85 : vector<64x8xf32>
    %90 = arith.addf %78, %89 : vector<64x8xf32>
    %91 = arith.index_cast %arg1 : i32 to index
    %c49 = arith.constant 49 : index
    %92 = memref.load %arg3[%91, %c49] : memref<2x64xf32, #tpu.memory_space<smem>>
    %93 = vector.broadcast %92 : f32 to vector<64x8xf32>
    %94 = arith.mulf %93, %85 : vector<64x8xf32>
    %95 = arith.addf %83, %94 : vector<64x8xf32>
    %c0_31 = arith.constant 0 : index
    %c0_32 = arith.constant 0 : index
    %c7 = arith.constant 7 : index
    %c0_33 = arith.constant 0 : index
    %c0_34 = arith.constant 0 : index
    %96 = vector.load %arg4[%c0_31, %c0_32, %c7, %c0_33, %c0_34] : memref<1x1x8x64x8xf32, #tpu.memory_space<vmem>>, vector<1x1x1x64x8xf32>
    %97 = vector.shape_cast %96 : vector<1x1x1x64x8xf32> to vector<64x8xf32>
    %98 = arith.index_cast %arg1 : i32 to index
    %c56 = arith.constant 56 : index
    %99 = memref.load %arg3[%98, %c56] : memref<2x64xf32, #tpu.memory_space<smem>>
    %100 = vector.broadcast %99 : f32 to vector<64x8xf32>
    %101 = arith.mulf %100, %97 : vector<64x8xf32>
    %102 = arith.addf %90, %101 : vector<64x8xf32>
    %103 = arith.index_cast %arg1 : i32 to index
    %c57 = arith.constant 57 : index
    %104 = memref.load %arg3[%103, %c57] : memref<2x64xf32, #tpu.memory_space<smem>>
    %105 = vector.broadcast %104 : f32 to vector<64x8xf32>
    %106 = arith.mulf %105, %97 : vector<64x8xf32>
    %107 = arith.addf %95, %106 : vector<64x8xf32>
    %cst = arith.constant dense<0.000000e+00> : vector<64x16xf32>
    %108 = tpu.matmul %102, %6, %cst {dimension_numbers = #tpu.dot_dimension_numbers<[1], [0], [0], [1], [0, 0, 1, 1], [], []>} : vector<64x8xf32>, vector<8x16xf32>, vector<64x16xf32> -> vector<64x16xf32>
    %cst_35 = arith.constant dense<0.000000e+00> : vector<64x16xf32>
    %109 = tpu.matmul %107, %13, %cst_35 {dimension_numbers = #tpu.dot_dimension_numbers<[1], [0], [0], [1], [0, 0, 1, 1], [], []>} : vector<64x8xf32>, vector<8x16xf32>, vector<64x16xf32> -> vector<64x16xf32>
    %110 = arith.addf %108, %109 : vector<64x16xf32>
    %111 = vector.shape_cast %110 : vector<64x16xf32> to vector<8x8x16xf32>
    %c0_36 = arith.constant 0 : index
    %c0_37 = arith.constant 0 : index
    %c0_38 = arith.constant 0 : index
    %c0_39 = arith.constant 0 : index
    %c0_40 = arith.constant 0 : index
    %c0_41 = arith.constant 0 : index
    %112 = vector.load %arg5[%c0_36, %c0_37, %c0_38, %c0_39, %c0_40, %c0_41] : memref<1x1x8x2x8x32xf32, #tpu.memory_space<vmem>>, vector<1x1x8x1x8x16xf32>
    %113 = vector.shape_cast %112 : vector<1x1x8x1x8x16xf32> to vector<8x8x16xf32>
    %114 = vector.shape_cast %111 : vector<8x8x16xf32> to vector<1x1x8x1x8x16xf32>
    tpu.vector_store %arg5[%c0_36, %c0_37, %c0_38, %c0_39, %c0_40, %c0_41], %114 {strides = array<i32>} : memref<1x1x8x2x8x32xf32, #tpu.memory_space<vmem>>, vector<1x1x8x1x8x16xf32>,
    %c0_42 = arith.constant 0 : index
    %c0_43 = arith.constant 0 : index
    %c0_44 = arith.constant 0 : index
    %c0_45 = arith.constant 0 : index
    %c0_46 = arith.constant 0 : index
    %115 = vector.load %arg4[%c0_42, %c0_43, %c0_44, %c0_45, %c0_46] : memref<1x1x8x64x8xf32, #tpu.memory_space<vmem>>, vector<1x1x1x64x8xf32>
    %116 = vector.shape_cast %115 : vector<1x1x1x64x8xf32> to vector<64x8xf32>
    %117 = arith.index_cast %arg1 : i32 to index
    %c2_47 = arith.constant 2 : index
    %118 = memref.load %arg3[%117, %c2_47] : memref<2x64xf32, #tpu.memory_space<smem>>
    %119 = vector.broadcast %118 : f32 to vector<64x8xf32>
    %120 = arith.mulf %119, %116 : vector<64x8xf32>
    %121 = arith.index_cast %arg1 : i32 to index
    %c3_48 = arith.constant 3 : index
    %122 = memref.load %arg3[%121, %c3_48] : memref<2x64xf32, #tpu.memory_space<smem>>
    %123 = vector.broadcast %122 : f32 to vector<64x8xf32>
    %124 = arith.mulf %123, %116 : vector<64x8xf32>
    %c0_49 = arith.constant 0 : index
    %c0_50 = arith.constant 0 : index
    %c1_51 = arith.constant 1 : index
    %c0_52 = arith.constant 0 : index
    %c0_53 = arith.constant 0 : index
    %125 = vector.load %arg4[%c0_49, %c0_50, %c1_51, %c0_52, %c0_53] : memref<1x1x8x64x8xf32, #tpu.memory_space<vmem>>, vector<1x1x1x64x8xf32>
    %126 = vector.shape_cast %125 : vector<1x1x1x64x8xf32> to vector<64x8xf32>
    %127 = arith.index_cast %arg1 : i32 to index
    %c10 = arith.constant 10 : index
    %128 = memref.load %arg3[%127, %c10] : memref<2x64xf32, #tpu.memory_space<smem>>
    %129 = vector.broadcast %128 : f32 to vector<64x8xf32>
    %130 = arith.mulf %129, %126 : vector<64x8xf32>
    %131 = arith.addf %120, %130 : vector<64x8xf32>
    %132 = arith.index_cast %arg1 : i32 to index
    %c11 = arith.constant 11 : index
    %133 = memref.load %arg3[%132, %c11] : memref<2x64xf32, #tpu.memory_space<smem>>
    %134 = vector.broadcast %133 : f32 to vector<64x8xf32>
    %135 = arith.mulf %134, %126 : vector<64x8xf32>
    %136 = arith.addf %124, %135 : vector<64x8xf32>
    %c0_54 = arith.constant 0 : index
    %c0_55 = arith.constant 0 : index
    %c2_56 = arith.constant 2 : index
    %c0_57 = arith.constant 0 : index
    %c0_58 = arith.constant 0 : index
    %137 = vector.load %arg4[%c0_54, %c0_55, %c2_56, %c0_57, %c0_58] : memref<1x1x8x64x8xf32, #tpu.memory_space<vmem>>, vector<1x1x1x64x8xf32>
    %138 = vector.shape_cast %137 : vector<1x1x1x64x8xf32> to vector<64x8xf32>
    %139 = arith.index_cast %arg1 : i32 to index
    %c18 = arith.constant 18 : index
    %140 = memref.load %arg3[%139, %c18] : memref<2x64xf32, #tpu.memory_space<smem>>
    %141 = vector.broadcast %140 : f32 to vector<64x8xf32>
    %142 = arith.mulf %141, %138 : vector<64x8xf32>
    %143 = arith.addf %131, %142 : vector<64x8xf32>
    %144 = arith.index_cast %arg1 : i32 to index
    %c19 = arith.constant 19 : index
    %145 = memref.load %arg3[%144, %c19] : memref<2x64xf32, #tpu.memory_space<smem>>
    %146 = vector.broadcast %145 : f32 to vector<64x8xf32>
    %147 = arith.mulf %146, %138 : vector<64x8xf32>
    %148 = arith.addf %136, %147 : vector<64x8xf32>
    %c0_59 = arith.constant 0 : index
    %c0_60 = arith.constant 0 : index
    %c3_61 = arith.constant 3 : index
    %c0_62 = arith.constant 0 : index
    %c0_63 = arith.constant 0 : index
    %149 = vector.load %arg4[%c0_59, %c0_60, %c3_61, %c0_62, %c0_63] : memref<1x1x8x64x8xf32, #tpu.memory_space<vmem>>, vector<1x1x1x64x8xf32>
    %150 = vector.shape_cast %149 : vector<1x1x1x64x8xf32> to vector<64x8xf32>
    %151 = arith.index_cast %arg1 : i32 to index
    %c26 = arith.constant 26 : index
    %152 = memref.load %arg3[%151, %c26] : memref<2x64xf32, #tpu.memory_space<smem>>
    %153 = vector.broadcast %152 : f32 to vector<64x8xf32>
    %154 = arith.mulf %153, %150 : vector<64x8xf32>
    %155 = arith.addf %143, %154 : vector<64x8xf32>
    %156 = arith.index_cast %arg1 : i32 to index
    %c27 = arith.constant 27 : index
    %157 = memref.load %arg3[%156, %c27] : memref<2x64xf32, #tpu.memory_space<smem>>
    %158 = vector.broadcast %157 : f32 to vector<64x8xf32>
    %159 = arith.mulf %158, %150 : vector<64x8xf32>
    %160 = arith.addf %148, %159 : vector<64x8xf32>
    %c0_64 = arith.constant 0 : index
    %c0_65 = arith.constant 0 : index
    %c4_66 = arith.constant 4 : index
    %c0_67 = arith.constant 0 : index
    %c0_68 = arith.constant 0 : index
    %161 = vector.load %arg4[%c0_64, %c0_65, %c4_66, %c0_67, %c0_68] : memref<1x1x8x64x8xf32, #tpu.memory_space<vmem>>, vector<1x1x1x64x8xf32>
    %162 = vector.shape_cast %161 : vector<1x1x1x64x8xf32> to vector<64x8xf32>
    %163 = arith.index_cast %arg1 : i32 to index
    %c34 = arith.constant 34 : index
    %164 = memref.load %arg3[%163, %c34] : memref<2x64xf32, #tpu.memory_space<smem>>
    %165 = vector.broadcast %164 : f32 to vector<64x8xf32>
    %166 = arith.mulf %165, %162 : vector<64x8xf32>
    %167 = arith.addf %155, %166 : vector<64x8xf32>
    %168 = arith.index_cast %arg1 : i32 to index
    %c35 = arith.constant 35 : index
    %169 = memref.load %arg3[%168, %c35] : memref<2x64xf32, #tpu.memory_space<smem>>
    %170 = vector.broadcast %169 : f32 to vector<64x8xf32>
    %171 = arith.mulf %170, %162 : vector<64x8xf32>
    %172 = arith.addf %160, %171 : vector<64x8xf32>
    %c0_69 = arith.constant 0 : index
    %c0_70 = arith.constant 0 : index
    %c5_71 = arith.constant 5 : index
    %c0_72 = arith.constant 0 : index
    %c0_73 = arith.constant 0 : index
    %173 = vector.load %arg4[%c0_69, %c0_70, %c5_71, %c0_72, %c0_73] : memref<1x1x8x64x8xf32, #tpu.memory_space<vmem>>, vector<1x1x1x64x8xf32>
    %174 = vector.shape_cast %173 : vector<1x1x1x64x8xf32> to vector<64x8xf32>
    %175 = arith.index_cast %arg1 : i32 to index
    %c42 = arith.constant 42 : index
    %176 = memref.load %arg3[%175, %c42] : memref<2x64xf32, #tpu.memory_space<smem>>
    %177 = vector.broadcast %176 : f32 to vector<64x8xf32>
    %178 = arith.mulf %177, %174 : vector<64x8xf32>
    %179 = arith.addf %167, %178 : vector<64x8xf32>
    %180 = arith.index_cast %arg1 : i32 to index
    %c43 = arith.constant 43 : index
    %181 = memref.load %arg3[%180, %c43] : memref<2x64xf32, #tpu.memory_space<smem>>
    %182 = vector.broadcast %181 : f32 to vector<64x8xf32>
    %183 = arith.mulf %182, %174 : vector<64x8xf32>
    %184 = arith.addf %172, %183 : vector<64x8xf32>
    %c0_74 = arith.constant 0 : index
    %c0_75 = arith.constant 0 : index
    %c6_76 = arith.constant 6 : index
    %c0_77 = arith.constant 0 : index
    %c0_78 = arith.constant 0 : index
    %185 = vector.load %arg4[%c0_74, %c0_75, %c6_76, %c0_77, %c0_78] : memref<1x1x8x64x8xf32, #tpu.memory_space<vmem>>, vector<1x1x1x64x8xf32>
    %186 = vector.shape_cast %185 : vector<1x1x1x64x8xf32> to vector<64x8xf32>
    %187 = arith.index_cast %arg1 : i32 to index
    %c50 = arith.constant 50 : index
    %188 = memref.load %arg3[%187, %c50] : memref<2x64xf32, #tpu.memory_space<smem>>
    %189 = vector.broadcast %188 : f32 to vector<64x8xf32>
    %190 = arith.mulf %189, %186 : vector<64x8xf32>
    %191 = arith.addf %179, %190 : vector<64x8xf32>
    %192 = arith.index_cast %arg1 : i32 to index
    %c51 = arith.constant 51 : index
    %193 = memref.load %arg3[%192, %c51] : memref<2x64xf32, #tpu.memory_space<smem>>
    %194 = vector.broadcast %193 : f32 to vector<64x8xf32>
    %195 = arith.mulf %194, %186 : vector<64x8xf32>
    %196 = arith.addf %184, %195 : vector<64x8xf32>
    %c0_79 = arith.constant 0 : index
    %c0_80 = arith.constant 0 : index
    %c7_81 = arith.constant 7 : index
    %c0_82 = arith.constant 0 : index
    %c0_83 = arith.constant 0 : index
    %197 = vector.load %arg4[%c0_79, %c0_80, %c7_81, %c0_82, %c0_83] : memref<1x1x8x64x8xf32, #tpu.memory_space<vmem>>, vector<1x1x1x64x8xf32>
    %198 = vector.shape_cast %197 : vector<1x1x1x64x8xf32> to vector<64x8xf32>
    %199 = arith.index_cast %arg1 : i32 to index
    %c58 = arith.constant 58 : index
    %200 = memref.load %arg3[%199, %c58] : memref<2x64xf32, #tpu.memory_space<smem>>
    %201 = vector.broadcast %200 : f32 to vector<64x8xf32>
    %202 = arith.mulf %201, %198 : vector<64x8xf32>
    %203 = arith.addf %191, %202 : vector<64x8xf32>
    %204 = arith.index_cast %arg1 : i32 to index
    %c59 = arith.constant 59 : index
    %205 = memref.load %arg3[%204, %c59] : memref<2x64xf32, #tpu.memory_space<smem>>
    %206 = vector.broadcast %205 : f32 to vector<64x8xf32>
    %207 = arith.mulf %206, %198 : vector<64x8xf32>
    %208 = arith.addf %196, %207 : vector<64x8xf32>
    %cst_84 = arith.constant dense<0.000000e+00> : vector<64x16xf32>
    %209 = tpu.matmul %203, %6, %cst_84 {dimension_numbers = #tpu.dot_dimension_numbers<[1], [0], [0], [1], [0, 0, 1, 1], [], []>} : vector<64x8xf32>, vector<8x16xf32>, vector<64x16xf32> -> vector<64x16xf32>
    %cst_85 = arith.constant dense<0.000000e+00> : vector<64x16xf32>
    %210 = tpu.matmul %208, %13, %cst_85 {dimension_numbers = #tpu.dot_dimension_numbers<[1], [0], [0], [1], [0, 0, 1, 1], [], []>} : vector<64x8xf32>, vector<8x16xf32>, vector<64x16xf32> -> vector<64x16xf32>
    %211 = arith.addf %209, %210 : vector<64x16xf32>
    %212 = vector.shape_cast %211 : vector<64x16xf32> to vector<8x8x16xf32>
    %c0_86 = arith.constant 0 : index
    %c0_87 = arith.constant 0 : index
    %c0_88 = arith.constant 0 : index
    %c0_89 = arith.constant 0 : index
    %c0_90 = arith.constant 0 : index
    %c16_91 = arith.constant 16 : index
    %213 = vector.load %arg5[%c0_86, %c0_87, %c0_88, %c0_89, %c0_90, %c16_91] : memref<1x1x8x2x8x32xf32, #tpu.memory_space<vmem>>, vector<1x1x8x1x8x16xf32>
    %214 = vector.shape_cast %213 : vector<1x1x8x1x8x16xf32> to vector<8x8x16xf32>
    %215 = vector.shape_cast %212 : vector<8x8x16xf32> to vector<1x1x8x1x8x16xf32>
    tpu.vector_store %arg5[%c0_86, %c0_87, %c0_88, %c0_89, %c0_90, %c16_91], %215 {strides = array<i32>} : memref<1x1x8x2x8x32xf32, #tpu.memory_space<vmem>>, vector<1x1x8x1x8x16xf32>,
    %c0_92 = arith.constant 0 : index
    %c0_93 = arith.constant 0 : index
    %c0_94 = arith.constant 0 : index
    %c0_95 = arith.constant 0 : index
    %c0_96 = arith.constant 0 : index
    %216 = vector.load %arg4[%c0_92, %c0_93, %c0_94, %c0_95, %c0_96] : memref<1x1x8x64x8xf32, #tpu.memory_space<vmem>>, vector<1x1x1x64x8xf32>
    %217 = vector.shape_cast %216 : vector<1x1x1x64x8xf32> to vector<64x8xf32>
    %218 = arith.index_cast %arg1 : i32 to index
    %c4_97 = arith.constant 4 : index
    %219 = memref.load %arg3[%218, %c4_97] : memref<2x64xf32, #tpu.memory_space<smem>>
    %220 = vector.broadcast %219 : f32 to vector<64x8xf32>
    %221 = arith.mulf %220, %217 : vector<64x8xf32>
    %222 = arith.index_cast %arg1 : i32 to index
    %c5_98 = arith.constant 5 : index
    %223 = memref.load %arg3[%222, %c5_98] : memref<2x64xf32, #tpu.memory_space<smem>>
    %224 = vector.broadcast %223 : f32 to vector<64x8xf32>
    %225 = arith.mulf %224, %217 : vector<64x8xf32>
    %c0_99 = arith.constant 0 : index
    %c0_100 = arith.constant 0 : index
    %c1_101 = arith.constant 1 : index
    %c0_102 = arith.constant 0 : index
    %c0_103 = arith.constant 0 : index
    %226 = vector.load %arg4[%c0_99, %c0_100, %c1_101, %c0_102, %c0_103] : memref<1x1x8x64x8xf32, #tpu.memory_space<vmem>>, vector<1x1x1x64x8xf32>
    %227 = vector.shape_cast %226 : vector<1x1x1x64x8xf32> to vector<64x8xf32>
    %228 = arith.index_cast %arg1 : i32 to index
    %c12 = arith.constant 12 : index
    %229 = memref.load %arg3[%228, %c12] : memref<2x64xf32, #tpu.memory_space<smem>>
    %230 = vector.broadcast %229 : f32 to vector<64x8xf32>
    %231 = arith.mulf %230, %227 : vector<64x8xf32>
    %232 = arith.addf %221, %231 : vector<64x8xf32>
    %233 = arith.index_cast %arg1 : i32 to index
    %c13 = arith.constant 13 : index
    %234 = memref.load %arg3[%233, %c13] : memref<2x64xf32, #tpu.memory_space<smem>>
    %235 = vector.broadcast %234 : f32 to vector<64x8xf32>
    %236 = arith.mulf %235, %227 : vector<64x8xf32>
    %237 = arith.addf %225, %236 : vector<64x8xf32>
    %c0_104 = arith.constant 0 : index
    %c0_105 = arith.constant 0 : index
    %c2_106 = arith.constant 2 : index
    %c0_107 = arith.constant 0 : index
    %c0_108 = arith.constant 0 : index
    %238 = vector.load %arg4[%c0_104, %c0_105, %c2_106, %c0_107, %c0_108] : memref<1x1x8x64x8xf32, #tpu.memory_space<vmem>>, vector<1x1x1x64x8xf32>
    %239 = vector.shape_cast %238 : vector<1x1x1x64x8xf32> to vector<64x8xf32>
    %240 = arith.index_cast %arg1 : i32 to index
    %c20 = arith.constant 20 : index
    %241 = memref.load %arg3[%240, %c20] : memref<2x64xf32, #tpu.memory_space<smem>>
    %242 = vector.broadcast %241 : f32 to vector<64x8xf32>
    %243 = arith.mulf %242, %239 : vector<64x8xf32>
    %244 = arith.addf %232, %243 : vector<64x8xf32>
    %245 = arith.index_cast %arg1 : i32 to index
    %c21 = arith.constant 21 : index
    %246 = memref.load %arg3[%245, %c21] : memref<2x64xf32, #tpu.memory_space<smem>>
    %247 = vector.broadcast %246 : f32 to vector<64x8xf32>
    %248 = arith.mulf %247, %239 : vector<64x8xf32>
    %249 = arith.addf %237, %248 : vector<64x8xf32>
    %c0_109 = arith.constant 0 : index
    %c0_110 = arith.constant 0 : index
    %c3_111 = arith.constant 3 : index
    %c0_112 = arith.constant 0 : index
    %c0_113 = arith.constant 0 : index
    %250 = vector.load %arg4[%c0_109, %c0_110, %c3_111, %c0_112, %c0_113] : memref<1x1x8x64x8xf32, #tpu.memory_space<vmem>>, vector<1x1x1x64x8xf32>
    %251 = vector.shape_cast %250 : vector<1x1x1x64x8xf32> to vector<64x8xf32>
    %252 = arith.index_cast %arg1 : i32 to index
    %c28 = arith.constant 28 : index
    %253 = memref.load %arg3[%252, %c28] : memref<2x64xf32, #tpu.memory_space<smem>>
    %254 = vector.broadcast %253 : f32 to vector<64x8xf32>
    %255 = arith.mulf %254, %251 : vector<64x8xf32>
    %256 = arith.addf %244, %255 : vector<64x8xf32>
    %257 = arith.index_cast %arg1 : i32 to index
    %c29 = arith.constant 29 : index
    %258 = memref.load %arg3[%257, %c29] : memref<2x64xf32, #tpu.memory_space<smem>>
    %259 = vector.broadcast %258 : f32 to vector<64x8xf32>
    %260 = arith.mulf %259, %251 : vector<64x8xf32>
    %261 = arith.addf %249, %260 : vector<64x8xf32>
    %c0_114 = arith.constant 0 : index
    %c0_115 = arith.constant 0 : index
    %c4_116 = arith.constant 4 : index
    %c0_117 = arith.constant 0 : index
    %c0_118 = arith.constant 0 : index
    %262 = vector.load %arg4[%c0_114, %c0_115, %c4_116, %c0_117, %c0_118] : memref<1x1x8x64x8xf32, #tpu.memory_space<vmem>>, vector<1x1x1x64x8xf32>
    %263 = vector.shape_cast %262 : vector<1x1x1x64x8xf32> to vector<64x8xf32>
    %264 = arith.index_cast %arg1 : i32 to index
    %c36 = arith.constant 36 : index
    %265 = memref.load %arg3[%264, %c36] : memref<2x64xf32, #tpu.memory_space<smem>>
    %266 = vector.broadcast %265 : f32 to vector<64x8xf32>
    %267 = arith.mulf %266, %263 : vector<64x8xf32>
    %268 = arith.addf %256, %267 : vector<64x8xf32>
    %269 = arith.index_cast %arg1 : i32 to index
    %c37 = arith.constant 37 : index
    %270 = memref.load %arg3[%269, %c37] : memref<2x64xf32, #tpu.memory_space<smem>>
    %271 = vector.broadcast %270 : f32 to vector<64x8xf32>
    %272 = arith.mulf %271, %263 : vector<64x8xf32>
    %273 = arith.addf %261, %272 : vector<64x8xf32>
    %c0_119 = arith.constant 0 : index
    %c0_120 = arith.constant 0 : index
    %c5_121 = arith.constant 5 : index
    %c0_122 = arith.constant 0 : index
    %c0_123 = arith.constant 0 : index
    %274 = vector.load %arg4[%c0_119, %c0_120, %c5_121, %c0_122, %c0_123] : memref<1x1x8x64x8xf32, #tpu.memory_space<vmem>>, vector<1x1x1x64x8xf32>
    %275 = vector.shape_cast %274 : vector<1x1x1x64x8xf32> to vector<64x8xf32>
    %276 = arith.index_cast %arg1 : i32 to index
    %c44 = arith.constant 44 : index
    %277 = memref.load %arg3[%276, %c44] : memref<2x64xf32, #tpu.memory_space<smem>>
    %278 = vector.broadcast %277 : f32 to vector<64x8xf32>
    %279 = arith.mulf %278, %275 : vector<64x8xf32>
    %280 = arith.addf %268, %279 : vector<64x8xf32>
    %281 = arith.index_cast %arg1 : i32 to index
    %c45 = arith.constant 45 : index
    %282 = memref.load %arg3[%281, %c45] : memref<2x64xf32, #tpu.memory_space<smem>>
    %283 = vector.broadcast %282 : f32 to vector<64x8xf32>
    %284 = arith.mulf %283, %275 : vector<64x8xf32>
    %285 = arith.addf %273, %284 : vector<64x8xf32>
    %c0_124 = arith.constant 0 : index
    %c0_125 = arith.constant 0 : index
    %c6_126 = arith.constant 6 : index
    %c0_127 = arith.constant 0 : index
    %c0_128 = arith.constant 0 : index
    %286 = vector.load %arg4[%c0_124, %c0_125, %c6_126, %c0_127, %c0_128] : memref<1x1x8x64x8xf32, #tpu.memory_space<vmem>>, vector<1x1x1x64x8xf32>
    %287 = vector.shape_cast %286 : vector<1x1x1x64x8xf32> to vector<64x8xf32>
    %288 = arith.index_cast %arg1 : i32 to index
    %c52 = arith.constant 52 : index
    %289 = memref.load %arg3[%288, %c52] : memref<2x64xf32, #tpu.memory_space<smem>>
    %290 = vector.broadcast %289 : f32 to vector<64x8xf32>
    %291 = arith.mulf %290, %287 : vector<64x8xf32>
    %292 = arith.addf %280, %291 : vector<64x8xf32>
    %293 = arith.index_cast %arg1 : i32 to index
    %c53 = arith.constant 53 : index
    %294 = memref.load %arg3[%293, %c53] : memref<2x64xf32, #tpu.memory_space<smem>>
    %295 = vector.broadcast %294 : f32 to vector<64x8xf32>
    %296 = arith.mulf %295, %287 : vector<64x8xf32>
    %297 = arith.addf %285, %296 : vector<64x8xf32>
    %c0_129 = arith.constant 0 : index
    %c0_130 = arith.constant 0 : index
    %c7_131 = arith.constant 7 : index
    %c0_132 = arith.constant 0 : index
    %c0_133 = arith.constant 0 : index
    %298 = vector.load %arg4[%c0_129, %c0_130, %c7_131, %c0_132, %c0_133] : memref<1x1x8x64x8xf32, #tpu.memory_space<vmem>>, vector<1x1x1x64x8xf32>
    %299 = vector.shape_cast %298 : vector<1x1x1x64x8xf32> to vector<64x8xf32>
    %300 = arith.index_cast %arg1 : i32 to index
    %c60 = arith.constant 60 : index
    %301 = memref.load %arg3[%300, %c60] : memref<2x64xf32, #tpu.memory_space<smem>>
    %302 = vector.broadcast %301 : f32 to vector<64x8xf32>
    %303 = arith.mulf %302, %299 : vector<64x8xf32>
    %304 = arith.addf %292, %303 : vector<64x8xf32>
    %305 = arith.index_cast %arg1 : i32 to index
    %c61 = arith.constant 61 : index
    %306 = memref.load %arg3[%305, %c61] : memref<2x64xf32, #tpu.memory_space<smem>>
    %307 = vector.broadcast %306 : f32 to vector<64x8xf32>
    %308 = arith.mulf %307, %299 : vector<64x8xf32>
    %309 = arith.addf %297, %308 : vector<64x8xf32>
    %cst_134 = arith.constant dense<0.000000e+00> : vector<64x16xf32>
    %310 = tpu.matmul %304, %6, %cst_134 {dimension_numbers = #tpu.dot_dimension_numbers<[1], [0], [0], [1], [0, 0, 1, 1], [], []>} : vector<64x8xf32>, vector<8x16xf32>, vector<64x16xf32> -> vector<64x16xf32>
    %cst_135 = arith.constant dense<0.000000e+00> : vector<64x16xf32>
    %311 = tpu.matmul %309, %13, %cst_135 {dimension_numbers = #tpu.dot_dimension_numbers<[1], [0], [0], [1], [0, 0, 1, 1], [], []>} : vector<64x8xf32>, vector<8x16xf32>, vector<64x16xf32> -> vector<64x16xf32>
    %312 = arith.addf %310, %311 : vector<64x16xf32>
    %313 = vector.shape_cast %312 : vector<64x16xf32> to vector<8x8x16xf32>
    %c0_136 = arith.constant 0 : index
    %c0_137 = arith.constant 0 : index
    %c0_138 = arith.constant 0 : index
    %c1_139 = arith.constant 1 : index
    %c0_140 = arith.constant 0 : index
    %c0_141 = arith.constant 0 : index
    %314 = vector.load %arg5[%c0_136, %c0_137, %c0_138, %c1_139, %c0_140, %c0_141] : memref<1x1x8x2x8x32xf32, #tpu.memory_space<vmem>>, vector<1x1x8x1x8x16xf32>
    %315 = vector.shape_cast %314 : vector<1x1x8x1x8x16xf32> to vector<8x8x16xf32>
    %316 = vector.shape_cast %313 : vector<8x8x16xf32> to vector<1x1x8x1x8x16xf32>
    tpu.vector_store %arg5[%c0_136, %c0_137, %c0_138, %c1_139, %c0_140, %c0_141], %316 {strides = array<i32>} : memref<1x1x8x2x8x32xf32, #tpu.memory_space<vmem>>, vector<1x1x8x1x8x16xf32>,
    %c0_142 = arith.constant 0 : index
    %c0_143 = arith.constant 0 : index
    %c0_144 = arith.constant 0 : index
    %c0_145 = arith.constant 0 : index
    %c0_146 = arith.constant 0 : index
    %317 = vector.load %arg4[%c0_142, %c0_143, %c0_144, %c0_145, %c0_146] : memref<1x1x8x64x8xf32, #tpu.memory_space<vmem>>, vector<1x1x1x64x8xf32>
    %318 = vector.shape_cast %317 : vector<1x1x1x64x8xf32> to vector<64x8xf32>
    %319 = arith.index_cast %arg1 : i32 to index
    %c6_147 = arith.constant 6 : index
    %320 = memref.load %arg3[%319, %c6_147] : memref<2x64xf32, #tpu.memory_space<smem>>
    %321 = vector.broadcast %320 : f32 to vector<64x8xf32>
    %322 = arith.mulf %321, %318 : vector<64x8xf32>
    %323 = arith.index_cast %arg1 : i32 to index
    %c7_148 = arith.constant 7 : index
    %324 = memref.load %arg3[%323, %c7_148] : memref<2x64xf32, #tpu.memory_space<smem>>
    %325 = vector.broadcast %324 : f32 to vector<64x8xf32>
    %326 = arith.mulf %325, %318 : vector<64x8xf32>
    %c0_149 = arith.constant 0 : index
    %c0_150 = arith.constant 0 : index
    %c1_151 = arith.constant 1 : index
    %c0_152 = arith.constant 0 : index
    %c0_153 = arith.constant 0 : index
    %327 = vector.load %arg4[%c0_149, %c0_150, %c1_151, %c0_152, %c0_153] : memref<1x1x8x64x8xf32, #tpu.memory_space<vmem>>, vector<1x1x1x64x8xf32>
    %328 = vector.shape_cast %327 : vector<1x1x1x64x8xf32> to vector<64x8xf32>
    %329 = arith.index_cast %arg1 : i32 to index
    %c14 = arith.constant 14 : index
    %330 = memref.load %arg3[%329, %c14] : memref<2x64xf32, #tpu.memory_space<smem>>
    %331 = vector.broadcast %330 : f32 to vector<64x8xf32>
    %332 = arith.mulf %331, %328 : vector<64x8xf32>
    %333 = arith.addf %322, %332 : vector<64x8xf32>
    %334 = arith.index_cast %arg1 : i32 to index
    %c15 = arith.constant 15 : index
    %335 = memref.load %arg3[%334, %c15] : memref<2x64xf32, #tpu.memory_space<smem>>
    %336 = vector.broadcast %335 : f32 to vector<64x8xf32>
    %337 = arith.mulf %336, %328 : vector<64x8xf32>
    %338 = arith.addf %326, %337 : vector<64x8xf32>
    %c0_154 = arith.constant 0 : index
    %c0_155 = arith.constant 0 : index
    %c2_156 = arith.constant 2 : index
    %c0_157 = arith.constant 0 : index
    %c0_158 = arith.constant 0 : index
    %339 = vector.load %arg4[%c0_154, %c0_155, %c2_156, %c0_157, %c0_158] : memref<1x1x8x64x8xf32, #tpu.memory_space<vmem>>, vector<1x1x1x64x8xf32>
    %340 = vector.shape_cast %339 : vector<1x1x1x64x8xf32> to vector<64x8xf32>
    %341 = arith.index_cast %arg1 : i32 to index
    %c22 = arith.constant 22 : index
    %342 = memref.load %arg3[%341, %c22] : memref<2x64xf32, #tpu.memory_space<smem>>
    %343 = vector.broadcast %342 : f32 to vector<64x8xf32>
    %344 = arith.mulf %343, %340 : vector<64x8xf32>
    %345 = arith.addf %333, %344 : vector<64x8xf32>
    %346 = arith.index_cast %arg1 : i32 to index
    %c23 = arith.constant 23 : index
    %347 = memref.load %arg3[%346, %c23] : memref<2x64xf32, #tpu.memory_space<smem>>
    %348 = vector.broadcast %347 : f32 to vector<64x8xf32>
    %349 = arith.mulf %348, %340 : vector<64x8xf32>
    %350 = arith.addf %338, %349 : vector<64x8xf32>
    %c0_159 = arith.constant 0 : index
    %c0_160 = arith.constant 0 : index
    %c3_161 = arith.constant 3 : index
    %c0_162 = arith.constant 0 : index
    %c0_163 = arith.constant 0 : index
    %351 = vector.load %arg4[%c0_159, %c0_160, %c3_161, %c0_162, %c0_163] : memref<1x1x8x64x8xf32, #tpu.memory_space<vmem>>, vector<1x1x1x64x8xf32>
    %352 = vector.shape_cast %351 : vector<1x1x1x64x8xf32> to vector<64x8xf32>
    %353 = arith.index_cast %arg1 : i32 to index
    %c30 = arith.constant 30 : index
    %354 = memref.load %arg3[%353, %c30] : memref<2x64xf32, #tpu.memory_space<smem>>
    %355 = vector.broadcast %354 : f32 to vector<64x8xf32>
    %356 = arith.mulf %355, %352 : vector<64x8xf32>
    %357 = arith.addf %345, %356 : vector<64x8xf32>
    %358 = arith.index_cast %arg1 : i32 to index
    %c31 = arith.constant 31 : index
    %359 = memref.load %arg3[%358, %c31] : memref<2x64xf32, #tpu.memory_space<smem>>
    %360 = vector.broadcast %359 : f32 to vector<64x8xf32>
    %361 = arith.mulf %360, %352 : vector<64x8xf32>
    %362 = arith.addf %350, %361 : vector<64x8xf32>
    %c0_164 = arith.constant 0 : index
    %c0_165 = arith.constant 0 : index
    %c4_166 = arith.constant 4 : index
    %c0_167 = arith.constant 0 : index
    %c0_168 = arith.constant 0 : index
    %363 = vector.load %arg4[%c0_164, %c0_165, %c4_166, %c0_167, %c0_168] : memref<1x1x8x64x8xf32, #tpu.memory_space<vmem>>, vector<1x1x1x64x8xf32>
    %364 = vector.shape_cast %363 : vector<1x1x1x64x8xf32> to vector<64x8xf32>
    %365 = arith.index_cast %arg1 : i32 to index
    %c38 = arith.constant 38 : index
    %366 = memref.load %arg3[%365, %c38] : memref<2x64xf32, #tpu.memory_space<smem>>
    %367 = vector.broadcast %366 : f32 to vector<64x8xf32>
    %368 = arith.mulf %367, %364 : vector<64x8xf32>
    %369 = arith.addf %357, %368 : vector<64x8xf32>
    %370 = arith.index_cast %arg1 : i32 to index
    %c39 = arith.constant 39 : index
    %371 = memref.load %arg3[%370, %c39] : memref<2x64xf32, #tpu.memory_space<smem>>
    %372 = vector.broadcast %371 : f32 to vector<64x8xf32>
    %373 = arith.mulf %372, %364 : vector<64x8xf32>
    %374 = arith.addf %362, %373 : vector<64x8xf32>
    %c0_169 = arith.constant 0 : index
    %c0_170 = arith.constant 0 : index
    %c5_171 = arith.constant 5 : index
    %c0_172 = arith.constant 0 : index
    %c0_173 = arith.constant 0 : index
    %375 = vector.load %arg4[%c0_169, %c0_170, %c5_171, %c0_172, %c0_173] : memref<1x1x8x64x8xf32, #tpu.memory_space<vmem>>, vector<1x1x1x64x8xf32>
    %376 = vector.shape_cast %375 : vector<1x1x1x64x8xf32> to vector<64x8xf32>
    %377 = arith.index_cast %arg1 : i32 to index
    %c46 = arith.constant 46 : index
    %378 = memref.load %arg3[%377, %c46] : memref<2x64xf32, #tpu.memory_space<smem>>
    %379 = vector.broadcast %378 : f32 to vector<64x8xf32>
    %380 = arith.mulf %379, %376 : vector<64x8xf32>
    %381 = arith.addf %369, %380 : vector<64x8xf32>
    %382 = arith.index_cast %arg1 : i32 to index
    %c47 = arith.constant 47 : index
    %383 = memref.load %arg3[%382, %c47] : memref<2x64xf32, #tpu.memory_space<smem>>
    %384 = vector.broadcast %383 : f32 to vector<64x8xf32>
    %385 = arith.mulf %384, %376 : vector<64x8xf32>
    %386 = arith.addf %374, %385 : vector<64x8xf32>
    %c0_174 = arith.constant 0 : index
    %c0_175 = arith.constant 0 : index
    %c6_176 = arith.constant 6 : index
    %c0_177 = arith.constant 0 : index
    %c0_178 = arith.constant 0 : index
    %387 = vector.load %arg4[%c0_174, %c0_175, %c6_176, %c0_177, %c0_178] : memref<1x1x8x64x8xf32, #tpu.memory_space<vmem>>, vector<1x1x1x64x8xf32>
    %388 = vector.shape_cast %387 : vector<1x1x1x64x8xf32> to vector<64x8xf32>
    %389 = arith.index_cast %arg1 : i32 to index
    %c54 = arith.constant 54 : index
    %390 = memref.load %arg3[%389, %c54] : memref<2x64xf32, #tpu.memory_space<smem>>
    %391 = vector.broadcast %390 : f32 to vector<64x8xf32>
    %392 = arith.mulf %391, %388 : vector<64x8xf32>
    %393 = arith.addf %381, %392 : vector<64x8xf32>
    %394 = arith.index_cast %arg1 : i32 to index
    %c55 = arith.constant 55 : index
    %395 = memref.load %arg3[%394, %c55] : memref<2x64xf32, #tpu.memory_space<smem>>
    %396 = vector.broadcast %395 : f32 to vector<64x8xf32>
    %397 = arith.mulf %396, %388 : vector<64x8xf32>
    %398 = arith.addf %386, %397 : vector<64x8xf32>
    %c0_179 = arith.constant 0 : index
    %c0_180 = arith.constant 0 : index
    %c7_181 = arith.constant 7 : index
    %c0_182 = arith.constant 0 : index
    %c0_183 = arith.constant 0 : index
    %399 = vector.load %arg4[%c0_179, %c0_180, %c7_181, %c0_182, %c0_183] : memref<1x1x8x64x8xf32, #tpu.memory_space<vmem>>, vector<1x1x1x64x8xf32>
    %400 = vector.shape_cast %399 : vector<1x1x1x64x8xf32> to vector<64x8xf32>
    %401 = arith.index_cast %arg1 : i32 to index
    %c62 = arith.constant 62 : index
    %402 = memref.load %arg3[%401, %c62] : memref<2x64xf32, #tpu.memory_space<smem>>
    %403 = vector.broadcast %402 : f32 to vector<64x8xf32>
    %404 = arith.mulf %403, %400 : vector<64x8xf32>
    %405 = arith.addf %393, %404 : vector<64x8xf32>
    %406 = arith.index_cast %arg1 : i32 to index
    %c63 = arith.constant 63 : index
    %407 = memref.load %arg3[%406, %c63] : memref<2x64xf32, #tpu.memory_space<smem>>
    %408 = vector.broadcast %407 : f32 to vector<64x8xf32>
    %409 = arith.mulf %408, %400 : vector<64x8xf32>
    %410 = arith.addf %398, %409 : vector<64x8xf32>
    %cst_184 = arith.constant dense<0.000000e+00> : vector<64x16xf32>
    %411 = tpu.matmul %405, %6, %cst_184 {dimension_numbers = #tpu.dot_dimension_numbers<[1], [0], [0], [1], [0, 0, 1, 1], [], []>} : vector<64x8xf32>, vector<8x16xf32>, vector<64x16xf32> -> vector<64x16xf32>
    %cst_185 = arith.constant dense<0.000000e+00> : vector<64x16xf32>
    %412 = tpu.matmul %410, %13, %cst_185 {dimension_numbers = #tpu.dot_dimension_numbers<[1], [0], [0], [1], [0, 0, 1, 1], [], []>} : vector<64x8xf32>, vector<8x16xf32>, vector<64x16xf32> -> vector<64x16xf32>
    %413 = arith.addf %411, %412 : vector<64x16xf32>
    %414 = vector.shape_cast %413 : vector<64x16xf32> to vector<8x8x16xf32>
    %c0_186 = arith.constant 0 : index
    %c0_187 = arith.constant 0 : index
    %c0_188 = arith.constant 0 : index
    %c1_189 = arith.constant 1 : index
    %c0_190 = arith.constant 0 : index
    %c16_191 = arith.constant 16 : index
    %415 = vector.load %arg5[%c0_186, %c0_187, %c0_188, %c1_189, %c0_190, %c16_191] : memref<1x1x8x2x8x32xf32, #tpu.memory_space<vmem>>, vector<1x1x8x1x8x16xf32>
    %416 = vector.shape_cast %415 : vector<1x1x8x1x8x16xf32> to vector<8x8x16xf32>
    %417 = vector.shape_cast %414 : vector<8x8x16xf32> to vector<1x1x8x1x8x16xf32>
    tpu.vector_store %arg5[%c0_186, %c0_187, %c0_188, %c1_189, %c0_190, %c16_191], %417 {strides = array<i32>} : memref<1x1x8x2x8x32xf32, #tpu.memory_space<vmem>>, vector<1x1x8x1x8x16xf32>,
    return
  }
  func.func @transform_0(%arg0: i32, %arg1: i32, %arg2: i32) -> (i32, i32) {
    %c0_i32 = arith.constant 0 : i32
    %c0_i32_0 = arith.constant 0 : i32
    %c0_i32_1 = arith.constant 0 : i32
    return %c0_i32, %c0_i32_0 : i32, i32
  }
  func.func @transform_1(%arg0: i32, %arg1: i32, %arg2: i32) -> (i32, i32, i32, i32, i32) {
    %c0_i32 = arith.constant 0 : i32
    %c0_i32_0 = arith.constant 0 : i32
    %c0_i32_1 = arith.constant 0 : i32
    return %arg0, %arg1, %c0_i32, %arg2, %c0_i32_0 : i32, i32, i32, i32, i32
  }
  func.func @transform_2(%arg0: i32, %arg1: i32, %arg2: i32) -> (i32, i32, i32, i32, i32, i32) {
    %c0_i32 = arith.constant 0 : i32
    %c0_i32_0 = arith.constant 0 : i32
    %c0_i32_1 = arith.constant 0 : i32
    %c0_i32_2 = arith.constant 0 : i32
    return %arg0, %arg1, %arg2, %c0_i32, %c0_i32_0, %c0_i32_1 : i32, i32, i32, i32, i32, i32
  }
}

</mosaic_0001>

<bundles_post_ra>
// kernel: _lambda_.1
= control target key start
LH: loop header
LB: loop body
LE: loop exit
PB: predicated region body
PF: predicated region fallthrough
CT: control target
= control target key end

     0   :  { %7 = vsyncpa [#allocation3], 0  ;;  %s3607_s9 = smov 0   ;;  %s3609_s10 = smov 0   ;;  %s5752_s0 = inlined_call_operand.vmem [shape: f32[2,64], index: 0, kind: input, shape index: {}]   ;;  %s5753_s1 = inlined_call_operand.vmem [shape: f32[2,2,8,64,8], index: 1, kind: input, shape index: {}]   ;;  %s5754_s2 = inlined_call_operand.vmem [shape: f32[2,2,8,2,8,32], index: 2, kind: output, shape index: {}]  }
   0x1   :  { %s3611_s11 = smov 0   ;;  %s3613_s12 = smov 0  }
   0x2   :  { %s3615_s13 = smov 0  }
   0x3 LB: > { %s2922_s14 = sadd.s32 4294967295, %s3587_s13   ;;  %s28_s15 = sadd.s32 1, %s3579_s11  ;;  %s3587_s13 = sphi %s3615_s13, %s13_s13   ;;  %s3583_s12 = sphi %s3613_s12, %s6268_s12   ;;  %s3579_s11 = sphi %s3611_s11, %s6267_s11   ;;  %s3575_s10 = sphi %s3609_s10, %s6266_s10   ;;  %s3571_s9 = sphi %s3607_s9, %s6265_s9  }
   0x4   : > { %p30_p0 = scmp.ge.s32.totalorder %s28_s15, 2  ;;  %s32_s16 = sadd.s32 1, %s3583_s12 }
   0x5   : > { %p2924_p1 = scmp.ge.s32.totalorder %s3587_s13, 1  ;;  %p118_p2 = scmp.lt.s32.totalorder %s3587_s13, 5 }
   0x6   : > { %s6270_s15 = smov (%p30_p0, %s28_s15), 0  ;;  %s6272_s16 = smov (!%p30_p0, %s32_s16), %s3583_s12 }
   0x7   : > { %p3640_p3 = pnand %p2924_p1, %p118_p2  ;;  %p34_p4 = scmp.ge.s32.totalorder %s6272_s16, 2 }
   0x8   : > { %p3644_p5 = scmp.eq.s32.totalorder %s2922_s14, 0  ;;  %s131_s21 = sshll.u32 %s5752_s0, 4  ;;  %s132_s21 = int_to_ptr.vmem [resolvable:$true] %s131_s21 }
   0x9   : > { %p3472_p6 = pneg %p3640_p3  ;;  %s6274_s16 = smov (%p34_p4, %s6272_s16), 0 }
   0xa   : > { %s3530_s22 = scalar_lea.vmem %s132_s21, 32  ;;  %p3538_p12 = scmp.lt.s32.totalorder %s132_s21, %s132_s21 }
   0xb   : > { %p3473_p7 = pnand %p3644_p5, %p3472_p6  ;;  %p3531_p8 = scmp.ne.s32.totalorder %s132_s21, %s3530_s22 }
   0xc   : > { %p3539_p13 = scmp.lt.s32.totalorder %s3530_s22, %s3530_s22 }
   0xd   : > { %p3532_p9 = pneg %p3473_p7 }
   0xe   : > { %p3540_p0 = por %p3539_p13, %p3538_p12 }
   0xf   : > { %p3533_p10 = pnand %p3532_p9, %p3531_p8 }
  0x11   : > { %p3534_p11 = pneg %p3533_p10 }
  0x13   : > { %p3541_p1 = pnand %p3540_p0, %p3534_p11 }
  0x15   : > { %3544 = shalt.err (!%p3541_p1)
}
  0x16   : > { %s3589_s23 = smov [#allocation2]   ;;  %161 = sbr.rel (%p3640_p3) target bundleno = 530 (0x212), region = 28 }
  0x17   : > { %3475 = dma.vmem_to_smem (!%p3473_p7), %s132_s21, 32, %s3589_s23, [#allocation3]  }
  0x1d   : > { %3566 = dma.done.wait (%p3644_p5), [#allocation3], 32  }
  0x1e   : > { %3568 = vsyncadd (%p3644_p5), [#allocation3], 4294967264 }
  0x1f   : > { %167 = sfence }
  0x20   : > { %v230_v0 = vlaneseq  ;;  %p202_p2 = scmp.lt.s32.totalorder %s3575_s10, 1  ;;  %p204_p4 = scmp.lt.s32.totalorder %s3571_s9, 1  ;;  %v5959_v5 = vmov 0  ;;  %v5962_v6 = vmov 0  ;;  %v5755_v7 = vmov 1.0  }
  0x21   : > { %s3666_s24 = sshll.u32 %s3571_s9, 7  ;;  %vm601_vm2 = vcmask 64512   ;;  %vm860_vm3 = vcmask 130048   ;;  %vm1511_vm4 = vcmask 261248  }
  0x22   : > { %v233_v1 = vshrl.u32 %v230_v0, 7  ;;  %s6276_s10 = smov (!%p202_p2, %s3575_s10), 1  ;;  %s6278_s9 = smov (!%p204_p4, %s3571_s9), 1  ;;  %v231_v2 = vand.u32 127, %v230_v0 }
  0x23   : > { %s2930_s25 = sshll.u32 %s6276_s10, 7  ;;  %s877_s26 = sadd.s32 2, %s3666_s24 }
  0x24   : > { %v234_v3 = vmul.u32 2, %v233_v1  ;;  %s2929_s27 = sshll.u32 %s6278_s9, 6  ;;  %s878_s28 = sld [smem:[#allocation2 + %s877_s26]] }
  0x25   : > { %s211_s29 = sadd.s32 %s2930_s25, %s2929_s27  ;;  %s888_s30 = sadd.s32 3, %s3666_s24 }
  0x26   : > { %v238_v4 = vadd.s32 1, %v234_v3  ;;  %s2931_s3 = sshll.u32 %s211_s29, 3  ;;  %s889_s4 = sld [smem:[#allocation2 + %s888_s30]]  ;;  %vm3688_vm1 = vcmp.eq.s32.totalorder %v231_v2, %v234_v3 }
  0x27   : > { %s3685_s7 = scalar_lea.vmem %s5753_s1, %s2931_s3  ;;  %s907_s8 = sadd.s32 10, %s3666_s24  ;;  %v5963_v6 = vsel %vm3688_vm1, 4294967295, %v5962_v6 }
  0x28   : > { %vm3678_vm0 = vcmp.eq.s32.totalorder %v231_v2, %v238_v4  ;;  %5964 = vst [vmem:[#allocation6_spill] sm:$0xff] %v5963_v6  ;;  %s908_s14 = sld [smem:[#allocation2 + %s907_s8]]  ;;  %s926_s17 = sadd.s32 11, %s3666_s24  ;;  %v3718_v9 = vld [vmem:[%s3685_s7] sm:$0xff]  ;;  %v3724_v10 = vld [vmem:[%s3685_s7 + $0x8] sm:$0xff]  ;;  %v3747_v16 = vld [vmem:[%s3685_s7 + $0x10] sm:$0xff] }
  0x29   : > { %v5960_v5 = vsel %vm3678_vm0, 4294967295, %v5959_v5  ;;  %3352 = vmatprep.subr.msk.mxu1 %vm3678_vm0, %v5755_v7  ;;  %3324 = vmatprep.subr.msk.mxu0 %vm3678_vm0, %v5755_v7  ;;  %s927_s18 = sld [smem:[#allocation2 + %s926_s17]]  ;;  %s953_s19 = sadd.s32 18, %s3666_s24  ;;  %5965 = vst [vmem:[#allocation7_spill] sm:$0xff] %v3718_v9  ;;  %5966 = vst [vmem:[#allocation8_spill] sm:$0xff] %v3724_v10  ;;  %v3736_v13 = vld [vmem:[%s3685_s7 + $0x40] sm:$0xff] }
  0x2a   : > { %5961 = vst [vmem:[#allocation5_spill] sm:$0xff] %v5960_v5  ;;  %3353 = vmatpush3.msk.msra.mxu1 %vm3678_vm0, %v5755_v7  ;;  %3325 = vmatpush3.msk.msra.mxu0 %vm3678_vm0, %v5755_v7  ;;  %v3706_v8 = vstv %s878_s28  ;;  %s3708_s20 = sld [smem:[#allocation2 + %s953_s19]]  ;;  %s972_s21 = sadd.s32 19, %s3666_s24  ;;  %5967 = vst [vmem:[#allocation9_spill] sm:$0xff] %v3736_v13  ;;  %v3744_v15 = vld [vmem:[%s3685_s7 + $0x48] sm:$0xff]  ;;  %v3763_v21 = vld [vmem:[%s3685_s7 + $0x50] sm:$0xff] }
  0x2b   : > { %3366 = vmatprep.subr.msk.mxu1 %vm3688_vm1, %v5755_v7  ;;  %3338 = vmatprep.subr.msk.mxu0 %vm3688_vm1, %v5755_v7  ;;  %s3720_s22 = sld [smem:[#allocation2 + %s972_s21]]  ;;  %s999_s23 = sadd.s32 26, %s3666_s24  ;;  %v3733_v12 = vmul.f32 %v3706_v8, %v3718_v9  ;;  %v881_v14 = vmul.f32 %v3706_v8, %v3724_v10  ;;  %5968 = vst [vmem:[#allocation10_spill] sm:$0xff] %v3744_v15  ;;  %5969 = vst [vmem:[#allocation11_spill] sm:$0xff] %v3747_v16  ;;  %v3772_v24 = vld [vmem:[%s3685_s7 + $0x80] sm:$0xff]  ;;  %v3794_v30 = vld [vmem:[%s3685_s7 + $0x88] sm:$0xff] }
  0x2c   : > { %v3726_v11 = vstv %s889_s4  ;;  %s3728_s25 = sld [smem:[#allocation2 + %s999_s23]]  ;;  %s1018_s26 = sadd.s32 27, %s3666_s24  ;;  %5970 = vst [vmem:[#allocation12_spill] sm:$0xff] %v3763_v21  ;;  %5971 = vst [vmem:[#allocation13_spill] sm:$0xff] %v3772_v24  ;;  %v3781_v26 = vmul.f32 %v3706_v8, %v3747_v16  ;;  %v3804_v33 = vld [vmem:[%s3685_s7 + $0xc0] sm:$0xff]  ;;  %v3824_v41 = vld [vmem:[%s3685_s7 + $0xc8] sm:$0xff] }
  0x2d   : > { %s3738_s27 = sld [smem:[#allocation2 + %s1018_s26]]  ;;  %s1045_s28 = sadd.s32 34, %s3666_s24  ;;  %v891_v17 = vmul.f32 %v3726_v11, %v3718_v9  ;;  %v892_v19 = vmul.f32 %v3726_v11, %v3724_v10  ;;  %v3760_v20 = vmul.f32 %v3726_v11, %v3747_v16  ;;  %5972 = vst [vmem:[#allocation14_spill] sm:$0xff] %v3794_v30  ;;  %5973 = vst [vmem:[#allocation15_spill] sm:$0xff] %v3804_v33  ;;  %v3834_v44 = vld [vmem:[%s3685_s7 + $0x100] sm:$0xff]  ;;  %v3864_v56 = vld [vmem:[%s3685_s7 + $0x108] sm:$0xff] }
  0x2e   : > { %v3751_v18 = vstv %s908_s14  ;;  %s3753_s29 = sld [smem:[#allocation2 + %s1045_s28]]  ;;  %s1064_s30 = sadd.s32 35, %s3666_s24  ;;  %5974 = vst [vmem:[#allocation16_spill] sm:$0xff] %v3824_v41  ;;  %5975 = vst [vmem:[#allocation17_spill] sm:$0xff] %v3834_v44  ;;  %v3859_v53 = vld [vmem:[%s3685_s7 + $0x140] sm:$0xff]  ;;  %v3952_v7 = vld [vmem:[%s3685_s7 + $0x18] sm:$0xff] }
  0x2f   : > { %v3767_v22 = vmul.f32 %v3736_v13, %v3751_v18  ;;  %v3769_v23 = vstv %s927_s18  ;;  %s3774_s3 = sld [smem:[#allocation2 + %s1064_s30]]  ;;  %s1091_s4 = sadd.s32 42, %s3666_s24  ;;  %v911_v25 = vmul.f32 %v3744_v15, %v3751_v18  ;;  %v3798_v31 = vmul.f32 %v3763_v21, %v3751_v18  ;;  %5976 = vst [vmem:[#allocation18_spill] sm:$0xff] %v3859_v53  ;;  %5977 = vst [vmem:[#allocation19_spill] sm:$0xff] %v3864_v56  ;;  %v3879_v63 = vld [vmem:[%s3685_s7 + $0x180] sm:$0xff]  ;;  %v3959_v16 = vld [vmem:[%s3685_s7 + $0x1d0] sm:$0xff] }
  0x30   : > { %v929_v27 = vmul.f32 %v3736_v13, %v3769_v23  ;;  %v3786_v28 = vstv %s3708_s20  ;;  %s3788_s5 = sld [smem:[#allocation2 + %s1091_s4]]  ;;  %s1110_s6 = sadd.s32 43, %s3666_s24  ;;  %v930_v29 = vmul.f32 %v3744_v15, %v3769_v23  ;;  %v3813_v36 = vmul.f32 %v3763_v21, %v3769_v23  ;;  %5978 = vst [vmem:[#allocation20_spill] sm:$0xff] %v3879_v63  ;;  %5986 = vst [vmem:[#allocation28_spill] sm:$0xff] %v3952_v7  ;;  %v3995_v15 = vld [vmem:[%s3685_s7 + $0x20] sm:$0xff] }
  0x31   : > { %v3801_v32 = vstv %s3720_s22  ;;  %s3806_s8 = sld [smem:[#allocation2 + %s1110_s6]]  ;;  %s1137_s14 = sadd.s32 50, %s3666_s24  ;;  %v919_v34 = vadd.f32 %v911_v25, %v881_v14  ;;  %v957_v35 = vmul.f32 %v3794_v30, %v3786_v28  ;;  %v3828_v42 = vmul.f32 %v3772_v24, %v3786_v28  ;;  %5993 = vst [vmem:[#allocation35_spill] sm:$0xff] %v3995_v15  ;;  %v4013_v10 = vld [vmem:[%s3685_s7 + $0xe0] sm:$0xff] }
  0x32   : > { %v937_v37 = vadd.f32 %v929_v27, %v891_v17  ;;  %v975_v38 = vmul.f32 %v3772_v24, %v3801_v32  ;;  %v3818_v39 = vstv %s3728_s25  ;;  %s3820_s17 = sld [smem:[#allocation2 + %s1137_s14]]  ;;  %s1156_s18 = sadd.s32 51, %s3666_s24  ;;  %v938_v40 = vadd.f32 %v930_v29, %v892_v19  ;;  %v3891_v17 = vld [vmem:[%s3685_s7 + $0x148] sm:$0xff]  ;;  %v3901_v27 = vld [vmem:[%s3685_s7 + $0x1c0] sm:$0xff]  ;;  %5997 = vst [vmem:[#allocation39_spill] sm:$0xff] %v4013_v10 }
  0x33   : > { %v3831_v43 = vstv %s3738_s27  ;;  %s3836_s19 = sld [smem:[#allocation2 + %s1156_s18]]  ;;  %s1183_s20 = sadd.s32 58, %s3666_s24  ;;  %v965_v45 = vadd.f32 %v957_v35, %v919_v34  ;;  %v976_v46 = vmul.f32 %v3794_v30, %v3801_v32  ;;  %v1003_v50 = vmul.f32 %v3824_v41, %v3818_v39  ;;  %5979 = vst [vmem:[#allocation21_spill] sm:$0xff] %v3891_v17  ;;  %5981 = vst [vmem:[#allocation23_spill] sm:$0xff] %v3901_v27  ;;  %v3906_v35 = vld [vmem:[%s3685_s7 + $0x188] sm:$0xff]  ;;  %v3992_v30 = vld [vmem:[%s3685_s7 + $0x198] sm:$0xff] }
  0x34   : > { %v983_v47 = vadd.f32 %v975_v38, %v937_v37  ;;  %v1021_v48 = vmul.f32 %v3804_v33, %v3831_v43  ;;  %v3844_v49 = vstv %s3753_s29  ;;  %s3846_s21 = sld [smem:[#allocation2 + %s1183_s20]]  ;;  %s1202_s22 = sadd.s32 59, %s3666_s24  ;;  %v3853_v51 = vmul.f32 %v3804_v33, %v3818_v39  ;;  %5982 = vst [vmem:[#allocation24_spill] sm:$0xff] %v3906_v35  ;;  %5992 = vst [vmem:[#allocation34_spill] sm:$0xff] %v3992_v30  ;;  %v4022_v24 = vld [vmem:[%s3685_s7 + $0x120] sm:$0xff] }
  0x35   : > { %v3856_v52 = vstv %s3774_s3  ;;  %s1203_s23 = sld [smem:[#allocation2 + %s1202_s22]]  ;;  %v984_v54 = vadd.f32 %v976_v46, %v938_v40  ;;  %v1022_v55 = vmul.f32 %v3824_v41, %v3831_v43  ;;  %v1011_v60 = vadd.f32 %v1003_v50, %v965_v45  ;;  %v3914_v46 = vld [vmem:[%s3685_s7 + $0x1c8] sm:$0xff]  ;;  %5998 = vst [vmem:[#allocation40_spill] sm:$0xff] %v4022_v24  ;;  %v4025_v13 = vld [vmem:[%s3685_s7 + $0x160] sm:$0xff]  ;;  %s2158_s25 = sadd.s32 7, %s3666_s24 }
  0x36   : > { %v1029_v57 = vadd.f32 %v1021_v48, %v983_v47  ;;  %v1067_v58 = vmul.f32 %v3834_v44, %v3856_v52  ;;  %v3869_v59 = vstv %s3788_s5  ;;  %v3873_v61 = vmul.f32 %v3834_v44, %v3844_v49  ;;  %5983 = vst [vmem:[#allocation25_spill] sm:$0xff] %v3914_v46  ;;  %5999 = vst [vmem:[#allocation41_spill] sm:$0xff] %v4025_v13  ;;  %s4237_s26 = sld [smem:[#allocation2 + %s2158_s25]]  ;;  %s2196_s27 = sadd.s32 15, %s3666_s24 }
  0x37   : > { %v3876_v62 = vstv %s3806_s8  ;;  %v1030_v0 = vadd.f32 %v1022_v55, %v984_v54  ;;  %v1049_v1 = vmul.f32 %v3864_v56, %v3844_v49  ;;  %v1068_v14 = vmul.f32 %v3864_v56, %v3856_v52  ;;  %v3925_v55 = vld [vmem:[%s3685_s7 + $0x90] sm:$0xff]  ;;  %v3982_v56 = vld [vmem:[%s3685_s7 + $0x158] sm:$0xff]  ;;  %s2242_s28 = sadd.s32 23, %s3666_s24  ;;  %s2288_s29 = sadd.s32 31, %s3666_s24 }
  0x38   : > { %v1075_v2 = vadd.f32 %v1067_v58, %v1029_v57  ;;  %v1113_v3 = vmul.f32 %v3859_v53, %v3876_v62  ;;  %v3886_v4 = vstv %s3820_s17  ;;  %v3895_v19 = vmul.f32 %v3859_v53, %v3869_v59  ;;  %v3928_v57 = vld [vmem:[%s3685_s7 + $0xd0] sm:$0xff]  ;;  %5990 = vst [vmem:[#allocation32_spill] sm:$0xff] %v3982_v56  ;;  %s4265_s30 = sld [smem:[#allocation2 + %s2196_s27]]  ;;  %s2334_s3 = sadd.s32 39, %s3666_s24 }
  0x39   : > { %v3898_v25 = vstv %s3836_s19  ;;  %v1057_v29 = vadd.f32 %v1049_v1, %v1011_v60  ;;  %v1095_v34 = vmul.f32 %v3891_v17, %v3869_v59  ;;  %v1076_v45 = vadd.f32 %v1068_v14, %v1030_v0  ;;  %s2380_s4 = sadd.s32 47, %s3666_s24  ;;  %s4283_s5 = sld [smem:[#allocation2 + %s2242_s28]] }
  0x3a   : > { %5980 = vst [vmem:[#allocation22_spill] sm:$0xff] %v3895_v19  ;;  %v1121_v37 = vadd.f32 %v1113_v3, %v1075_v2  ;;  %v1159_v38 = vmul.f32 %v3879_v63, %v3898_v25  ;;  %v3911_v40 = vstv %s3846_s21  ;;  %v3918_v47 = vmul.f32 %v3879_v63, %v3886_v4  ;;  %v3937_v2 = vld [vmem:[%s3685_s7 + $0x110] sm:$0xff]  ;;  %v3998_v63 = vld [vmem:[%s3685_s7 + $0x60] sm:$0xff]  ;;  %v4043_v19 = vld [vmem:[%s3685_s7 + $0x68] sm:$0xff]  ;;  %s4285_s6 = sld [smem:[#allocation2 + %s2288_s29]]  ;;  %s2426_s8 = sadd.s32 55, %s3666_s24 }
  0x3b   : > { %v3920_v48 = vstv %s1203_s23  ;;  %v1103_v50 = vadd.f32 %v1095_v34, %v1057_v29  ;;  %v1114_v54 = vmul.f32 %v3891_v17, %v3876_v62  ;;  %v1141_v0 = vmul.f32 %v3906_v35, %v3886_v4  ;;  %v3940_v3 = vld [vmem:[%s3685_s7 + $0x150] sm:$0xff]  ;;  %v3979_v17 = vld [vmem:[%s3685_s7 + $0x118] sm:$0xff]  ;;  %5994 = vst [vmem:[#allocation36_spill] sm:$0xff] %v3998_v63  ;;  %6002 = vst [vmem:[#allocation44_spill] sm:$0xff] %v4043_v19  ;;  %s2472_s14 = sadd.s32 63, %s3666_s24  ;;  %s4301_s17 = sld [smem:[#allocation2 + %s2334_s3]] }
  0x3c   : > { %5984 = vst [vmem:[#allocation26_spill] sm:$0xff] %v3918_v47  ;;  %v1167_v58 = vadd.f32 %v1159_v38, %v1121_v37  ;;  %v1205_v60 = vmul.f32 %v3901_v27, %v3920_v48  ;;  %v1160_v1 = vmul.f32 %v3906_v35, %v3898_v25  ;;  %5985 = vst [vmem:[#allocation27_spill] sm:$0xff] %v3940_v3  ;;  %v3949_v38 = vld [vmem:[%s3685_s7 + $0x190] sm:$0xff]  ;;  %v4040_v47 = vld [vmem:[%s3685_s7 + $0x28] sm:$0xff]  ;;  %s4303_s18 = sld [smem:[#allocation2 + %s2380_s4]]  ;;  %s2147_s21 = sadd.s32 6, %s3666_s24 }
  0x3d   : > { %v1122_v14 = vadd.f32 %v1114_v54, %v1076_v45  ;;  %v1187_v29 = vmul.f32 %v3914_v46, %v3911_v40  ;;  %v1206_v34 = vmul.f32 %v3914_v46, %v3920_v48  ;;  %v939_v37 = vadd.f32 %v3813_v36, %v3760_v20  ;;  %v3962_v46 = vld [vmem:[%s3685_s7 + $0x58] sm:$0xff]  ;;  %5989 = vst [vmem:[#allocation31_spill] sm:$0xff] %v3979_v17  ;;  %s4316_s19 = sld [smem:[#allocation2 + %s2426_s8]]  ;;  %s2177_s22 = sadd.s32 14, %s3666_s24 }
  0x3e   : > { %v1213_v21 = vadd.f32 %v1205_v60, %v1167_v58  ;;  %v1149_v35 = vadd.f32 %v1141_v0, %v1103_v50  ;;  %v977_v45 = vmul.f32 %v3925_v55, %v3801_v32  ;;  %v1023_v54 = vmul.f32 %v3928_v57, %v3831_v43  ;;  %v3965_v20 = vld [vmem:[%s3685_s7 + $0x98] sm:$0xff]  ;;  %6001 = vst [vmem:[#allocation43_spill] sm:$0xff] %v4040_v47  ;;  %s4318_s20 = sld [smem:[#allocation2 + %s2472_s14]]  ;;  %s2223_s23 = sadd.s32 22, %s3666_s24 }
  0x3f   : > { %v3969_v36 = vmul.f32 %v3901_v27, %v3911_v40  ;;  %v1168_v50 = vadd.f32 %v1160_v1, %v1122_v14  ;;  %v1069_v58 = vmul.f32 %v3937_v2, %v3856_v52  ;;  %v1115_v60 = vmul.f32 %v3940_v3, %v3876_v62  ;;  %v3976_v0 = vld [vmem:[%s3685_s7 + $0xd8] sm:$0xff]  ;;  %s4447_s25 = sld [smem:[#allocation2 + %s2147_s21]]  ;;  %s2315_s29 = sadd.s32 38, %s3666_s24 }
  0x40   : > { %5988 = vst [vmem:[#allocation30_spill] sm:$0xff] %v3976_v0  ;;  %3354 = vmatprep.mubr.msk.f32.mxu1 %vm601_vm2, %v1213_v21  ;;  %v3985_v41 = vadd.f32 %v1187_v29, %v1149_v35  ;;  %v985_v1 = vadd.f32 %v977_v45, %v939_v37  ;;  %v1161_v14 = vmul.f32 %v3949_v38, %v3898_v25  ;;  %v4007_v37 = vld [vmem:[%s3685_s7 + $0x1d8] sm:$0xff]  ;;  %v4010_v45 = vld [vmem:[%s3685_s7 + $0xa0] sm:$0xff]  ;;  %s4457_s27 = sld [smem:[#allocation2 + %s2177_s22]]  ;;  %s2407_s4 = sadd.s32 54, %s3666_s24 }
  0x41   : > { %5987 = vst [vmem:[#allocation29_spill] sm:$0xff] %v3969_v36  ;;  %v894_v27 = vmul.f32 %v3726_v11, %v3952_v7  ;;  %v1214_v53 = vadd.f32 %v1206_v34, %v1168_v50  ;;  %v1207_v21 = vmul.f32 %v3959_v16, %v3920_v48  ;;  %v932_v35 = vmul.f32 %v3962_v46, %v3769_v23  ;;  %v4037_v36 = vld [vmem:[%s3685_s7 + $0x1a0] sm:$0xff]  ;;  %s4459_s28 = sld [smem:[#allocation2 + %s2223_s23]]  ;;  %s328_s21 = sadd.s32 16, %s3666_s24 }
  0x42   : > { %5991 = vst [vmem:[#allocation33_spill] sm:$0xff] %v3985_v41  ;;  %v978_v29 = vmul.f32 %v3965_v20, %v3801_v32  ;;  %5995 = vst [vmem:[#allocation37_spill] sm:$0xff] %v4007_v37  ;;  %v1031_v44 = vadd.f32 %v1023_v54, %v985_v1  ;;  %v1024_v34 = vmul.f32 %v3976_v0, %v3831_v43  ;;  %s4495_s14 = sld [smem:[#allocation2 + %s2407_s4]]  ;;  %s422_s4 = sadd.s32 32, %s3666_s24 }
  0x43   : > { %5996 = vst [vmem:[#allocation38_spill] sm:$0xff] %v4010_v45  ;;  %v1070_v50 = vmul.f32 %v3979_v17, %v3856_v52  ;;  %v1116_v33 = vmul.f32 %v3982_v56, %v3876_v62  ;;  %3355 = vmatmul.mubr.msk.f32.vlgmr.msra.gmra.mrb[0].mxu1 %vm601_vm2, %v1214_v53  ;;  %v940_v9 = vadd.f32 %v932_v35, %v894_v27  ;;  %6000 = vst [vmem:[#allocation42_spill] sm:$0xff] %v4037_v36  ;;  %v6003_v53 = vmov 1.0   ;;  %v4060_v56 = vld [vmem:[%s3685_s7 + $0xa8] sm:$0xff]  ;;  %s4634_s22 = sld [smem:[#allocation2 + %s3666_s24]] }
  0x44   : > { %v4030_v54 = vmul.f32 %v3992_v30, %v3898_v25  ;;  %v895_v1 = vmul.f32 %v3726_v11, %v3995_v15  ;;  %v933_v41 = vmul.f32 %v3998_v63, %v3769_v23  ;;  %3367 = vmatpush3.msk.msra.mxu1 %vm3688_vm1, %v6003_v53  ;;  %v1077_v27 = vadd.f32 %v1069_v58, %v1031_v44  ;;  %v4057_v30 = vld [vmem:[%s3685_s7 + $0x1e0] sm:$0xff] }
  0x45   : > { %v4050_v35 = vmul.f32 %v4007_v37, %v3920_v48  ;;  %v979_v63 = vmul.f32 %v4010_v45, %v3801_v32  ;;  %v1025_v15 = vmul.f32 %v4013_v10, %v3831_v43  ;;  %6004 = vst [vmem:[#allocation45_spill] sm:$0xff] %v4057_v30  ;;  %6005 = vst [vmem:[#allocation46_spill] sm:$0xff] %v4060_v56  ;;  %v4067_v37 = vld [vmem:[%s3685_s7 + $0xe8] sm:$0xff]  ;;  %3408 = vmatprep.subr.msk.mxu1 %vm3678_vm0, %v6003_v53  ;;  %v4092_v53 = vld [vmem:[%s3685_s7 + $0x30] sm:$0xff] }
  0x46   : > { %v986_v17 = vadd.f32 %v978_v29, %v940_v9  ;;  %v941_v6 = vadd.f32 %v933_v41, %v895_v1  ;;  %v1071_v44 = vmul.f32 %v4022_v24, %v3856_v52  ;;  %v1117_v58 = vmul.f32 %v4025_v13, %v3876_v62  ;;  %6006 = vst [vmem:[#allocation47_spill] sm:$0xff] %v4067_v37  ;;  %v4070_v45 = vld [vmem:[%s3685_s7 + $0x128] sm:$0xff] }
  0x47   : > { %6007 = vst [vmem:[#allocation48_spill] sm:$0xff] %v4070_v45  ;;  %v1123_v10 = vadd.f32 %v1115_v60, %v1077_v27  ;;  %v1163_v9 = vmul.f32 %v4037_v36, %v3898_v25  ;;  %v896_v41 = vmul.f32 %v3726_v11, %v4040_v47  ;;  %v934_v29 = vmul.f32 %v4043_v19, %v3769_v23  ;;  %v4082_v1 = vld [vmem:[%s3685_s7 + $0x168] sm:$0xff]  ;;  %v4095_v47 = vld [vmem:[%s3685_s7 + $0x70] sm:$0xff] }
  0x48   : > { %6008 = vst [vmem:[#allocation49_spill] sm:$0xff] %v4082_v1  ;;  %v4085_v13 = vld [vmem:[%s3685_s7 + $0x1a8] sm:$0xff]  ;;  %v1032_v24 = vadd.f32 %v1024_v34, %v986_v17  ;;  %v987_v5 = vadd.f32 %v979_v63, %v941_v6  ;;  %v1209_v60 = vmul.f32 %v4057_v30, %v3920_v48  ;;  %v980_v27 = vmul.f32 %v4060_v56, %v3801_v32  ;;  %v4105_v34 = vld [vmem:[%s3685_s7 + $0xb0] sm:$0xff] }
  0x49   : > { %6009 = vst [vmem:[#allocation50_spill] sm:$0xff] %v4085_v13  ;;  %6010 = vst [vmem:[#allocation51_spill] sm:$0xff] %v4092_v53  ;;  %v1169_v36 = vadd.f32 %v1161_v14, %v1123_v10  ;;  %v942_v19 = vadd.f32 %v934_v29, %v896_v41  ;;  %v1026_v17 = vmul.f32 %v4067_v37, %v3831_v43  ;;  %v4102_v63 = vld [vmem:[%s3685_s7 + $0x1e8] sm:$0xff]  ;;  %v4112_v41 = vld [vmem:[%s3685_s7 + $0xf0] sm:$0xff] }
  0x4a   : > { %6011 = vst [vmem:[#allocation52_spill] sm:$0xff] %v4095_v47  ;;  %v1072_v6 = vmul.f32 %v4070_v45, %v3856_v52  ;;  %6012 = vst [vmem:[#allocation53_spill] sm:$0xff] %v4102_v63  ;;  %v1078_v30 = vadd.f32 %v1070_v50, %v1032_v24  ;;  %v1033_v56 = vadd.f32 %v1025_v15, %v987_v5  ;;  %v4115_v29 = vld [vmem:[%s3685_s7 + $0x130] sm:$0xff] }
  0x4b   : > { %6013 = vst [vmem:[#allocation54_spill] sm:$0xff] %v4105_v34  ;;  %v1118_v10 = vmul.f32 %v4082_v1, %v3876_v62  ;;  %v1164_v14 = vmul.f32 %v4085_v13, %v3898_v25  ;;  %6014 = vst [vmem:[#allocation55_spill] sm:$0xff] %v4112_v41  ;;  %v1215_v37 = vadd.f32 %v1207_v21, %v1169_v36  ;;  %v4122_v15 = vld [vmem:[%s3685_s7 + $0x170] sm:$0xff]  ;;  %v4132_v36 = vld [vmem:[%s3685_s7 + $0x38] sm:$0xff] }
  0x4c   : > { %6015 = vst [vmem:[#allocation56_spill] sm:$0xff] %v4115_v29  ;;  %v988_v45 = vadd.f32 %v980_v27, %v942_v19  ;;  %v897_v0 = vmul.f32 %v3726_v11, %v4092_v53  ;;  %v935_v5 = vmul.f32 %v4095_v47, %v3769_v23  ;;  %v4125_v24 = vld [vmem:[%s3685_s7 + $0x1b0] sm:$0xff]  ;;  %v1124_v50 = vadd.f32 %v1116_v33, %v1078_v30  ;;  %v4135_v21 = vld [vmem:[%s3685_s7 + $0x78] sm:$0xff] }
  0x4d   : > { %6016 = vst [vmem:[#allocation57_spill] sm:$0xff] %v4125_v24  ;;  %v1079_v13 = vadd.f32 %v1071_v44, %v1033_v56  ;;  %v1210_v1 = vmul.f32 %v4102_v63, %v3920_v48  ;;  %v981_v19 = vmul.f32 %v4105_v34, %v3801_v32  ;;  %6017 = vst [vmem:[#allocation58_spill] sm:$0xff] %v4135_v21  ;;  %3357 = vmatprep.mubr.msk.f32.mxu1 %vm601_vm2, %v1215_v37  ;;  %v4143_v56 = vld [vmem:[%s3685_s7 + $0x1f0] sm:$0xff]  ;;  %v4146_v44 = vld [vmem:[%s3685_s7 + $0xb8] sm:$0xff] }
  0x4e   : > { %v1034_v27 = vadd.f32 %v1026_v17, %v988_v45  ;;  %v943_v47 = vadd.f32 %v935_v5, %v897_v0  ;;  %v1027_v30 = vmul.f32 %v4112_v41, %v3831_v43  ;;  %v1073_v33 = vmul.f32 %v4115_v29, %v3856_v52  ;;  %v4154_v45 = vld [vmem:[%s3685_s7 + $0xf8] sm:$0xff] }
  0x4f   : > { %v1170_v63 = vadd.f32 %v4030_v54, %v1124_v50  ;;  %v1125_v34 = vadd.f32 %v1117_v58, %v1079_v13  ;;  %v1119_v37 = vmul.f32 %v4122_v15, %v3876_v62  ;;  %v1165_v0 = vmul.f32 %v4125_v24, %v3898_v25  ;;  %v4161_v53 = vld [vmem:[%s3685_s7 + $0x138] sm:$0xff] }
  0x50   : > { %v1080_v17 = vadd.f32 %v1072_v6, %v1034_v27  ;;  %v989_v5 = vadd.f32 %v981_v19, %v943_v47  ;;  %v898_v29 = vmul.f32 %v3726_v11, %v4132_v36  ;;  %v936_v41 = vmul.f32 %v4135_v21, %v3769_v23  ;;  %6018 = vst [vmem:[#allocation59_spill] sm:$0xff] %v4161_v53  ;;  %v4164_v13 = vld [vmem:[%s3685_s7 + $0x178] sm:$0xff] }
  0x51   : > { %6019 = vst [vmem:[#allocation60_spill] sm:$0xff] %v4164_v13  ;;  %v4167_v54 = vld [vmem:[%s3685_s7 + $0x1b8] sm:$0xff]  ;;  %v1216_v58 = vadd.f32 %v4050_v35, %v1170_v63  ;;  %v1171_v50 = vadd.f32 %v1163_v9, %v1125_v34  ;;  %v1211_v24 = vmul.f32 %v4143_v56, %v3920_v48  ;;  %v982_v47 = vmul.f32 %v4146_v44, %v3801_v32 }
  0x52   : > { %6020 = vst [vmem:[#allocation61_spill] sm:$0xff] %v4167_v54  ;;  %v1126_v6 = vadd.f32 %v1118_v10, %v1080_v17  ;;  %v1035_v11 = vadd.f32 %v1027_v30, %v989_v5  ;;  %v944_v19 = vadd.f32 %v936_v41, %v898_v29  ;;  %v1028_v23 = vmul.f32 %v4154_v45, %v3831_v43  ;;  %v4177_v27 = vld [vmem:[%s3685_s7 + $0x1f8] sm:$0xff] }
  0x53   : > { %6021 = vst [vmem:[#allocation62_spill] sm:$0xff] %v4177_v27  ;;  %3358 = vmatmul.mubr.msk.f32.gmra.mrb[2].mxu1 %vm601_vm2, %v1216_v58  ;;  %v1217_v21 = vadd.f32 %v1209_v60, %v1171_v50  ;;  %v1074_v35 = vmul.f32 %v4161_v53, %v3856_v52  ;;  %v1120_v9 = vmul.f32 %v4164_v13, %v3876_v62 }
  0x54   : > { %v1166_v32 = vmul.f32 %v4167_v54, %v3898_v25  ;;  %v1172_v63 = vadd.f32 %v1164_v14, %v1126_v6  ;;  %v1081_v34 = vadd.f32 %v1073_v33, %v1035_v11  ;;  %v990_v10 = vadd.f32 %v982_v47, %v944_v19  ;;  %v6022_v47 = vld [vmem:[#allocation30_spill] sm:$0xff]  ;;  %v6023_v19 = vld [vmem:[#allocation31_spill] sm:$0xff] }
  0x55   : > { %v918_v43 = vadd.f32 %v3767_v22, %v3733_v12  ;;  %3360 = vmatprep.mubr.msk.f32.mxu1 %vm601_vm2, %v1217_v21  ;;  %v1212_v60 = vmul.f32 %v4177_v27, %v3920_v48  ;;  %v920_v52 = vadd.f32 %v3798_v31, %v3781_v26  ;;  %v958_v62 = vmul.f32 %v3925_v55, %v3786_v28 }
  0x56   : > { %v1004_v25 = vmul.f32 %v3928_v57, %v3818_v39  ;;  %v1218_v14 = vadd.f32 %v1210_v1, %v1172_v63  ;;  %v1127_v41 = vadd.f32 %v1119_v37, %v1081_v34  ;;  %v1036_v29 = vadd.f32 %v1028_v23, %v990_v10  ;;  %v6025_v10 = vld [vmem:[#allocation22_spill] sm:$0xff] }
  0x57   : > { %v964_v30 = vadd.f32 %v3828_v42, %v918_v43  ;;  %v966_v12 = vadd.f32 %v958_v62, %v920_v52  ;;  %v1050_v22 = vmul.f32 %v3937_v2, %v3844_v49  ;;  %v1096_v48 = vmul.f32 %v3940_v3, %v3869_v59  ;;  %v6027_v43 = vld [vmem:[#allocation35_spill] sm:$0xff] }
  0x58   : > { %v1142_v26 = vmul.f32 %v3949_v38, %v3886_v4  ;;  %3361 = vmatmul.mubr.msk.f32.gmra.mrb[4].mxu1 %vm601_vm2, %v1218_v14  ;;  %v1173_v31 = vadd.f32 %v1165_v0, %v1127_v41  ;;  %v1082_v21 = vadd.f32 %v1074_v35, %v1036_v29  ;;  %v883_v42 = vmul.f32 %v3706_v8, %v3952_v7  ;;  %v6024_v35 = vld [vmem:[#allocation32_spill] sm:$0xff]  ;;  %v6029_v29 = vld [vmem:[#allocation38_spill] sm:$0xff] }
  0x59   : > { %v1010_v1 = vadd.f32 %v3853_v51, %v964_v30  ;;  %v1012_v33 = vadd.f32 %v1004_v25, %v966_v12  ;;  %v1188_v37 = vmul.f32 %v3959_v16, %v3911_v40  ;;  %v913_v17 = vmul.f32 %v3962_v46, %v3751_v18  ;;  %v6028_v14 = vld [vmem:[#allocation36_spill] sm:$0xff] }
  0x5a   : > { %v959_v5 = vmul.f32 %v3965_v20, %v3786_v28  ;;  %v1219_v58 = vadd.f32 %v1211_v24, %v1173_v31  ;;  %v1128_v50 = vadd.f32 %v1120_v9, %v1082_v21  ;;  %v1005_v51 = vmul.f32 %v6022_v47, %v3818_v39  ;;  %v6026_v9 = vld [vmem:[#allocation34_spill] sm:$0xff]  ;;  %v6031_v31 = vld [vmem:[#allocation37_spill] sm:$0xff] }
  0x5b   : > { %v1056_v0 = vadd.f32 %v3873_v61, %v1010_v1  ;;  %v1058_v6 = vadd.f32 %v1050_v22, %v1012_v33  ;;  %v921_v11 = vadd.f32 %v913_v17, %v883_v42  ;;  %v1051_v23 = vmul.f32 %v6023_v19, %v3844_v49  ;;  %v6030_v22 = vld [vmem:[#allocation26_spill] sm:$0xff]  ;;  %v6032_v1 = vld [vmem:[#allocation39_spill] sm:$0xff] }
  0x5c   : > { %v1097_v63 = vmul.f32 %v6024_v35, %v3869_v59  ;;  %3363 = vmatprep.mubr.msk.f32.mxu1 %vm601_vm2, %v1219_v58  ;;  %v1174_v34 = vadd.f32 %v1166_v32, %v1128_v50  ;;  %v1143_v61 = vmul.f32 %v6026_v9, %v3886_v4  ;;  %v884_v52 = vmul.f32 %v3706_v8, %v6027_v43 }
  0x5d   : > { %v1102_v24 = vadd.f32 %v6025_v10, %v1056_v0  ;;  %v1104_v62 = vadd.f32 %v1096_v48, %v1058_v6  ;;  %v967_v25 = vadd.f32 %v959_v5, %v921_v11  ;;  %v914_v41 = vmul.f32 %v6028_v14, %v3751_v18  ;;  %v6033_v5 = vld [vmem:[#allocation40_spill] sm:$0xff]  ;;  %v6035_v0 = vld [vmem:[#allocation41_spill] sm:$0xff]  ;;  %v6036_v11 = vld [vmem:[#allocation42_spill] sm:$0xff] }
  0x5e   : > { %v960_v30 = vmul.f32 %v6029_v29, %v3786_v28  ;;  %v1220_v12 = vadd.f32 %v1212_v60, %v1174_v34  ;;  %v1189_v21 = vmul.f32 %v6031_v31, %v3911_v40  ;;  %v1006_v42 = vmul.f32 %v6032_v1, %v3818_v39  ;;  %v6034_v60 = vld [vmem:[#allocation29_spill] sm:$0xff]  ;;  %v6037_v10 = vld [vmem:[#allocation43_spill] sm:$0xff] }
  0x5f   : > { %v1148_v32 = vadd.f32 %v6030_v22, %v1102_v24  ;;  %v1150_v48 = vadd.f32 %v1142_v26, %v1104_v62  ;;  %v1013_v33 = vadd.f32 %v1005_v51, %v967_v25  ;;  %v922_v17 = vadd.f32 %v914_v41, %v884_v52  ;;  %v6038_v62 = vld [vmem:[#allocation44_spill] sm:$0xff]  ;;  %v6039_v41 = vld [vmem:[#allocation45_spill] sm:$0xff]  ;;  %v6040_v22 = vld [vmem:[#allocation46_spill] sm:$0xff] }
  0x60   : > { %v1052_v58 = vmul.f32 %v6033_v5, %v3844_v49  ;;  %3364 = vmatmul.mubr.msk.f32.gmra.mrb[6].mxu1 %vm601_vm2, %v1220_v12  ;;  %v1098_v6 = vmul.f32 %v6035_v0, %v3869_v59  ;;  %v1144_v34 = vmul.f32 %v6036_v11, %v3886_v4  ;;  %v885_v26 = vmul.f32 %v3706_v8, %v6037_v10  ;;  %v6047_v10 = vld [vmem:[#allocation52_spill] sm:$0xff] }
  0x61   : > { %v1194_v50 = vadd.f32 %v6034_v60, %v1148_v32  ;;  %v1196_v51 = vadd.f32 %v1188_v37, %v1150_v48  ;;  %v1059_v24 = vadd.f32 %v1051_v23, %v1013_v33  ;;  %v968_v52 = vadd.f32 %v960_v30, %v922_v17  ;;  %v6041_v60 = vld [vmem:[#allocation47_spill] sm:$0xff]  ;;  %v6042_v37 = vld [vmem:[#allocation48_spill] sm:$0xff]  ;;  %v6043_v17 = vld [vmem:[#allocation49_spill] sm:$0xff] }
  0x62   : > { %v915_v25 = vmul.f32 %v6038_v62, %v3751_v18  ;;  %v1190_v12 = vmul.f32 %v6039_v41, %v3911_v40  ;;  %v961_v32 = vmul.f32 %v6040_v22, %v3786_v28  ;;  %v1007_v11 = vmul.f32 %v6041_v60, %v3818_v39  ;;  %v6044_v41 = vld [vmem:[#allocation33_spill] sm:$0xff]  ;;  %v6045_v22 = vld [vmem:[#allocation50_spill] sm:$0xff]  ;;  %v6046_v60 = vld [vmem:[#allocation51_spill] sm:$0xff] }
  0x63   : > { %3368 = vmatprep.mubr.msk.f32.mxu1 %vm601_vm2, %v1194_v50  ;;  %v1053_v23 = vmul.f32 %v6042_v37, %v3844_v49  ;;  %v1105_v30 = vadd.f32 %v1097_v63, %v1059_v24  ;;  %v1014_v48 = vadd.f32 %v1006_v42, %v968_v52  ;;  %v1099_v50 = vmul.f32 %v6043_v17, %v3869_v59  ;;  %v6048_v42 = vld [vmem:[#allocation54_spill] sm:$0xff] }
  0x64   : > { %v923_v33 = vadd.f32 %v915_v25, %v885_v26  ;;  %3369 = vmatmul.mubr.msk.f32.vlgmr.msra.gmra.mrb[0].mxu1 %vm601_vm2, %v6044_v41  ;;  %v1145_v62 = vmul.f32 %v6045_v22, %v3886_v4  ;;  %v886_v37 = vmul.f32 %v3706_v8, %v6046_v60  ;;  %v916_v63 = vmul.f32 %v6047_v10, %v3751_v18  ;;  %v6051_v10 = vld [vmem:[#allocation53_spill] sm:$0xff]  ;;  %v6055_v52 = vld [vmem:[#allocation58_spill] sm:$0xff] }
  0x65   : > { %v962_v26 = vmul.f32 %v6048_v42, %v3786_v28  ;;  %v6049_v24 = vmov 1.0   ;;  %3371 = vmatprep.mubr.msk.f32.mxu1 %vm601_vm2, %v1196_v51  ;;  %v1151_v25 = vadd.f32 %v1143_v61, %v1105_v30  ;;  %v1060_v41 = vadd.f32 %v1052_v58, %v1014_v48  ;;  %v6052_v42 = vld [vmem:[#allocation55_spill] sm:$0xff]  ;;  %v6054_v30 = vld [vmem:[#allocation56_spill] sm:$0xff] }
  0x66   : > { %3409 = vmatpush3.msk.msra.mxu1 %vm3678_vm0, %v6049_v24  ;;  %v969_v22 = vadd.f32 %v961_v32, %v923_v33  ;;  %v1191_v60 = vmul.f32 %v6051_v10, %v3911_v40  ;;  %v924_v17 = vadd.f32 %v916_v63, %v886_v37  ;;  %v1008_v0 = vmul.f32 %v6052_v42, %v3818_v39 }
  0x67   : > { %v4292_v5 = vstv %s4237_s26  ;;  %3422 = vmatprep.subr.msk.mxu1 %vm3688_vm1, %v6049_v24  ;;  %v1197_v61 = vadd.f32 %v1189_v21, %v1151_v25  ;;  %v1106_v58 = vadd.f32 %v1098_v6, %v1060_v41  ;;  %v1054_v48 = vmul.f32 %v6054_v30, %v3844_v49  ;;  %s2269_s26 = sadd.s32 30, %s3666_s24 }
  0x68   : > { %v1015_v32 = vadd.f32 %v1007_v11, %v969_v22  ;;  %v970_v37 = vadd.f32 %v962_v26, %v924_v17  ;;  %v1100_v33 = vmul.f32 %v4122_v15, %v3869_v59  ;;  %v887_v63 = vmul.f32 %v3706_v8, %v4132_v36  ;;  %v6056_v11 = vld [vmem:[#allocation57_spill] sm:$0xff]  ;;  %s4474_s3 = sld [smem:[#allocation2 + %s2269_s26]]  ;;  %s347_s26 = sadd.s32 17, %s3666_s24 }
  0x69   : > { %v917_v42 = vmul.f32 %v6055_v52, %v3751_v18  ;;  %3372 = vmatmul.mubr.msk.f32.gmra.mrb[2].mxu1 %vm601_vm2, %v1197_v61  ;;  %v1152_v21 = vadd.f32 %v1144_v34, %v1106_v58  ;;  %v1146_v22 = vmul.f32 %v6056_v11, %v3886_v4  ;;  %v963_v17 = vmul.f32 %v4146_v44, %v3786_v28  ;;  %v6057_v58 = vld [vmem:[#allocation7_spill] sm:$0xff] }
  0x6a   : > { %v1061_v6 = vadd.f32 %v1053_v23, %v1015_v32  ;;  %v1016_v8 = vadd.f32 %v1008_v0, %v970_v37  ;;  %v1192_v18 = vmul.f32 %v4143_v56, %v3911_v40  ;;  %v1009_v34 = vmul.f32 %v4154_v45, %v3818_v39 }
  0x6b   : > { %v925_v26 = vadd.f32 %v917_v42, %v887_v63  ;;  %v1198_v23 = vadd.f32 %v1190_v12, %v1152_v21  ;;  %v1055_v41 = vmul.f32 %v4161_v53, %v3844_v49  ;;  %v1101_v28 = vmul.f32 %v4164_v13, %v3869_v59  ;;  %v6058_v12 = vld [vmem:[#allocation9_spill] sm:$0xff] }
  0x6c   : > { %v1107_v25 = vadd.f32 %v1099_v50, %v1061_v6  ;;  %v1062_v61 = vadd.f32 %v1054_v48, %v1016_v8  ;;  %v2161_v32 = vmul.f32 %v4292_v5, %v6057_v58  ;;  %v4331_v37 = vstv %s4265_s30  ;;  %v6059_v63 = vld [vmem:[#allocation13_spill] sm:$0xff]  ;;  %v6060_v6 = vld [vmem:[#allocation15_spill] sm:$0xff]  ;;  %s2361_s30 = sadd.s32 46, %s3666_s24 }
  0x6d   : > { %v971_v0 = vadd.f32 %v963_v17, %v925_v26  ;;  %3374 = vmatprep.mubr.msk.f32.mxu1 %vm601_vm2, %v1198_v23  ;;  %v2199_v50 = vmul.f32 %v6058_v12, %v4331_v37  ;;  %v4337_v42 = vstv %s4283_s5  ;;  %v4340_v49 = vstv %s4285_s6  ;;  %s2453_s5 = sadd.s32 62, %s3666_s24  ;;  %s4487_s6 = sld [smem:[#allocation2 + %s2315_s29]] }
  0x6e   : > { %v1153_v39 = vadd.f32 %v1145_v62, %v1107_v25  ;;  %v1108_v59 = vadd.f32 %v1100_v33, %v1062_v61  ;;  %v2245_v21 = vmul.f32 %v6059_v63, %v4337_v42  ;;  %v2291_v17 = vmul.f32 %v6060_v6, %v4340_v49  ;;  %v6061_v33 = vld [vmem:[#allocation17_spill] sm:$0xff]  ;;  %s4489_s8 = sld [smem:[#allocation2 + %s2361_s30]]  ;;  %s375_s29 = sadd.s32 24, %s3666_s24 }
  0x6f   : > { %v1017_v48 = vadd.f32 %v1009_v34, %v971_v0  ;;  %v2207_v26 = vadd.f32 %v2199_v50, %v2161_v32  ;;  %v4347_v62 = vstv %s4301_s17  ;;  %v4350_v23 = vstv %s4303_s18  ;;  %s4504_s17 = sld [smem:[#allocation2 + %s2453_s5]]  ;;  %s261_s18 = sadd.s32 1, %s3666_s24 }
  0x70   : > { %v1199_v8 = vadd.f32 %v1191_v60, %v1153_v39  ;;  %v1154_v25 = vadd.f32 %v1146_v22, %v1108_v59  ;;  %v1147_v12 = vmul.f32 %v4167_v54, %v3886_v4  ;;  %v2337_v34 = vmul.f32 %v6061_v33, %v4347_v62  ;;  %v6062_v60 = vld [vmem:[#allocation8_spill] sm:$0xff]  ;;  %v6063_v4 = vld [vmem:[#allocation18_spill] sm:$0xff]  ;;  %s4636_s23 = sld [smem:[#allocation2 + %s261_s18]]  ;;  %s394_s30 = sadd.s32 25, %s3666_s24 }
  0x71   : > { %v1063_v58 = vadd.f32 %v1055_v41, %v1017_v48  ;;  %v2253_v61 = vadd.f32 %v2245_v21, %v2207_v26  ;;  %v4358_v0 = vstv %s4316_s19  ;;  %v4361_v6 = vstv %s4318_s20  ;;  %v6064_v48 = vld [vmem:[#allocation20_spill] sm:$0xff]  ;;  %v6065_v21 = vld [vmem:[#allocation10_spill] sm:$0xff]  ;;  %s281_s19 = sadd.s32 8, %s3666_s24  ;;  %s300_s20 = sadd.s32 9, %s3666_s24 }
  0x72   : > { %3375 = vmatmul.mubr.msk.f32.gmra.mrb[4].mxu1 %vm601_vm2, %v1199_v8  ;;  %v2162_v32 = vmul.f32 %v4292_v5, %v6062_v60  ;;  %v1200_v39 = vadd.f32 %v1192_v18, %v1154_v25  ;;  %v1193_v22 = vmul.f32 %v4177_v27, %v3911_v40  ;;  %v2383_v41 = vmul.f32 %v6063_v4, %v4350_v23  ;;  %v6066_v33 = vld [vmem:[#allocation14_spill] sm:$0xff]  ;;  %v6068_v40 = vld [vmem:[#allocation16_spill] sm:$0xff]  ;;  %v6070_v4 = vld [vmem:[#allocation21_spill] sm:$0xff]  ;;  %s441_s5 = sadd.s32 33, %s3666_s24  ;;  %s488_s18 = sadd.s32 41, %s3666_s24 }
  0x73   : > { %v1109_v50 = vadd.f32 %v1101_v28, %v1063_v58  ;;  %v2299_v59 = vadd.f32 %v2291_v17, %v2253_v61  ;;  %v2429_v8 = vmul.f32 %v6064_v48, %v4358_v0  ;;  %v2200_v26 = vmul.f32 %v6065_v21, %v4331_v37  ;;  %v6067_v28 = vld [vmem:[#allocation23_spill] sm:$0xff] }
  0x74   : > { %v2246_v54 = vmul.f32 %v6066_v33, %v4337_v42  ;;  %3377 = vmatprep.mubr.msk.f32.mxu1 %vm601_vm2, %v1200_v39  ;;  %v2475_v25 = vmul.f32 %v6067_v28, %v4361_v6  ;;  %v2292_v58 = vmul.f32 %v6068_v40, %v4340_v49  ;;  %v6069_v17 = vld [vmem:[#allocation19_spill] sm:$0xff]  ;;  %v2384_v21 = vmul.f32 %v6070_v4, %v4350_v23 }
  0x75   : > { %v1155_v18 = vadd.f32 %v1147_v12, %v1109_v50  ;;  %v2338_v61 = vmul.f32 %v6069_v17, %v4347_v62  ;;  %v2345_v60 = vadd.f32 %v2337_v34, %v2299_v59  ;;  %v2208_v48 = vadd.f32 %v2200_v26, %v2162_v32  ;;  %v6071_v27 = vld [vmem:[#allocation11_spill] sm:$0xff]  ;;  %v6072_v12 = vld [vmem:[#allocation24_spill] sm:$0xff]  ;;  %v6074_v34 = vld [vmem:[#allocation25_spill] sm:$0xff] }
  0x76   : > { %v2163_v33 = vmul.f32 %v4292_v5, %v6071_v27  ;;  %v2430_v39 = vmul.f32 %v6072_v12, %v4358_v0  ;;  %v6073_v50 = vld [vmem:[#allocation12_spill] sm:$0xff]  ;;  %v2247_v40 = vmul.f32 %v3925_v55, %v4337_v42  ;;  %v2476_v32 = vmul.f32 %v6074_v34, %v4361_v6 }
  0x77   : > { %v1201_v63 = vadd.f32 %v1193_v22, %v1155_v18  ;;  %v2201_v28 = vmul.f32 %v6073_v50, %v4331_v37  ;;  %v2391_v13 = vadd.f32 %v2383_v41, %v2345_v60  ;;  %v2254_v17 = vadd.f32 %v2246_v54, %v2208_v48 }
  0x78   : > { %v2293_v59 = vmul.f32 %v3928_v57, %v4340_v49  ;;  %v2339_v22 = vmul.f32 %v3937_v2, %v4347_v62  ;;  %v2385_v26 = vmul.f32 %v3940_v3, %v4350_v23  ;;  %v2164_v18 = vmul.f32 %v4292_v5, %v3952_v7 }
  0x79   : > { %3378 = vmatmul.mubr.msk.f32.gmra.mrb[6].mxu1 %vm601_vm2, %v1201_v63  ;;  %v2209_v27 = vadd.f32 %v2201_v28, %v2163_v33  ;;  %v2437_v41 = vadd.f32 %v2429_v8, %v2391_v13  ;;  %v2300_v54 = vadd.f32 %v2292_v58, %v2254_v17  ;;  %v2202_v48 = vmul.f32 %v3962_v46, %v4331_v37 }
  0x7a   : > { %v2248_v60 = vmul.f32 %v3965_v20, %v4337_v42  ;;  %v2431_v63 = vmul.f32 %v3949_v38, %v4358_v0  ;;  %v2477_v28 = vmul.f32 %v3959_v16, %v4361_v6  ;;  %v2294_v33 = vmul.f32 %v6022_v47, %v4340_v49 }
  0x7b   : > { %v2255_v50 = vadd.f32 %v2247_v40, %v2209_v27  ;;  %v2483_v3 = vadd.f32 %v2475_v25, %v2437_v41  ;;  %v2346_v7 = vadd.f32 %v2338_v61, %v2300_v54  ;;  %v2210_v13 = vadd.f32 %v2202_v48, %v2164_v18 }
  0x7c   : > { %v2340_v8 = vmul.f32 %v6023_v19, %v4347_v62  ;;  %v2386_v17 = vmul.f32 %v6024_v35, %v4350_v23  ;;  %v2165_v40 = vmul.f32 %v4292_v5, %v6027_v43  ;;  %v2203_v27 = vmul.f32 %v6028_v14, %v4331_v37 }
  0x7d   : > { %v2301_v58 = vadd.f32 %v2293_v59, %v2255_v50  ;;  %3410 = vmatprep.mubr.msk.f32.mxu1 %vm601_vm2, %v2483_v3  ;;  %v2392_v47 = vadd.f32 %v2384_v21, %v2346_v7  ;;  %v2256_v25 = vadd.f32 %v2248_v60, %v2210_v13  ;;  %v2432_v61 = vmul.f32 %v6026_v9, %v4358_v0  ;;  %v6075_v7 = vld [vmem:[#allocation40_spill] sm:$0xff]  ;;  %v6076_v60 = vld [vmem:[#allocation41_spill] sm:$0xff] }
  0x7e   : > { %v2249_v59 = vmul.f32 %v6029_v29, %v4337_v42  ;;  %v2478_v41 = vmul.f32 %v6031_v31, %v4361_v6  ;;  %v2211_v54 = vadd.f32 %v2203_v27, %v2165_v40  ;;  %v2295_v48 = vmul.f32 %v6032_v1, %v4340_v49  ;;  %v6078_v40 = vld [vmem:[#allocation44_spill] sm:$0xff] }
  0x7f   : > { %v2347_v18 = vadd.f32 %v2339_v22, %v2301_v58  ;;  %v2438_v50 = vadd.f32 %v2430_v39, %v2392_v47  ;;  %v2302_v3 = vadd.f32 %v2294_v33, %v2256_v25  ;;  %v2341_v21 = vmul.f32 %v6075_v7, %v4347_v62  ;;  %v6077_v22 = vld [vmem:[#allocation43_spill] sm:$0xff]  ;;  %v6079_v33 = vld [vmem:[#allocation42_spill] sm:$0xff] }
  0x80   : > { %v2387_v13 = vmul.f32 %v6076_v60, %v4350_v23  ;;  %v2257_v29 = vadd.f32 %v2249_v59, %v2211_v54  ;;  %v2166_v58 = vmul.f32 %v4292_v5, %v6077_v22  ;;  %v2204_v27 = vmul.f32 %v6078_v40, %v4331_v37  ;;  %v6080_v7 = vld [vmem:[#allocation46_spill] sm:$0xff]  ;;  %v6081_v59 = vld [vmem:[#allocation47_spill] sm:$0xff] }
  0x81   : > { %v2393_v14 = vadd.f32 %v2385_v26, %v2347_v18  ;;  %v2484_v47 = vadd.f32 %v2476_v32, %v2438_v50  ;;  %v2348_v39 = vadd.f32 %v2340_v8, %v2302_v3  ;;  %v2433_v25 = vmul.f32 %v6079_v33, %v4358_v0  ;;  %v6082_v8 = vld [vmem:[#allocation45_spill] sm:$0xff]  ;;  %v6083_v50 = vld [vmem:[#allocation48_spill] sm:$0xff] }
  0x82   : > { %v2250_v60 = vmul.f32 %v6080_v7, %v4337_v42  ;;  %v2303_v31 = vadd.f32 %v2295_v48, %v2257_v29  ;;  %v2212_v26 = vadd.f32 %v2204_v27, %v2166_v58  ;;  %v2296_v18 = vmul.f32 %v6081_v59, %v4340_v49  ;;  %v6085_v58 = vld [vmem:[#allocation51_spill] sm:$0xff] }
  0x83   : > { %v2439_v1 = vadd.f32 %v2431_v63, %v2393_v14  ;;  %3411 = vmatmul.mubr.msk.f32.vlgmr.msra.gmra.mrb[8].mxu1 %vm601_vm2, %v2484_v47  ;;  %v2394_v32 = vadd.f32 %v2386_v17, %v2348_v39  ;;  %v2479_v54 = vmul.f32 %v6082_v8, %v4361_v6  ;;  %v2342_v3 = vmul.f32 %v6083_v50, %v4347_v62  ;;  %v6084_v14 = vld [vmem:[#allocation49_spill] sm:$0xff]  ;;  %v6086_v39 = vld [vmem:[#allocation50_spill] sm:$0xff]  ;;  %v6087_v50 = vld [vmem:[#allocation52_spill] sm:$0xff] }
  0x84   : > { %v2388_v29 = vmul.f32 %v6084_v14, %v4350_v23  ;;  %3423 = vmatpush3.msk.msra.mxu1 %vm3688_vm1, %v6049_v24  ;;  %v2349_v17 = vadd.f32 %v2341_v21, %v2303_v31  ;;  %v2258_v48 = vadd.f32 %v2250_v60, %v2212_v26  ;;  %v2167_v27 = vmul.f32 %v4292_v5, %v6085_v58  ;;  %v6088_v8 = vld [vmem:[#allocation54_spill] sm:$0xff] }
  0x85   : > { %v2485_v63 = vadd.f32 %v2477_v28, %v2439_v1  ;;  %v2440_v47 = vadd.f32 %v2432_v61, %v2394_v32  ;;  %v2434_v14 = vmul.f32 %v6086_v39, %v4358_v0  ;;  %v2205_v59 = vmul.f32 %v6087_v50, %v4331_v37  ;;  %v6089_v61 = vld [vmem:[#allocation55_spill] sm:$0xff] }
  0x86   : > { %v2251_v51 = vmul.f32 %v6088_v8, %v4337_v42  ;;  %v2395_v31 = vadd.f32 %v2387_v13, %v2349_v17  ;;  %v2304_v1 = vadd.f32 %v2296_v18, %v2258_v48  ;;  %v2480_v28 = vmul.f32 %v6051_v10, %v4361_v6 }
  0x87   : > { %3413 = vmatprep.mubr.msk.f32.mxu1 %vm601_vm2, %v2485_v63  ;;  %v2297_v21 = vmul.f32 %v6089_v61, %v4340_v49  ;;  %v2486_v60 = vadd.f32 %v2478_v41, %v2440_v47  ;;  %v2213_v26 = vadd.f32 %v2205_v59, %v2167_v27  ;;  %v2343_v32 = vmul.f32 %v6054_v30, %v4347_v62 }
  0x88   : > { %v2389_v24 = vmul.f32 %v4122_v15, %v4350_v23  ;;  %v2441_v13 = vadd.f32 %v2433_v25, %v2395_v31  ;;  %v2350_v18 = vadd.f32 %v2342_v3, %v2304_v1  ;;  %v2168_v63 = vmul.f32 %v4292_v5, %v4132_v36  ;;  %v6090_v31 = vld [vmem:[#allocation60_spill] sm:$0xff] }
  0x89   : > { %v2206_v41 = vmul.f32 %v6055_v52, %v4331_v37  ;;  %3414 = vmatmul.mubr.msk.f32.gmra.mrb[10].mxu1 %vm601_vm2, %v2486_v60  ;;  %v2259_v59 = vadd.f32 %v2251_v51, %v2213_v26  ;;  %v2435_v17 = vmul.f32 %v6056_v11, %v4358_v0  ;;  %v2481_v25 = vmul.f32 %v4143_v56, %v4361_v6 }
  0x8a   : > { %v2252_v5 = vmul.f32 %v4146_v44, %v4337_v42  ;;  %v2487_v3 = vadd.f32 %v2479_v54, %v2441_v13  ;;  %v2396_v37 = vadd.f32 %v2388_v29, %v2350_v18  ;;  %v2298_v51 = vmul.f32 %v4154_v45, %v4340_v49  ;;  %v3521_v29 = vld [vmem:[%s3685_s7] sm:$0xff] }
  0x8b   : > { %v2214_v48 = vadd.f32 %v2206_v41, %v2168_v63  ;;  %v2305_v27 = vadd.f32 %v2297_v21, %v2259_v59  ;;  %v2344_v47 = vmul.f32 %v4161_v53, %v4347_v62  ;;  %v2390_v1 = vmul.f32 %v6090_v31, %v4350_v23  ;;  %v6091_v21 = vld [vmem:[#allocation9_spill] sm:$0xff] }
  0x8c   : > { %v4513_v60 = vstv %s4447_s25  ;;  %3416 = vmatprep.mubr.msk.f32.mxu1 %vm601_vm2, %v2487_v3  ;;  %v2442_v42 = vadd.f32 %v2434_v14, %v2396_v37  ;;  %v4519_v13 = vstv %s4457_s27  ;;  %v4524_v18 = vstv %s4459_s28  ;;  %v6092_v14 = vld [vmem:[#allocation13_spill] sm:$0xff]  ;;  %s4643_s25 = sld [smem:[#allocation2 + %s281_s19]] }
  0x8d   : > { %v2260_v54 = vadd.f32 %v2252_v5, %v2214_v48  ;;  %v2150_v26 = vmul.f32 %v3521_v29, %v4513_v60  ;;  %v2351_v49 = vadd.f32 %v2343_v32, %v2305_v27  ;;  %v2180_v62 = vmul.f32 %v6091_v21, %v4519_v13  ;;  %v6093_v5 = vld [vmem:[#allocation15_spill] sm:$0xff]  ;;  %s4650_s27 = sld [smem:[#allocation2 + %s300_s20]] }
  0x8e   : > { %v4527_v23 = vstv %s4474_s3  ;;  %v2488_v63 = vadd.f32 %v2480_v28, %v2442_v42  ;;  %v2226_v59 = vmul.f32 %v6092_v14, %v4524_v18  ;;  %v4534_v48 = vstv %s4487_s6  ;;  %v6094_v28 = vld [vmem:[#allocation61_spill] sm:$0xff]  ;;  %v6095_v42 = vld [vmem:[#allocation62_spill] sm:$0xff]  ;;  %s4652_s28 = sld [smem:[#allocation2 + %s328_s21]]  ;;  %s469_s6 = sadd.s32 40, %s3666_s24 }
  0x8f   : > { %v2306_v41 = vadd.f32 %v2298_v51, %v2260_v54  ;;  %v2272_v3 = vmul.f32 %v6093_v5, %v4527_v23  ;;  %v2397_v37 = vadd.f32 %v2389_v24, %v2351_v49  ;;  %v2188_v32 = vadd.f32 %v2180_v62, %v2150_v26  ;;  %v6096_v26 = vld [vmem:[#allocation17_spill] sm:$0xff]  ;;  %s4664_s3 = sld [smem:[#allocation2 + %s347_s26]]  ;;  %s516_s21 = sadd.s32 48, %s3666_s24 }
  0x90   : > { %v4537_v27 = vstv %s4489_s8  ;;  %3417 = vmatmul.mubr.msk.f32.gmra.mrb[12].mxu1 %vm601_vm2, %v2488_v63  ;;  %v2436_v51 = vmul.f32 %v6094_v28, %v4358_v0  ;;  %v2482_v54 = vmul.f32 %v6095_v42, %v4361_v6  ;;  %v4545_v21 = vstv %s4495_s14  ;;  %v6097_v63 = vld [vmem:[#allocation18_spill] sm:$0xff]  ;;  %s4678_s8 = sld [smem:[#allocation2 + %s375_s29]]  ;;  %s535_s26 = sadd.s32 49, %s3666_s24 }
  0x91   : > { %v2352_v29 = vadd.f32 %v2344_v47, %v2306_v41  ;;  %v2443_v14 = vadd.f32 %v2435_v17, %v2397_v37  ;;  %v2234_v24 = vadd.f32 %v2226_v59, %v2188_v32  ;;  %v2318_v49 = vmul.f32 %v6096_v26, %v4534_v48  ;;  %v3522_v41 = vld [vmem:[%s3685_s7 + $0x8] sm:$0xff]  ;;  %v6098_v17 = vld [vmem:[#allocation20_spill] sm:$0xff]  ;;  %s4680_s14 = sld [smem:[#allocation2 + %s394_s30]]  ;;  %s563_s30 = sadd.s32 56, %s3666_s24 }
  0x92   : > { %v4550_v62 = vstv %s4504_s17  ;;  %v2364_v47 = vmul.f32 %v6097_v63, %v4537_v27  ;;  %v2151_v0 = vmul.f32 %v3522_v41, %v4513_v60  ;;  %v3523_v28 = vld [vmem:[%s3685_s7 + $0x48] sm:$0xff]  ;;  %v2410_v59 = vmul.f32 %v6098_v17, %v4545_v21  ;;  %v6100_v41 = vld [vmem:[#allocation16_spill] sm:$0xff]  ;;  %s4686_s17 = sld [smem:[#allocation2 + %s422_s4]]  ;;  %s582_s4 = sadd.s32 57, %s3666_s24 }
  0x93   : > { %v2398_v5 = vadd.f32 %v2390_v1, %v2352_v29  ;;  %v2181_v6 = vmul.f32 %v3523_v28, %v4519_v13  ;;  %v2489_v42 = vadd.f32 %v2481_v25, %v2443_v14  ;;  %v2280_v31 = vadd.f32 %v2272_v3, %v2234_v24  ;;  %v3524_v37 = vld [vmem:[%s3685_s7 + $0x88] sm:$0xff]  ;;  %v6099_v29 = vld [vmem:[#allocation23_spill] sm:$0xff]  ;;  %s4696_s19 = sld [smem:[#allocation2 + %s441_s5]] }
  0x94   : > { %v2227_v32 = vmul.f32 %v3524_v37, %v4524_v18  ;;  %v2456_v26 = vmul.f32 %v6099_v29, %v4550_v62  ;;  %v2273_v53 = vmul.f32 %v6100_v41, %v4527_v23  ;;  %v6101_v25 = vld [vmem:[#allocation19_spill] sm:$0xff]  ;;  %v2365_v14 = vmul.f32 %v6070_v4, %v4537_v27  ;;  %s4698_s20 = sld [smem:[#allocation2 + %s469_s6]]  ;;  %s1669_s6 = sadd.s32 29, %s3666_s24 }
  0x95   : > { %v2444_v1 = vadd.f32 %v2436_v51, %v2398_v5  ;;  %v2189_v63 = vadd.f32 %v2181_v6, %v2151_v0  ;;  %3419 = vmatprep.mubr.msk.f32.mxu1 %vm601_vm2, %v2489_v42  ;;  %v2326_v28 = vadd.f32 %v2318_v49, %v2280_v31  ;;  %v2319_v3 = vmul.f32 %v6101_v25, %v4534_v48  ;;  %v3525_v24 = vld [vmem:[%s3685_s7 + $0x10] sm:$0xff]  ;;  %s4713_s29 = sld [smem:[#allocation2 + %s488_s18]]  ;;  %s1715_s18 = sadd.s32 37, %s3666_s24 }
  0x96   : > { %v2152_v17 = vmul.f32 %v3525_v24, %v4513_v60  ;;  %v3526_v37 = vld [vmem:[%s3685_s7 + $0x50] sm:$0xff]  ;;  %v2228_v6 = vmul.f32 %v3925_v55, %v4524_v18  ;;  %v2411_v31 = vmul.f32 %v6072_v12, %v4545_v21  ;;  %v2457_v42 = vmul.f32 %v6074_v34, %v4550_v62  ;;  %s4740_s5 = sld [smem:[#allocation2 + %s535_s26]]  ;;  %s1853_s26 = sadd.s32 61, %s3666_s24 }
  0x97   : > { %v2490_v51 = vadd.f32 %v2482_v54, %v2444_v1  ;;  %v2235_v5 = vadd.f32 %v2227_v32, %v2189_v63  ;;  %v2182_v0 = vmul.f32 %v3526_v37, %v4519_v13  ;;  %v2372_v29 = vadd.f32 %v2364_v47, %v2326_v28  ;;  %v6102_v1 = vld [vmem:[#allocation27_spill] sm:$0xff]  ;;  %v6103_v63 = vld [vmem:[#allocation28_spill] sm:$0xff] }
  0x98   : > { %v2274_v4 = vmul.f32 %v3928_v57, %v4527_v23  ;;  %v2320_v32 = vmul.f32 %v3937_v2, %v4534_v48  ;;  %v2366_v55 = vmul.f32 %v6102_v1, %v4537_v27  ;;  %v2153_v12 = vmul.f32 %v4513_v60, %v6103_v63 }
  0x99   : > { %3420 = vmatmul.mubr.msk.f32.gmra.mrb[14].mxu1 %vm601_vm2, %v2490_v51  ;;  %v2281_v54 = vadd.f32 %v2273_v53, %v2235_v5  ;;  %v2190_v49 = vadd.f32 %v2182_v0, %v2152_v17  ;;  %v2418_v47 = vadd.f32 %v2410_v59, %v2372_v29  ;;  %v2183_v34 = vmul.f32 %v3962_v46, %v4519_v13  ;;  %v6104_v59 = vld [vmem:[#allocation30_spill] sm:$0xff] }
  0x9a   : > { %v2229_v57 = vmul.f32 %v3965_v20, %v4524_v18  ;;  %v2412_v53 = vmul.f32 %v3949_v38, %v4545_v21  ;;  %v2458_v2 = vmul.f32 %v3959_v16, %v4550_v62  ;;  %v2275_v17 = vmul.f32 %v6104_v59, %v4527_v23 }
  0x9b   : > { %v2327_v41 = vadd.f32 %v2319_v3, %v2281_v54  ;;  %v2236_v28 = vadd.f32 %v2228_v6, %v2190_v49  ;;  %v2464_v25 = vadd.f32 %v2456_v26, %v2418_v47  ;;  %v2191_v24 = vadd.f32 %v2183_v34, %v2153_v12  ;;  %v6105_v3 = vld [vmem:[#allocation36_spill] sm:$0xff]  ;;  %v6107_v6 = vld [vmem:[#allocation37_spill] sm:$0xff] }
  0x9c   : > { %v2321_v46 = vmul.f32 %v6023_v19, %v4534_v48  ;;  %v2367_v20 = vmul.f32 %v6024_v35, %v4537_v27  ;;  %v2154_v38 = vmul.f32 %v4513_v60, %v6027_v43  ;;  %v2413_v26 = vmul.f32 %v6026_v9, %v4545_v21  ;;  %v6106_v19 = vld [vmem:[#allocation38_spill] sm:$0xff]  ;;  %v6108_v43 = vld [vmem:[#allocation39_spill] sm:$0xff]  ;;  %v6109_v49 = vld [vmem:[#allocation40_spill] sm:$0xff] }
  0x9d   : > { %v2373_v51 = vadd.f32 %v2365_v14, %v2327_v41  ;;  %v2282_v5 = vadd.f32 %v2274_v4, %v2236_v28  ;;  %3424 = vmatprep.mubr.msk.f32.mxu1 %vm601_vm2, %v2464_v25  ;;  %v2237_v16 = vadd.f32 %v2229_v57, %v2191_v24  ;;  %v2184_v37 = vmul.f32 %v6105_v3, %v4519_v13  ;;  %v6110_v47 = vld [vmem:[#allocation41_spill] sm:$0xff]  ;;  %v6112_v24 = vld [vmem:[#allocation47_spill] sm:$0xff] }
  0x9e   : > { %v2230_v14 = vmul.f32 %v6106_v19, %v4524_v18  ;;  %v2459_v29 = vmul.f32 %v6107_v6, %v4550_v62  ;;  %v2276_v4 = vmul.f32 %v6108_v43, %v4527_v23  ;;  %v2322_v1 = vmul.f32 %v6109_v49, %v4534_v48 }
  0x9f   : > { %v2419_v0 = vadd.f32 %v2411_v31, %v2373_v51  ;;  %v2328_v35 = vadd.f32 %v2320_v32, %v2282_v5  ;;  %v2283_v54 = vadd.f32 %v2275_v17, %v2237_v16  ;;  %v2192_v9 = vadd.f32 %v2184_v37, %v2154_v38  ;;  %v6113_v17 = vld [vmem:[#allocation48_spill] sm:$0xff] }
  0xa0   : > { %v2368_v63 = vmul.f32 %v6110_v47, %v4537_v27  ;;  %v2155_v32 = vmul.f32 %v4513_v60, %v6077_v22  ;;  %v2185_v34 = vmul.f32 %v6078_v40, %v4519_v13  ;;  %v2414_v28 = vmul.f32 %v6079_v33, %v4545_v21 }
  0xa1   : > { %v2465_v12 = vadd.f32 %v2457_v42, %v2419_v0  ;;  %v2374_v31 = vadd.f32 %v2366_v55, %v2328_v35  ;;  %v2329_v57 = vadd.f32 %v2321_v46, %v2283_v54  ;;  %v2238_v41 = vadd.f32 %v2230_v14, %v2192_v9  ;;  %v6111_v42 = vld [vmem:[#allocation45_spill] sm:$0xff] }
  0xa2   : > { %v2231_v25 = vmul.f32 %v6080_v7, %v4524_v18  ;;  %v2460_v40 = vmul.f32 %v6111_v42, %v4550_v62  ;;  %v2193_v55 = vadd.f32 %v2185_v34, %v2155_v32  ;;  %v2277_v59 = vmul.f32 %v6112_v24, %v4527_v23  ;;  %v6117_v9 = vld [vmem:[#allocation61_spill] sm:$0xff] }
  0xa3   : > { %3425 = vmatmul.mubr.msk.f32.vlgmr.msra.gmra.mrb[8].mxu1 %vm601_vm2, %v2465_v12  ;;  %v2420_v22 = vadd.f32 %v2412_v53, %v2374_v31  ;;  %v2375_v7 = vadd.f32 %v2367_v20, %v2329_v57  ;;  %v2284_v33 = vadd.f32 %v2276_v4, %v2238_v41  ;;  %v2323_v46 = vmul.f32 %v6113_v17, %v4534_v48  ;;  %v6114_v53 = vld [vmem:[#allocation49_spill] sm:$0xff]  ;;  %v6115_v4 = vld [vmem:[#allocation59_spill] sm:$0xff] }
  0xa4   : > { %v2369_v51 = vmul.f32 %v6114_v53, %v4537_v27  ;;  %v2239_v38 = vadd.f32 %v2231_v25, %v2193_v55  ;;  %v2156_v16 = vmul.f32 %v4513_v60, %v6085_v58  ;;  %v2186_v20 = vmul.f32 %v6087_v50, %v4519_v13  ;;  %v4720_v12 = vld [vmem:[%s3685_s7 + $0x40] sm:$0xff] }
  0xa5   : > { %v2466_v5 = vadd.f32 %v2458_v2, %v2420_v22  ;;  %v2421_v3 = vadd.f32 %v2413_v26, %v2375_v7  ;;  %v2330_v37 = vadd.f32 %v2322_v1, %v2284_v33  ;;  %v2415_v19 = vmul.f32 %v6086_v39, %v4545_v21  ;;  %v4711_v1 = vld [vmem:[%s3685_s7] sm:$0xff]  ;;  %6119 = vst [vmem:[#allocation32_spill] sm:$0xff] %v4720_v12 }
  0xa6   : > { %v2232_v14 = vmul.f32 %v6088_v8, %v4524_v18  ;;  %v2285_v58 = vadd.f32 %v2277_v59, %v2239_v38  ;;  %v2461_v2 = vmul.f32 %v6051_v10, %v4550_v62  ;;  %v2194_v50 = vadd.f32 %v2186_v20, %v2156_v16  ;;  %6118 = vst [vmem:[#allocation31_spill] sm:$0xff] %v4711_v1  ;;  %v4736_v34 = vld [vmem:[%s3685_s7 + $0x80] sm:$0xff] }
  0xa7   : > { %3427 = vmatprep.mubr.msk.f32.mxu1 %vm601_vm2, %v2466_v5  ;;  %v2278_v26 = vmul.f32 %v6089_v61, %v4527_v23  ;;  %v2467_v39 = vadd.f32 %v2459_v29, %v2421_v3  ;;  %v2376_v0 = vadd.f32 %v2368_v63, %v2330_v37  ;;  %v2324_v8 = vmul.f32 %v6054_v30, %v4534_v48  ;;  %v4759_v55 = vld [vmem:[%s3685_s7 + $0xc0] sm:$0xff] }
  0xa8   : > { %v2370_v35 = vmul.f32 %v4122_v15, %v4537_v27  ;;  %v2331_v10 = vadd.f32 %v2323_v46, %v2285_v58  ;;  %v2240_v6 = vadd.f32 %v2232_v14, %v2194_v50  ;;  %v2157_v61 = vmul.f32 %v4513_v60, %v4132_v36  ;;  %6121 = vst [vmem:[#allocation22_spill] sm:$0xff] %v4736_v34  ;;  %v4789_v37 = vld [vmem:[%s3685_s7 + $0x140] sm:$0xff] }
  0xa9   : > { %v2187_v29 = vmul.f32 %v6055_v52, %v4519_v13  ;;  %3428 = vmatmul.mubr.msk.f32.gmra.mrb[10].mxu1 %vm601_vm2, %v2467_v39  ;;  %v2422_v15 = vadd.f32 %v2414_v28, %v2376_v0  ;;  %v2416_v30 = vmul.f32 %v6056_v11, %v4545_v21  ;;  %v2462_v43 = vmul.f32 %v4143_v56, %v4550_v62  ;;  %v4801_v50 = vld [vmem:[%s3685_s7 + $0x180] sm:$0xff] }
  0xaa   : > { %v2233_v36 = vmul.f32 %v4146_v44, %v4524_v18  ;;  %v2377_v52 = vadd.f32 %v2369_v51, %v2331_v10  ;;  %v2286_v60 = vadd.f32 %v2278_v26, %v2240_v6  ;;  %v2279_v11 = vmul.f32 %v4154_v45, %v4527_v23  ;;  %v6116_v18 = vld [vmem:[#allocation60_spill] sm:$0xff]  ;;  %6122 = vst [vmem:[#allocation34_spill] sm:$0xff] %v4759_v55  ;;  %v4777_v51 = vld [vmem:[%s3685_s7 + $0x100] sm:$0xff] }
  0xab   : > { %v2195_v13 = vadd.f32 %v2187_v29, %v2157_v61  ;;  %v2468_v56 = vadd.f32 %v2460_v40, %v2422_v15  ;;  %v2325_v44 = vmul.f32 %v6115_v4, %v4534_v48  ;;  %v2371_v54 = vmul.f32 %v6116_v18, %v4537_v27  ;;  %v6120_v48 = vld [vmem:[#allocation62_spill] sm:$0xff]  ;;  %6123 = vst [vmem:[#allocation35_spill] sm:$0xff] %v4777_v51 }
  0xac   : > { %v2417_v49 = vmul.f32 %v6117_v9, %v4545_v21  ;;  %v2423_v45 = vadd.f32 %v2415_v19, %v2377_v52  ;;  %v2332_v23 = vadd.f32 %v2324_v8, %v2286_v60  ;;  %v4717_v63 = vstv %s4634_s22  ;;  %s4738_s22 = sld [smem:[#allocation2 + %s516_s21]]  ;;  %6124 = vst [vmem:[#allocation26_spill] sm:$0xff] %v4789_v37  ;;  %6125 = vst [vmem:[#allocation29_spill] sm:$0xff] %v4801_v50  ;;  %v4826_v15 = vld [vmem:[%s3685_s7 + $0x48] sm:$0xff]  ;;  %v4835_v52 = vld [vmem:[%s3685_s7 + $0x1c0] sm:$0xff]  ;;  %s1807_s21 = sadd.s32 53, %s3666_s24 }
  0xad   : > { %v2241_v47 = vadd.f32 %v2233_v36, %v2195_v13  ;;  %3430 = vmatprep.mubr.msk.f32.mxu1 %vm601_vm2, %v2468_v56  ;;  %v2463_v27 = vmul.f32 %v6120_v48, %v4550_v62  ;;  %v4727_v21 = vstv %s4636_s23  ;;  %v4730_v31 = vstv %s4643_s25  ;;  %s4744_s23 = sld [smem:[#allocation2 + %s563_s30]]  ;;  %6127 = vst [vmem:[#allocation53_spill] sm:$0xff] %v4826_v15  ;;  %6128 = vst [vmem:[#allocation56_spill] sm:$0xff] %v4835_v52  ;;  %v4841_v13 = vld [vmem:[%s3685_s7 + $0x88] sm:$0xff] }
  0xae   : > { %v4733_v32 = vstv %s4650_s27  ;;  %v2469_v57 = vadd.f32 %v2461_v2, %v2423_v45  ;;  %v2378_v41 = vadd.f32 %v2370_v35, %v2332_v23  ;;  %v264_v62 = vmul.f32 %v4727_v21, %v4711_v1  ;;  %s4761_s25 = sld [smem:[#allocation2 + %s582_s4]]  ;;  %v4815_v35 = vld [vmem:[%s3685_s7 + $0x8] sm:$0xff]  ;;  %6129 = vst [vmem:[#allocation58_spill] sm:$0xff] %v4841_v13  ;;  %s1539_s27 = sadd.s32 5, %s3666_s24 }
  0xaf   : > { %v2287_v28 = vadd.f32 %v2279_v11, %v2241_v47  ;;  %v4748_v25 = vmul.f32 %v4717_v63, %v4711_v1  ;;  %v303_v22 = vmul.f32 %v4720_v12, %v4733_v32  ;;  %v4753_v42 = vstv %s4652_s28  ;;  %6126 = vst [vmem:[#allocation33_spill] sm:$0xff] %v4815_v35  ;;  %v4851_v18 = vld [vmem:[%s3685_s7 + $0xc8] sm:$0xff]  ;;  %s1577_s28 = sadd.s32 13, %s3666_s24  ;;  %s5285_s4 = sld [smem:[#allocation2 + %s1807_s21]] }
  0xb0   : > { %v4756_v40 = vstv %s4664_s3  ;;  %3431 = vmatmul.mubr.msk.f32.gmra.mrb[12].mxu1 %vm601_vm2, %v2469_v57  ;;  %v2424_v24 = vadd.f32 %v2416_v30, %v2378_v41  ;;  %v4766_v7 = vmul.f32 %v4720_v12, %v4730_v31  ;;  %v4771_v46 = vstv %s4678_s8  ;;  %6130 = vst [vmem:[#allocation57_spill] sm:$0xff] %v4851_v18  ;;  %v4865_v23 = vld [vmem:[%s3685_s7 + $0x108] sm:$0xff]  ;;  %s1623_s3 = sadd.s32 21, %s3666_s24  ;;  %s5231_s8 = sld [smem:[#allocation2 + %s1539_s27]] }
  0xb1   : > { %v2333_v59 = vadd.f32 %v2325_v44, %v2287_v28  ;;  %v350_v33 = vmul.f32 %v4736_v34, %v4756_v40  ;;  %v311_v17 = vadd.f32 %v303_v22, %v264_v62  ;;  %v4774_v53 = vstv %s4680_s14  ;;  %6132 = vst [vmem:[#allocation8_spill] sm:$0xff] %v4865_v23  ;;  %v4876_v41 = vld [vmem:[%s3685_s7 + $0x148] sm:$0xff]  ;;  %s5233_s14 = sld [smem:[#allocation2 + %s1577_s28]]  ;;  %s1650_s27 = sadd.s32 28, %s3666_s24 }
  0xb2   : > { %v4780_v5 = vstv %s4686_s17  ;;  %v2470_v38 = vadd.f32 %v2462_v43, %v2424_v24  ;;  %v4784_v20 = vmul.f32 %v4736_v34, %v4753_v42  ;;  %v397_v3 = vmul.f32 %v4759_v55, %v4774_v53  ;;  %6134 = vst [vmem:[#allocation14_spill] sm:$0xff] %v4876_v41  ;;  %v4981_v34 = vld [vmem:[%s3685_s7 + $0xa0] sm:$0xff]  ;;  %s5245_s17 = sld [smem:[#allocation2 + %s1623_s3]]  ;;  %s1834_s21 = sadd.s32 60, %s3666_s24 }
  0xb3   : > { %v2379_v16 = vadd.f32 %v2371_v54, %v2333_v59  ;;  %v358_v19 = vadd.f32 %v350_v33, %v311_v17  ;;  %v4792_v14 = vstv %s4696_s19  ;;  %v4795_v58 = vstv %s4698_s20  ;;  %v4883_v59 = vld [vmem:[%s3685_s7 + $0x188] sm:$0xff]  ;;  %v4886_v33 = vld [vmem:[%s3685_s7 + $0x10] sm:$0xff]  ;;  %6147 = vst [vmem:[#allocation54_spill] sm:$0xff] %v4981_v34  ;;  %s5251_s19 = sld [smem:[#allocation2 + %s1669_s6]]  ;;  %s1761_s20 = sadd.s32 45, %s3666_s24 }
  0xb4   : > { %v4798_v2 = vstv %s4713_s29  ;;  %3433 = vmatprep.mubr.msk.f32.mxu1 %vm601_vm2, %v2470_v38  ;;  %v4806_v39 = vmul.f32 %v4759_v55, %v4771_v46  ;;  %v4810_v0 = vmul.f32 %v4777_v51, %v4780_v5  ;;  %v444_v8 = vmul.f32 %v4777_v51, %v4792_v14  ;;  %6135 = vst [vmem:[#allocation21_spill] sm:$0xff] %v4883_v59  ;;  %v4889_v17 = vld [vmem:[%s3685_s7 + $0x50] sm:$0xff]  ;;  %v4978_v55 = vld [vmem:[%s3685_s7 + $0x198] sm:$0xff]  ;;  %s5267_s29 = sld [smem:[#allocation2 + %s1715_s18]] }
  0xb5   : > { %v2425_v26 = vadd.f32 %v2417_v49, %v2379_v16  ;;  %v405_v10 = vadd.f32 %v397_v3, %v358_v19  ;;  %v491_v6 = vmul.f32 %v4789_v37, %v4798_v2  ;;  %v4820_v61 = vstv %s4738_s22  ;;  %6146 = vst [vmem:[#allocation52_spill] sm:$0xff] %v4978_v55  ;;  %s5278_s30 = sld [smem:[#allocation2 + %s1761_s20]] }
  0xb6   : > { %v4823_v29 = vstv %s4740_s5  ;;  %v4830_v43 = vmul.f32 %v4789_v37, %v4795_v58  ;;  %v4838_v60 = vstv %s4744_s23  ;;  %v4844_v56 = vstv %s4761_s25  ;;  %s5287_s22 = sld [smem:[#allocation2 + %s1853_s26]]  ;;  %s1528_s5 = sadd.s32 4, %s3666_s24 }
  0xb7   : > { %v2471_v30 = vadd.f32 %v2463_v27, %v2425_v26  ;;  %v538_v36 = vmul.f32 %v4801_v50, %v4823_v29  ;;  %v452_v11 = vadd.f32 %v444_v8, %v405_v10  ;;  %v254_v4 = vmul.f32 %v4717_v63, %v4815_v35  ;;  %v4898_v26 = vld [vmem:[%s3685_s7 + $0x90] sm:$0xff]  ;;  %s1558_s23 = sadd.s32 12, %s3666_s24  ;;  %s1604_s25 = sadd.s32 20, %s3666_s24 }
  0xb8   : > { %v265_v44 = vmul.f32 %v4727_v21, %v4815_v35  ;;  %v4856_v54 = vmul.f32 %v4801_v50, %v4820_v61  ;;  %v285_v9 = vmul.f32 %v4826_v15, %v4730_v31  ;;  %v304_v49 = vmul.f32 %v4826_v15, %v4733_v32  ;;  %6136 = vst [vmem:[#allocation11_spill] sm:$0xff] %v4898_v26  ;;  %s5423_s28 = sld [smem:[#allocation2 + %s1528_s5]] }
  0xb9   : > { %3434 = vmatmul.mubr.msk.f32.gmra.mrb[14].mxu1 %vm601_vm2, %v2471_v30  ;;  %v332_v45 = vmul.f32 %v4841_v13, %v4753_v42  ;;  %v499_v47 = vadd.f32 %v491_v6, %v452_v11  ;;  %v4869_v48 = vmul.f32 %v4835_v52, %v4838_v60  ;;  %v585_v27 = vmul.f32 %v4835_v52, %v4844_v56  ;;  %v4908_v11 = vld [vmem:[%s3685_s7 + $0xd0] sm:$0xff]  ;;  %v4949_v52 = vld [vmem:[%s3685_s7 + $0xd8] sm:$0xff]  ;;  %s5425_s3 = sld [smem:[#allocation2 + %s1558_s23]] }
  0xba   : > { %6131 = vst [vmem:[#allocation7_spill] sm:$0xff] %v4856_v54  ;;  %v351_v57 = vmul.f32 %v4841_v13, %v4756_v40  ;;  %v293_v28 = vadd.f32 %v285_v9, %v254_v4  ;;  %v312_v62 = vadd.f32 %v304_v49, %v265_v44  ;;  %v379_v22 = vmul.f32 %v4851_v18, %v4771_v46  ;;  %v4911_v4 = vld [vmem:[%s3685_s7 + $0x110] sm:$0xff]  ;;  %s5432_s6 = sld [smem:[#allocation2 + %s1604_s25]] }
  0xbb   : > { %6133 = vst [vmem:[#allocation10_spill] sm:$0xff] %v4869_v48  ;;  %v398_v24 = vmul.f32 %v4851_v18, %v4774_v53  ;;  %v546_v38 = vadd.f32 %v538_v36, %v499_v47  ;;  %v426_v16 = vmul.f32 %v4865_v23, %v4780_v5  ;;  %v445_v3 = vmul.f32 %v4865_v23, %v4792_v14  ;;  %v4905_v36 = vld [vmem:[%s3685_s7 + $0x1c8] sm:$0xff]  ;;  %v4920_v47 = vld [vmem:[%s3685_s7 + $0x150] sm:$0xff]  ;;  %v4936_v23 = vld [vmem:[%s3685_s7 + $0x98] sm:$0xff] }
  0xbc   : > { %v473_v19 = vmul.f32 %v4876_v41, %v4795_v58  ;;  %v340_v8 = vadd.f32 %v332_v45, %v293_v28  ;;  %v359_v10 = vadd.f32 %v351_v57, %v312_v62  ;;  %v492_v6 = vmul.f32 %v4876_v41, %v4798_v2  ;;  %6137 = vst [vmem:[#allocation24_spill] sm:$0xff] %v4905_v36  ;;  %v4923_v57 = vld [vmem:[%s3685_s7 + $0x18] sm:$0xff]  ;;  %v4946_v18 = vld [vmem:[%s3685_s7 + $0x1d0] sm:$0xff] }
  0xbd   : > { %v520_v30 = vmul.f32 %v4883_v59, %v4820_v61  ;;  %6138 = vst [vmem:[#allocation12_spill] sm:$0xff] %v4911_v4  ;;  %v593_v44 = vadd.f32 %v585_v27, %v546_v38  ;;  %v539_v9 = vmul.f32 %v4883_v59, %v4823_v29  ;;  %v266_v49 = vmul.f32 %v4727_v21, %v4886_v33  ;;  %v4930_v59 = vld [vmem:[%s3685_s7 + $0x190] sm:$0xff]  ;;  %v4933_v41 = vld [vmem:[%s3685_s7 + $0x58] sm:$0xff] }
  0xbe   : > { %v305_v45 = vmul.f32 %v4889_v17, %v4733_v32  ;;  %6139 = vst [vmem:[#allocation25_spill] sm:$0xff] %v4923_v57  ;;  %v387_v28 = vadd.f32 %v379_v22, %v340_v8  ;;  %v406_v62 = vadd.f32 %v398_v24, %v359_v10  ;;  %v567_v27 = vmul.f32 %v4905_v36, %v4838_v60 }
  0xbf   : > { %v352_v38 = vmul.f32 %v4898_v26, %v4756_v40  ;;  %6140 = vst [vmem:[#allocation43_spill] sm:$0xff] %v4930_v59  ;;  %3326 = vmatprep.mubr.msk.f32.mxu0 %vm601_vm2, %v593_v44  ;;  %v586_v22 = vmul.f32 %v4905_v36, %v4844_v56  ;;  %v399_v8 = vmul.f32 %v4908_v11, %v4774_v53  ;;  %6141 = vst [vmem:[#allocation44_spill] sm:$0xff] %v4949_v52  ;;  %v4959_v36 = vld [vmem:[%s3685_s7 + $0x158] sm:$0xff] }
  0xc0   : > { %v313_v24 = vadd.f32 %v305_v45, %v266_v49  ;;  %v446_v10 = vmul.f32 %v4911_v4, %v4792_v14  ;;  %v434_v50 = vadd.f32 %v426_v16, %v387_v28  ;;  %v453_v13 = vadd.f32 %v445_v3, %v406_v62  ;;  %v4956_v45 = vld [vmem:[%s3685_s7 + $0x118] sm:$0xff]  ;;  %6143 = vst [vmem:[#allocation46_spill] sm:$0xff] %v4959_v36  ;;  %v4968_v28 = vld [vmem:[%s3685_s7 + $0x20] sm:$0xff] }
  0xc1   : > { %v493_v44 = vmul.f32 %v4920_v47, %v4798_v2  ;;  %v267_v49 = vmul.f32 %v4727_v21, %v4923_v57  ;;  %6142 = vst [vmem:[#allocation42_spill] sm:$0xff] %v4956_v45  ;;  %v540_v37 = vmul.f32 %v4930_v59, %v4823_v29  ;;  %v306_v16 = vmul.f32 %v4933_v41, %v4733_v32  ;;  %v4971_v62 = vld [vmem:[%s3685_s7 + $0x60] sm:$0xff] }
  0xc2   : > { %v360_v15 = vadd.f32 %v352_v38, %v313_v24  ;;  %v353_v3 = vmul.f32 %v4936_v23, %v4756_v40  ;;  %6144 = vst [vmem:[#allocation51_spill] sm:$0xff] %v4968_v28  ;;  %6145 = vst [vmem:[#allocation50_spill] sm:$0xff] %v4971_v62  ;;  %v481_v35 = vadd.f32 %v473_v19, %v434_v50  ;;  %v4988_v19 = vld [vmem:[%s3685_s7 + $0x1d8] sm:$0xff] }
  0xc3   : > { %v500_v51 = vadd.f32 %v492_v6, %v453_v13  ;;  %v587_v38 = vmul.f32 %v4946_v18, %v4844_v56  ;;  %v400_v24 = vmul.f32 %v4949_v52, %v4774_v53  ;;  %v314_v1 = vadd.f32 %v306_v16, %v267_v49  ;;  %6148 = vst [vmem:[#allocation55_spill] sm:$0xff] %v4988_v19  ;;  %v4991_v6 = vld [vmem:[%s3685_s7 + $0xe0] sm:$0xff] }
  0xc4   : > { %v407_v12 = vadd.f32 %v399_v8, %v360_v15  ;;  %v447_v50 = vmul.f32 %v4956_v45, %v4792_v14  ;;  %v494_v13 = vmul.f32 %v4959_v36, %v4798_v2  ;;  %6149 = vst [vmem:[#allocation9_spill] sm:$0xff] %v4991_v6  ;;  %v528_v48 = vadd.f32 %v520_v30, %v481_v35  ;;  %v4998_v49 = vld [vmem:[%s3685_s7 + $0x120] sm:$0xff]  ;;  %v5008_v30 = vld [vmem:[%s3685_s7 + $0x28] sm:$0xff] }
  0xc5   : > { %v547_v54 = vadd.f32 %v539_v9, %v500_v51  ;;  %v268_v15 = vmul.f32 %v4727_v21, %v4968_v28  ;;  %v307_v8 = vmul.f32 %v4971_v62, %v4733_v32  ;;  %6150 = vst [vmem:[#allocation13_spill] sm:$0xff] %v4998_v49  ;;  %v361_v45 = vadd.f32 %v353_v3, %v314_v1  ;;  %v5005_v51 = vld [vmem:[%s3685_s7 + $0x160] sm:$0xff]  ;;  %v5011_v9 = vld [vmem:[%s3685_s7 + $0x68] sm:$0xff] }
  0xc6   : > { %v454_v16 = vadd.f32 %v446_v10, %v407_v12  ;;  %v541_v36 = vmul.f32 %v4978_v55, %v4823_v29  ;;  %v354_v35 = vmul.f32 %v4981_v34, %v4756_v40  ;;  %6151 = vst [vmem:[#allocation15_spill] sm:$0xff] %v5005_v51  ;;  %6152 = vst [vmem:[#allocation17_spill] sm:$0xff] %v5008_v30  ;;  %v5018_v10 = vld [vmem:[%s3685_s7 + $0x1a0] sm:$0xff]  ;;  %v5021_v3 = vld [vmem:[%s3685_s7 + $0xa8] sm:$0xff] }
  0xc7   : > { %6153 = vst [vmem:[#allocation18_spill] sm:$0xff] %v5011_v9  ;;  %v594_v28 = vadd.f32 %v586_v22, %v547_v54  ;;  %v588_v62 = vmul.f32 %v4988_v19, %v4844_v56  ;;  %v315_v1 = vadd.f32 %v307_v8, %v268_v15  ;;  %v401_v12 = vmul.f32 %v4991_v6, %v4774_v53  ;;  %v5028_v22 = vld [vmem:[%s3685_s7 + $0x1e0] sm:$0xff]  ;;  %v5031_v15 = vld [vmem:[%s3685_s7 + $0xe8] sm:$0xff] }
  0xc8   : > { %6154 = vst [vmem:[#allocation20_spill] sm:$0xff] %v5018_v10  ;;  %6155 = vst [vmem:[#allocation23_spill] sm:$0xff] %v5021_v3  ;;  %v5023_v55 = vadd.f32 %v567_v27, %v528_v48  ;;  %v501_v34 = vadd.f32 %v493_v44, %v454_v16  ;;  %v408_v52 = vadd.f32 %v400_v24, %v361_v45  ;;  %v5041_v44 = vld [vmem:[%s3685_s7 + $0x128] sm:$0xff] }
  0xc9   : > { %v448_v54 = vmul.f32 %v4998_v49, %v4792_v14  ;;  %6157 = vst [vmem:[#allocation19_spill] sm:$0xff] %v5028_v22  ;;  %6158 = vst [vmem:[#allocation27_spill] sm:$0xff] %v5031_v15  ;;  %3327 = vmatmul.mubr.msk.f32.vlgmr.msra.gmra.mrb[0].mxu0 %vm601_vm2, %v594_v28  ;;  %v362_v8 = vadd.f32 %v354_v35, %v315_v1  ;;  %v495_v6 = vmul.f32 %v5005_v51, %v4798_v2  ;;  %v5044_v45 = vld [vmem:[%s3685_s7 + $0x168] sm:$0xff]  ;;  %v5051_v1 = vld [vmem:[%s3685_s7 + $0x30] sm:$0xff] }
  0xca   : > { %6156 = vst [vmem:[#allocation16_spill] sm:$0xff] %v5023_v55  ;;  %v269_v48 = vmul.f32 %v4727_v21, %v5008_v30  ;;  %v308_v27 = vmul.f32 %v5011_v9, %v4733_v32  ;;  %6159 = vst [vmem:[#allocation28_spill] sm:$0xff] %v5041_v44  ;;  %v548_v24 = vadd.f32 %v540_v37, %v501_v34  ;;  %v5054_v55 = vld [vmem:[%s3685_s7 + $0x70] sm:$0xff]  ;;  %v6163_v30 = vmov 1.0  }
  0xcb   : > { %6160 = vst [vmem:[#allocation30_spill] sm:$0xff] %v5044_v45  ;;  %v455_v16 = vadd.f32 %v447_v50, %v408_v52  ;;  %v542_v28 = vmul.f32 %v5018_v10, %v4823_v29  ;;  %v355_v35 = vmul.f32 %v5021_v3, %v4756_v40  ;;  %6161 = vst [vmem:[#allocation36_spill] sm:$0xff] %v5051_v1  ;;  %3339 = vmatpush3.msk.msra.mxu0 %vm3688_vm1, %v6163_v30  ;;  %v5064_v50 = vld [vmem:[%s3685_s7 + $0x1a8] sm:$0xff]  ;;  %v5070_v3 = vld [vmem:[%s3685_s7 + $0xb0] sm:$0xff] }
  0xcc   : > { %6162 = vst [vmem:[#allocation38_spill] sm:$0xff] %v5054_v55  ;;  %v409_v51 = vadd.f32 %v401_v12, %v362_v8  ;;  %v589_v34 = vmul.f32 %v5028_v22, %v4844_v56  ;;  %v316_v37 = vadd.f32 %v308_v27, %v269_v48  ;;  %v402_v52 = vmul.f32 %v5031_v15, %v4774_v53  ;;  %v5067_v10 = vld [vmem:[%s3685_s7 + $0x1e8] sm:$0xff]  ;;  %v5080_v15 = vld [vmem:[%s3685_s7 + $0xf0] sm:$0xff] }
  0xcd   : > { %6165 = vst [vmem:[#allocation37_spill] sm:$0xff] %v5064_v50  ;;  %6166 = vst [vmem:[#allocation39_spill] sm:$0xff] %v5067_v10  ;;  %3380 = vmatprep.subr.msk.mxu0 %vm3678_vm0, %v6163_v30  ;;  %v595_v12 = vadd.f32 %v587_v38, %v548_v24  ;;  %v502_v8 = vadd.f32 %v494_v13, %v455_v16  ;;  %v449_v48 = vmul.f32 %v5041_v44, %v4792_v14  ;;  %v5087_v13 = vld [vmem:[%s3685_s7 + $0x130] sm:$0xff]  ;;  %v5093_v16 = vld [vmem:[%s3685_s7 + $0x38] sm:$0xff] }
  0xce   : > { %6167 = vst [vmem:[#allocation40_spill] sm:$0xff] %v5070_v3  ;;  %v496_v27 = vmul.f32 %v5044_v45, %v4798_v2  ;;  %6169 = vst [vmem:[#allocation41_spill] sm:$0xff] %v5080_v15  ;;  %v456_v22 = vadd.f32 %v448_v54, %v409_v51  ;;  %v363_v49 = vadd.f32 %v355_v35, %v316_v37  ;;  %v5090_v24 = vld [vmem:[%s3685_s7 + $0x170] sm:$0xff]  ;;  %v5106_v30 = vld [vmem:[%s3685_s7 + $0x78] sm:$0xff] }
  0xcf   : > { %v270_v19 = vmul.f32 %v4727_v21, %v5051_v1  ;;  %v309_v38 = vmul.f32 %v5054_v55, %v4733_v32  ;;  %3329 = vmatprep.mubr.msk.f32.mxu0 %vm601_vm2, %v595_v12  ;;  %v549_v9 = vadd.f32 %v541_v36, %v502_v8  ;;  %v543_v51 = vmul.f32 %v5064_v50, %v4823_v29  ;;  %v5103_v37 = vld [vmem:[%s3685_s7 + $0x1b0] sm:$0xff]  ;;  %v5114_v8 = vld [vmem:[%s3685_s7 + $0xb8] sm:$0xff] }
  0xd0   : > { %v590_v54 = vmul.f32 %v5067_v10, %v4844_v56  ;;  %v356_v35 = vmul.f32 %v5070_v3, %v4756_v40  ;;  %v503_v55 = vadd.f32 %v495_v6, %v456_v22  ;;  %v410_v1 = vadd.f32 %v402_v52, %v363_v49  ;;  %v5111_v12 = vld [vmem:[%s3685_s7 + $0x1f0] sm:$0xff]  ;;  %v5117_v10 = vld [vmem:[%s3685_s7 + $0xf8] sm:$0xff] }
  0xd1   : > { %v317_v45 = vadd.f32 %v309_v38, %v270_v19  ;;  %v403_v36 = vmul.f32 %v5080_v15, %v4774_v53  ;;  %6170 = vst [vmem:[#allocation45_spill] sm:$0xff] %v5111_v12  ;;  %v596_v50 = vadd.f32 %v588_v62, %v549_v9  ;;  %v450_v3 = vmul.f32 %v5087_v13, %v4792_v14  ;;  %v5128_v38 = vld [vmem:[%s3685_s7 + $0x138] sm:$0xff] }
  0xd2   : > { %v497_v44 = vmul.f32 %v5090_v24, %v4798_v2  ;;  %v271_v6 = vmul.f32 %v4727_v21, %v5093_v16  ;;  %v550_v19 = vadd.f32 %v542_v28, %v503_v55  ;;  %v457_v49 = vadd.f32 %v449_v48, %v410_v1  ;;  %v5131_v15 = vld [vmem:[%s3685_s7 + $0x178] sm:$0xff] }
  0xd3   : > { %v364_v22 = vadd.f32 %v356_v35, %v317_v45  ;;  %v310_v52 = vmul.f32 %v5106_v30, %v4733_v32  ;;  %6171 = vst [vmem:[#allocation47_spill] sm:$0xff] %v5131_v15  ;;  %3330 = vmatmul.mubr.msk.f32.gmra.mrb[2].mxu0 %vm601_vm2, %v596_v50  ;;  %v544_v62 = vmul.f32 %v5103_v37, %v4823_v29  ;;  %v5143_v48 = vld [vmem:[%s3685_s7 + $0x1b8] sm:$0xff] }
  0xd4   : > { %v591_v9 = vmul.f32 %v5111_v12, %v4844_v56  ;;  %v357_v21 = vmul.f32 %v5114_v8, %v4756_v40  ;;  %v404_v55 = vmul.f32 %v5117_v10, %v4774_v53  ;;  %v597_v32 = vadd.f32 %v589_v34, %v550_v19 }
  0xd5   : > { %v504_v45 = vadd.f32 %v496_v27, %v457_v49  ;;  %v411_v28 = vadd.f32 %v403_v36, %v364_v22  ;;  %v318_v1 = vadd.f32 %v310_v52, %v271_v6  ;;  %v451_v50 = vmul.f32 %v5128_v38, %v4792_v14  ;;  %v5155_v36 = vld [vmem:[%s3685_s7 + $0x1f8] sm:$0xff] }
  0xd6   : > { %v498_v35 = vmul.f32 %v5131_v15, %v4798_v2  ;;  %v292_v12 = vadd.f32 %v4766_v7, %v4748_v25  ;;  %v255_v40 = vmul.f32 %v4717_v63, %v4886_v33  ;;  %3332 = vmatprep.mubr.msk.f32.mxu0 %vm601_vm2, %v597_v32  ;;  %6172 = vst [vmem:[#allocation48_spill] sm:$0xff] %v5155_v36 }
  0xd7   : > { %v551_v53 = vadd.f32 %v543_v51, %v504_v45  ;;  %v458_v34 = vadd.f32 %v450_v3, %v411_v28  ;;  %v365_v27 = vadd.f32 %v357_v21, %v318_v1  ;;  %v286_v6 = vmul.f32 %v4889_v17, %v4730_v31 }
  0xd8   : > { %v545_v14 = vmul.f32 %v5143_v48, %v4823_v29  ;;  %v339_v2 = vadd.f32 %v4784_v20, %v292_v12  ;;  %v333_v25 = vmul.f32 %v4898_v26, %v4753_v42  ;;  %v380_v7 = vmul.f32 %v4908_v11, %v4771_v46 }
  0xd9   : > { %v598_v19 = vadd.f32 %v590_v54, %v551_v53  ;;  %v505_v51 = vadd.f32 %v497_v44, %v458_v34  ;;  %v412_v3 = vadd.f32 %v404_v55, %v365_v27  ;;  %v294_v49 = vadd.f32 %v286_v6, %v255_v40  ;;  %v6174_v34 = vld [vmem:[#allocation42_spill] sm:$0xff] }
  0xda   : > { %v592_v22 = vmul.f32 %v5155_v36, %v4844_v56  ;;  %v386_v52 = vadd.f32 %v4806_v39, %v339_v2  ;;  %v427_v29 = vmul.f32 %v4911_v4, %v4780_v5  ;;  %v474_v20 = vmul.f32 %v4920_v47, %v4795_v58 }
  0xdb   : > { %3333 = vmatmul.mubr.msk.f32.gmra.mrb[4].mxu0 %vm601_vm2, %v598_v19  ;;  %v552_v12 = vadd.f32 %v544_v62, %v505_v51  ;;  %v459_v21 = vadd.f32 %v451_v50, %v412_v3  ;;  %v341_v32 = vadd.f32 %v333_v25, %v294_v49  ;;  %v256_v44 = vmul.f32 %v4717_v63, %v4923_v57  ;;  %v6176_v25 = vld [vmem:[#allocation51_spill] sm:$0xff]  ;;  %v6178_v3 = vld [vmem:[#allocation50_spill] sm:$0xff] }
  0xdc   : > { %v433_v54 = vadd.f32 %v4810_v0, %v386_v52  ;;  %v521_v56 = vmul.f32 %v4930_v59, %v4820_v61  ;;  %v287_v39 = vmul.f32 %v4933_v41, %v4730_v31  ;;  %v334_v55 = vmul.f32 %v4936_v23, %v4753_v42  ;;  %v6173_v0 = vld [vmem:[#allocation44_spill] sm:$0xff]  ;;  %v6177_v19 = vld [vmem:[#allocation7_spill] sm:$0xff]  ;;  %v6179_v52 = vld [vmem:[#allocation54_spill] sm:$0xff] }
  0xdd   : > { %v599_v45 = vadd.f32 %v591_v9, %v552_v12  ;;  %v506_v28 = vadd.f32 %v498_v35, %v459_v21  ;;  %v388_v1 = vadd.f32 %v380_v7, %v341_v32  ;;  %v568_v62 = vmul.f32 %v4946_v18, %v4838_v60  ;;  %v6175_v9 = vld [vmem:[#allocation46_spill] sm:$0xff] }
  0xde   : > { %v480_v50 = vadd.f32 %v4830_v43, %v433_v54  ;;  %v295_v40 = vadd.f32 %v287_v39, %v256_v44  ;;  %v381_v53 = vmul.f32 %v6173_v0, %v4771_v46  ;;  %v428_v27 = vmul.f32 %v6174_v34, %v4780_v5  ;;  %v6181_v44 = vld [vmem:[#allocation55_spill] sm:$0xff]  ;;  %v6182_v39 = vld [vmem:[#allocation10_spill] sm:$0xff] }
  0xdf   : > { %3335 = vmatprep.mubr.msk.f32.mxu0 %vm601_vm2, %v599_v45  ;;  %v553_v6 = vadd.f32 %v545_v14, %v506_v28  ;;  %v435_v2 = vadd.f32 %v427_v29, %v388_v1  ;;  %v475_v35 = vmul.f32 %v6175_v9, %v4795_v58  ;;  %v257_v7 = vmul.f32 %v4717_v63, %v6176_v25  ;;  %v6180_v29 = vld [vmem:[#allocation52_spill] sm:$0xff]  ;;  %v6183_v1 = vld [vmem:[#allocation9_spill] sm:$0xff] }
  0xe0   : > { %v527_v51 = vadd.f32 %v6177_v19, %v480_v50  ;;  %v342_v43 = vadd.f32 %v334_v55, %v295_v40  ;;  %v288_v49 = vmul.f32 %v6178_v3, %v4730_v31  ;;  %v335_v12 = vmul.f32 %v6179_v52, %v4753_v42  ;;  %v6186_v19 = vld [vmem:[#allocation17_spill] sm:$0xff] }
  0xe1   : > { %v600_v21 = vadd.f32 %v592_v22, %v553_v6  ;;  %v482_v14 = vadd.f32 %v474_v20, %v435_v2  ;;  %v522_v32 = vmul.f32 %v6180_v29, %v4820_v61  ;;  %v569_v54 = vmul.f32 %v6181_v44, %v4838_v60  ;;  %v6184_v22 = vld [vmem:[#allocation13_spill] sm:$0xff]  ;;  %v6185_v6 = vld [vmem:[#allocation15_spill] sm:$0xff] }
  0xe2   : > { %v574_v45 = vadd.f32 %v6182_v39, %v527_v51  ;;  %v389_v55 = vadd.f32 %v381_v53, %v342_v43  ;;  %v296_v28 = vadd.f32 %v288_v49, %v257_v7  ;;  %v382_v50 = vmul.f32 %v6183_v1, %v4771_v46  ;;  %v6187_v51 = vld [vmem:[#allocation18_spill] sm:$0xff] }
  0xe3   : > { %3336 = vmatmul.mubr.msk.f32.gmra.mrb[6].mxu0 %vm601_vm2, %v600_v21  ;;  %v529_v40 = vadd.f32 %v521_v56, %v482_v14  ;;  %v429_v20 = vmul.f32 %v6184_v22, %v4780_v5  ;;  %v476_v2 = vmul.f32 %v6185_v6, %v4795_v58  ;;  %v258_v44 = vmul.f32 %v4717_v63, %v6186_v19  ;;  %v6188_v56 = vld [vmem:[#allocation23_spill] sm:$0xff]  ;;  %v6189_v14 = vld [vmem:[#allocation20_spill] sm:$0xff] }
  0xe4   : > { %3340 = vmatprep.mubr.msk.f32.mxu0 %vm601_vm2, %v574_v45  ;;  %v436_v53 = vadd.f32 %v428_v27, %v389_v55  ;;  %v343_v7 = vadd.f32 %v335_v12, %v296_v28  ;;  %v289_v43 = vmul.f32 %v6187_v51, %v4730_v31  ;;  %v336_v49 = vmul.f32 %v6188_v56, %v4753_v42  ;;  %v6190_v6 = vld [vmem:[#allocation19_spill] sm:$0xff]  ;;  %v6192_v28 = vld [vmem:[#allocation28_spill] sm:$0xff] }
  0xe5   : > { %v576_v21 = vadd.f32 %v568_v62, %v529_v40  ;;  %v523_v39 = vmul.f32 %v6189_v14, %v4820_v61  ;;  %v570_v19 = vmul.f32 %v6190_v6, %v4838_v60  ;;  %v6191_v22 = vld [vmem:[#allocation27_spill] sm:$0xff]  ;;  %v430_v51 = vmul.f32 %v6192_v28, %v4780_v5  ;;  %v6193_v62 = vld [vmem:[#allocation16_spill] sm:$0xff]  ;;  %v6194_v40 = vld [vmem:[#allocation30_spill] sm:$0xff] }
  0xe6   : > { %v383_v45 = vmul.f32 %v6191_v22, %v4771_v46  ;;  %v483_v27 = vadd.f32 %v475_v35, %v436_v53  ;;  %v390_v12 = vadd.f32 %v382_v50, %v343_v7  ;;  %v297_v55 = vadd.f32 %v289_v43, %v258_v44  ;;  %v6195_v14 = vld [vmem:[#allocation36_spill] sm:$0xff]  ;;  %v6196_v35 = vld [vmem:[#allocation38_spill] sm:$0xff] }
  0xe7   : > { %3341 = vmatmul.mubr.msk.f32.vlgmr.msra.gmra.mrb[0].mxu0 %vm601_vm2, %v6193_v62  ;;  %v477_v6 = vmul.f32 %v6194_v40, %v4795_v58  ;;  %v259_v22 = vmul.f32 %v4717_v63, %v6195_v14  ;;  %v290_v44 = vmul.f32 %v6196_v35, %v4730_v31  ;;  %v6197_v50 = vld [vmem:[#allocation40_spill] sm:$0xff]  ;;  %v6198_v40 = vld [vmem:[#allocation37_spill] sm:$0xff]  ;;  %v6199_v35 = vld [vmem:[#allocation39_spill] sm:$0xff]  ;;  %v431_v29 = vmul.f32 %v5087_v13, %v4780_v5 }
  0xe8   : > { %v337_v53 = vmul.f32 %v6197_v50, %v4753_v42  ;;  %3343 = vmatprep.mubr.msk.f32.mxu0 %vm601_vm2, %v576_v21  ;;  %v530_v7 = vadd.f32 %v522_v32, %v483_v27  ;;  %v437_v43 = vadd.f32 %v429_v20, %v390_v12  ;;  %v344_v62 = vadd.f32 %v336_v49, %v297_v55  ;;  %v6200_v50 = vld [vmem:[#allocation41_spill] sm:$0xff] }
  0xe9   : > { %v524_v28 = vmul.f32 %v6198_v40, %v4820_v61  ;;  %v571_v14 = vmul.f32 %v6199_v35, %v4838_v60  ;;  %v298_v56 = vadd.f32 %v290_v44, %v259_v22  ;;  %v384_v1 = vmul.f32 %v6200_v50, %v4771_v46 }
  0xea   : > { %v6201_v21 = vmov 1.0   ;;  %v577_v20 = vadd.f32 %v569_v54, %v530_v7  ;;  %v484_v49 = vadd.f32 %v476_v2, %v437_v43  ;;  %v391_v27 = vadd.f32 %v383_v45, %v344_v62 }
  0xeb   : > { %3381 = vmatpush3.msk.msra.mxu0 %vm3678_vm0, %v6201_v21  ;;  %v478_v12 = vmul.f32 %v5090_v24, %v4795_v58  ;;  %v345_v55 = vadd.f32 %v337_v53, %v298_v56  ;;  %v260_v44 = vmul.f32 %v4717_v63, %v5093_v16  ;;  %v291_v32 = vmul.f32 %v5106_v30, %v4730_v31  ;;  %v6204_v53 = vld [vmem:[#allocation45_spill] sm:$0xff] }
  0xec   : > { %3394 = vmatprep.subr.msk.mxu0 %vm3688_vm1, %v6201_v21  ;;  %v338_v54 = vmul.f32 %v5114_v8, %v4753_v42  ;;  %3344 = vmatmul.mubr.msk.f32.gmra.mrb[2].mxu0 %vm601_vm2, %v577_v20  ;;  %v531_v2 = vadd.f32 %v523_v39, %v484_v49  ;;  %v438_v45 = vadd.f32 %v430_v51, %v391_v27  ;;  %v5296_v20 = vstv %s5231_s8  ;;  %s1696_s8 = sadd.s32 36, %s3666_s24 }
  0xed   : > { %v525_v56 = vmul.f32 %v5103_v37, %v4820_v61  ;;  %v572_v63 = vmul.f32 %v6204_v53, %v4838_v60  ;;  %v392_v31 = vadd.f32 %v384_v1, %v345_v55  ;;  %v299_v42 = vadd.f32 %v291_v32, %v260_v44  ;;  %v6205_v53 = vld [vmem:[#allocation31_spill] sm:$0xff]  ;;  %s5453_s18 = sld [smem:[#allocation2 + %s1696_s8]] }
  0xee   : > { %v385_v7 = vmul.f32 %v5117_v10, %v4771_v46  ;;  %v432_v51 = vmul.f32 %v5128_v38, %v4780_v5  ;;  %v578_v39 = vadd.f32 %v570_v19, %v531_v2  ;;  %v485_v43 = vadd.f32 %v477_v6, %v438_v45  ;;  %v6206_v5 = vld [vmem:[#allocation32_spill] sm:$0xff] }
  0xef   : > { %v479_v62 = vmul.f32 %v5131_v15, %v4795_v58  ;;  %v439_v49 = vadd.f32 %v431_v29, %v392_v31  ;;  %v346_v27 = vadd.f32 %v338_v54, %v299_v42  ;;  %v1542_v1 = vmul.f32 %v5296_v20, %v6205_v53  ;;  %v6207_v54 = vld [vmem:[#allocation22_spill] sm:$0xff] }
  0xf0   : > { %v5301_v55 = vstv %s5233_s14  ;;  %3346 = vmatprep.mubr.msk.f32.mxu0 %vm601_vm2, %v578_v39  ;;  %v532_v46 = vadd.f32 %v524_v28, %v485_v43  ;;  %v5307_v19 = vstv %s5245_s17  ;;  %v5310_v58 = vstv %s5251_s19  ;;  %v6208_v28 = vld [vmem:[#allocation34_spill] sm:$0xff]  ;;  %s5441_s14 = sld [smem:[#allocation2 + %s1650_s27]]  ;;  %s1742_s17 = sadd.s32 44, %s3666_s24 }
  0xf1   : > { %v1580_v6 = vmul.f32 %v6206_v5, %v5301_v55  ;;  %v486_v29 = vadd.f32 %v478_v12, %v439_v49  ;;  %v393_v44 = vadd.f32 %v385_v7, %v346_v27  ;;  %v526_v32 = vmul.f32 %v5143_v48, %v4820_v61  ;;  %v6209_v5 = vld [vmem:[#allocation35_spill] sm:$0xff]  ;;  %s1788_s19 = sadd.s32 52, %s3666_s24  ;;  %s5460_s20 = sld [smem:[#allocation2 + %s1742_s17]] }
  0xf2   : > { %v1626_v2 = vmul.f32 %v6207_v54, %v5307_v19  ;;  %v579_v45 = vadd.f32 %v571_v14, %v532_v46  ;;  %v1672_v31 = vmul.f32 %v6208_v28, %v5310_v58  ;;  %v5319_v42 = vstv %s5267_s29  ;;  %v6210_v14 = vld [vmem:[#allocation33_spill] sm:$0xff]  ;;  %s5472_s26 = sld [smem:[#allocation2 + %s1788_s19]]  ;;  %s2932_s29 = sshll.u32 %s6278_s9, 4 }
  0xf3   : > { %v1588_v53 = vadd.f32 %v1580_v6, %v1542_v1  ;;  %v533_v39 = vadd.f32 %v525_v56, %v486_v29  ;;  %v440_v43 = vadd.f32 %v432_v51, %v393_v44  ;;  %v1718_v15 = vmul.f32 %v6209_v5, %v5319_v42  ;;  %v6211_v6 = vld [vmem:[#allocation26_spill] sm:$0xff]  ;;  %v6212_v44 = vld [vmem:[#allocation53_spill] sm:$0xff]  ;;  %s5487_s24 = sld [smem:[#allocation2 + %s1834_s21]] }
  0xf4   : > { %v5324_v12 = vstv %s5278_s30  ;;  %3347 = vmatmul.mubr.msk.f32.gmra.mrb[4].mxu0 %vm601_vm2, %v579_v45  ;;  %v5328_v7 = vstv %s5285_s4  ;;  %v5331_v49 = vstv %s5287_s22  ;;  %v1543_v27 = vmul.f32 %v5296_v20, %v6210_v14  ;;  %v6214_v14 = vld [vmem:[#allocation29_spill] sm:$0xff]  ;;  %s2933_s30 = sshll.u32 %s6276_s10, 5 }
  0xf5   : > { %v1634_v61 = vadd.f32 %v1626_v2, %v1588_v53  ;;  %v580_v1 = vadd.f32 %v572_v63, %v533_v39  ;;  %v487_v46 = vadd.f32 %v479_v62, %v440_v43  ;;  %v573_v56 = vmul.f32 %v5155_v36, %v4838_v60  ;;  %v6213_v2 = vld [vmem:[#allocation58_spill] sm:$0xff]  ;;  %v6215_v62 = vld [vmem:[#allocation56_spill] sm:$0xff]  ;;  %v6216_v60 = vld [vmem:[#allocation57_spill] sm:$0xff]  ;;  %s226_s4 = sadd.s32 %s2933_s30, %s2932_s29 }
  0xf6   : > { %v1764_v29 = vmul.f32 %v6211_v6, %v5324_v12  ;;  %v1581_v54 = vmul.f32 %v6212_v44, %v5301_v55  ;;  %v1627_v45 = vmul.f32 %v6213_v2, %v5307_v19  ;;  %v1810_v63 = vmul.f32 %v6214_v14, %v5328_v7  ;;  %v6217_v6 = vld [vmem:[#allocation8_spill] sm:$0xff]  ;;  %s2934_s22 = sshll.u32 %s226_s4, 3 }
  0xf7   : > { %v1680_v51 = vadd.f32 %v1672_v31, %v1634_v61  ;;  %3349 = vmatprep.mubr.msk.f32.mxu0 %vm601_vm2, %v580_v1  ;;  %v534_v53 = vadd.f32 %v526_v32, %v487_v46  ;;  %v1856_v39 = vmul.f32 %v6215_v62, %v5331_v49  ;;  %v1673_v31 = vmul.f32 %v6216_v60, %v5310_v58  ;;  %v6218_v32 = vld [vmem:[#allocation14_spill] sm:$0xff]  ;;  %s5671_s25 = scalar_lea.vmem %s5754_s2, %s2934_s22 }
  0xf8   : > { %v1589_v61 = vadd.f32 %v1581_v54, %v1543_v27  ;;  %v1719_v44 = vmul.f32 %v6217_v6, %v5319_v42  ;;  %v1544_v2 = vmul.f32 %v5296_v20, %v4886_v33  ;;  %v1765_v1 = vmul.f32 %v6218_v32, %v5324_v12 }
  0xf9   : > { %v1726_v43 = vadd.f32 %v1718_v15, %v1680_v51  ;;  %v581_v5 = vadd.f32 %v573_v56, %v534_v53  ;;  %v1582_v46 = vmul.f32 %v4889_v17, %v5301_v55  ;;  %v1628_v62 = vmul.f32 %v4898_v26, %v5307_v19  ;;  %v6219_v15 = vld [vmem:[#allocation21_spill] sm:$0xff]  ;;  %v6220_v51 = vld [vmem:[#allocation24_spill] sm:$0xff] }
  0xfa   : > { %v1635_v60 = vadd.f32 %v1627_v45, %v1589_v61  ;;  %v1811_v27 = vmul.f32 %v6219_v15, %v5328_v7  ;;  %v1857_v54 = vmul.f32 %v6220_v51, %v5331_v49  ;;  %v1674_v53 = vmul.f32 %v4908_v11, %v5310_v58 }
  0xfb   : > { %v1772_v14 = vadd.f32 %v1764_v29, %v1726_v43  ;;  %3350 = vmatmul.mubr.msk.f32.gmra.mrb[6].mxu0 %vm601_vm2, %v581_v5  ;;  %v1590_v56 = vadd.f32 %v1582_v46, %v1544_v2  ;;  %v1720_v32 = vmul.f32 %v4911_v4, %v5319_v42  ;;  %v1545_v26 = vmul.f32 %v5296_v20, %v4923_v57 }
  0xfc   : > { %v1681_v45 = vadd.f32 %v1673_v31, %v1635_v60  ;;  %v1583_v43 = vmul.f32 %v4933_v41, %v5301_v55  ;;  %v1629_v61 = vmul.f32 %v4936_v23, %v5307_v19  ;;  %v1766_v5 = vmul.f32 %v4920_v47, %v5324_v12 }
  0xfd   : > { %v1818_v29 = vadd.f32 %v1810_v63, %v1772_v14  ;;  %v1636_v51 = vadd.f32 %v1628_v62, %v1590_v56  ;;  %v1812_v2 = vmul.f32 %v4930_v59, %v5328_v7  ;;  %v1858_v46 = vmul.f32 %v4946_v18, %v5331_v49 }
  0xfe   : > { %v1727_v57 = vadd.f32 %v1719_v44, %v1681_v45  ;;  %v1591_v14 = vadd.f32 %v1583_v43, %v1545_v26  ;;  %v1675_v63 = vmul.f32 %v6173_v0, %v5310_v58  ;;  %v1721_v31 = vmul.f32 %v6174_v34, %v5319_v42  ;;  %v6222_v43 = vld [vmem:[#allocation9_spill] sm:$0xff] }
  0xff   : > { %v1864_v4 = vadd.f32 %v1856_v39, %v1818_v29  ;;  %v1682_v60 = vadd.f32 %v1674_v53, %v1636_v51  ;;  %v1546_v62 = vmul.f32 %v5296_v20, %v6176_v25  ;;  %v1584_v56 = vmul.f32 %v6178_v3, %v5301_v55  ;;  %v6221_v53 = vld [vmem:[#allocation52_spill] sm:$0xff] }
 0x100   : > { %v1773_v59 = vadd.f32 %v1765_v1, %v1727_v57  ;;  %v1637_v39 = vadd.f32 %v1629_v61, %v1591_v14  ;;  %v1767_v26 = vmul.f32 %v6175_v9, %v5324_v12  ;;  %v1630_v44 = vmul.f32 %v6179_v52, %v5307_v19  ;;  %v6223_v1 = vld [vmem:[#allocation55_spill] sm:$0xff]  ;;  %v6224_v14 = vld [vmem:[#allocation13_spill] sm:$0xff] }
 0x101   : > { %3382 = vmatprep.mubr.msk.f32.mxu0 %vm601_vm2, %v1864_v4  ;;  %v1728_v51 = vadd.f32 %v1720_v32, %v1682_v60  ;;  %v1813_v29 = vmul.f32 %v6221_v53, %v5328_v7  ;;  %v1592_v45 = vadd.f32 %v1584_v56, %v1546_v62  ;;  %v1676_v3 = vmul.f32 %v6222_v43, %v5310_v58  ;;  %v6225_v32 = vld [vmem:[#allocation17_spill] sm:$0xff]  ;;  %v6226_v62 = vld [vmem:[#allocation18_spill] sm:$0xff] }
 0x102   : > { %v1819_v4 = vadd.f32 %v1811_v27, %v1773_v59  ;;  %v1683_v57 = vadd.f32 %v1675_v63, %v1637_v39  ;;  %v1859_v61 = vmul.f32 %v6223_v1, %v5331_v49  ;;  %v1722_v9 = vmul.f32 %v6224_v14, %v5319_v42  ;;  %v6227_v27 = vld [vmem:[#allocation15_spill] sm:$0xff] }
 0x103   : > { %v1774_v34 = vadd.f32 %v1766_v5, %v1728_v51  ;;  %v1638_v52 = vadd.f32 %v1630_v44, %v1592_v45  ;;  %v1547_v60 = vmul.f32 %v5296_v20, %v6225_v32  ;;  %v1585_v56 = vmul.f32 %v6226_v62, %v5301_v55  ;;  %v6228_v39 = vld [vmem:[#allocation23_spill] sm:$0xff] }
 0x104   : > { %v1865_v43 = vadd.f32 %v1857_v54, %v1819_v4  ;;  %v1729_v59 = vadd.f32 %v1721_v31, %v1683_v57  ;;  %v1768_v63 = vmul.f32 %v6227_v27, %v5324_v12  ;;  %v1631_v1 = vmul.f32 %v6228_v39, %v5307_v19  ;;  %v6229_v51 = vld [vmem:[#allocation27_spill] sm:$0xff]  ;;  %v6230_v54 = vld [vmem:[#allocation20_spill] sm:$0xff] }
 0x105   : > { %v1820_v14 = vadd.f32 %v1812_v2, %v1774_v34  ;;  %v1684_v5 = vadd.f32 %v1676_v3, %v1638_v52  ;;  %v1593_v44 = vadd.f32 %v1585_v56, %v1547_v60  ;;  %v1677_v45 = vmul.f32 %v6229_v51, %v5310_v58  ;;  %v6231_v4 = vld [vmem:[#allocation19_spill] sm:$0xff]  ;;  %v6232_v27 = vld [vmem:[#allocation28_spill] sm:$0xff]  ;;  %v6234_v56 = vld [vmem:[#allocation30_spill] sm:$0xff] }
 0x106   : > { %3383 = vmatmul.mubr.msk.f32.vlgmr.msra.gmra.mrb[8].mxu0 %vm601_vm2, %v1865_v43  ;;  %v1775_v62 = vadd.f32 %v1767_v26, %v1729_v59  ;;  %v1814_v31 = vmul.f32 %v6230_v54, %v5328_v7  ;;  %v1860_v57 = vmul.f32 %v6231_v4, %v5331_v49  ;;  %v1723_v34 = vmul.f32 %v6232_v27, %v5319_v42  ;;  %v6233_v60 = vld [vmem:[#allocation36_spill] sm:$0xff]  ;;  %v6235_v4 = vld [vmem:[#allocation38_spill] sm:$0xff] }
 0x107   : > { %v1866_v3 = vadd.f32 %v1858_v46, %v1820_v14  ;;  %v1730_v52 = vadd.f32 %v1722_v9, %v1684_v5  ;;  %v1639_v2 = vadd.f32 %v1631_v1, %v1593_v44  ;;  %v1548_v26 = vmul.f32 %v5296_v20, %v6233_v60  ;;  %3395 = vmatpush3.msk.msra.mxu0 %vm3688_vm1, %v6201_v21  ;;  %v6236_v9 = vld [vmem:[#allocation40_spill] sm:$0xff] }
 0x108   : > { %v1821_v43 = vadd.f32 %v1813_v29, %v1775_v62  ;;  %v1769_v59 = vmul.f32 %v6234_v56, %v5324_v12  ;;  %v1586_v46 = vmul.f32 %v6235_v4, %v5301_v55  ;;  %v1632_v1 = vmul.f32 %v6236_v9, %v5307_v19 }
 0x109   : > { %3385 = vmatprep.mubr.msk.f32.mxu0 %vm601_vm2, %v1866_v3  ;;  %v1776_v21 = vadd.f32 %v1768_v63, %v1730_v52  ;;  %v1685_v22 = vadd.f32 %v1677_v45, %v1639_v2  ;;  %v1815_v29 = vmul.f32 %v6198_v40, %v5328_v7  ;;  %v1861_v14 = vmul.f32 %v6199_v35, %v5331_v49 }
 0x10a   : > { %v1867_v62 = vadd.f32 %v1859_v61, %v1821_v43  ;;  %v1594_v5 = vadd.f32 %v1586_v46, %v1548_v26  ;;  %v1678_v44 = vmul.f32 %v6200_v50, %v5310_v58  ;;  %v1724_v56 = vmul.f32 %v5087_v13, %v5319_v42 }
 0x10b   : > { %v1822_v63 = vadd.f32 %v1814_v31, %v1776_v21  ;;  %v1731_v45 = vadd.f32 %v1723_v34, %v1685_v22  ;;  %v1549_v3 = vmul.f32 %v5296_v20, %v5093_v16  ;;  %v1587_v52 = vmul.f32 %v5106_v30, %v5301_v55 }
 0x10c   : > { %3386 = vmatmul.mubr.msk.f32.gmra.mrb[10].mxu0 %vm601_vm2, %v1867_v62  ;;  %v1640_v61 = vadd.f32 %v1632_v1, %v1594_v5  ;;  %v1770_v2 = vmul.f32 %v5090_v24, %v5324_v12  ;;  %v1816_v31 = vmul.f32 %v5103_v37, %v5328_v7  ;;  %v1633_v34 = vmul.f32 %v5114_v8, %v5307_v19  ;;  %v6237_v1 = vld [vmem:[#allocation45_spill] sm:$0xff] }
 0x10d   : > { %v1868_v20 = vadd.f32 %v1860_v57, %v1822_v63  ;;  %v1777_v55 = vadd.f32 %v1769_v59, %v1731_v45  ;;  %v1595_v26 = vadd.f32 %v1587_v52, %v1549_v3  ;;  %v1679_v43 = vmul.f32 %v5117_v10, %v5310_v58  ;;  %v3527_v62 = vld [vmem:[%s3685_s7] sm:$0xff] }
 0x10e   : > { %v1686_v46 = vadd.f32 %v1678_v44, %v1640_v61  ;;  %v1862_v21 = vmul.f32 %v6237_v1, %v5331_v49  ;;  %v1725_v19 = vmul.f32 %v5128_v38, %v5319_v42  ;;  %v5479_v22 = vstv %s5423_s28  ;;  %v3528_v63 = vld [vmem:[%s3685_s7 + $0x40] sm:$0xff]  ;;  %v6238_v61 = vld [vmem:[#allocation47_spill] sm:$0xff] }
 0x10f   : > { %3388 = vmatprep.mubr.msk.f32.mxu0 %vm601_vm2, %v1868_v20  ;;  %v1823_v57 = vadd.f32 %v1815_v29, %v1777_v55  ;;  %v1641_v59 = vadd.f32 %v1633_v34, %v1595_v26  ;;  %v1531_v58 = vmul.f32 %v3527_v62, %v5479_v22  ;;  %v5485_v5 = vstv %s5425_s3  ;;  %v3529_v20 = vld [vmem:[%s3685_s7 + $0x80] sm:$0xff]  ;;  %s3591_s7 = smov 16  }
 0x110   : > { %v1732_v44 = vadd.f32 %v1724_v56, %v1686_v46  ;;  %v1561_v42 = vmul.f32 %v3528_v63, %v5485_v5  ;;  %v5492_v45 = vstv %s5432_s6  ;;  %v5495_v3 = vstv %s5441_s14 }
 0x111   : > { %v1869_v52 = vadd.f32 %v1861_v14, %v1823_v57  ;;  %v1687_v29 = vadd.f32 %v1679_v43, %v1641_v59  ;;  %v1771_v34 = vmul.f32 %v6238_v61, %v5324_v12  ;;  %v1607_v55 = vmul.f32 %v3529_v20, %v5492_v45  ;;  %v6239_v59 = vld [vmem:[#allocation35_spill] sm:$0xff] }
 0x112   : > { %v1778_v26 = vadd.f32 %v1770_v2, %v1732_v44  ;;  %v1569_v62 = vadd.f32 %v1561_v42, %v1531_v58  ;;  %v1653_v56 = vmul.f32 %v6208_v28, %v5495_v3  ;;  %v5504_v46 = vstv %s5453_s18  ;;  %v6240_v42 = vld [vmem:[#allocation33_spill] sm:$0xff] }
 0x113   : > { %3389 = vmatmul.mubr.msk.f32.gmra.mrb[12].mxu0 %vm601_vm2, %v1869_v52  ;;  %v1733_v63 = vadd.f32 %v1725_v19, %v1687_v29  ;;  %v1817_v14 = vmul.f32 %v5143_v48, %v5328_v7  ;;  %v5510_v43 = vstv %s5460_s20  ;;  %v1863_v57 = vmul.f32 %v5155_v36, %v5331_v49  ;;  %v6241_v52 = vld [vmem:[#allocation53_spill] sm:$0xff]  ;;  %v6243_v49 = vld [vmem:[#allocation58_spill] sm:$0xff] }
 0x114   : > { %v1824_v12 = vadd.f32 %v1816_v31, %v1778_v26  ;;  %v1615_v2 = vadd.f32 %v1607_v55, %v1569_v62  ;;  %v1699_v58 = vmul.f32 %v6239_v59, %v5504_v46  ;;  %v5517_v44 = vstv %s5472_s26  ;;  %v6242_v31 = vld [vmem:[#allocation26_spill] sm:$0xff] }
 0x115   : > { %v1779_v28 = vadd.f32 %v1771_v34, %v1733_v63  ;;  %v1532_v19 = vmul.f32 %v5479_v22, %v6240_v42  ;;  %v1562_v29 = vmul.f32 %v6241_v52, %v5485_v5  ;;  %v1745_v26 = vmul.f32 %v6242_v31, %v5510_v43  ;;  %v6244_v63 = vld [vmem:[#allocation57_spill] sm:$0xff] }
 0x116   : > { %v1870_v7 = vadd.f32 %v1862_v21, %v1824_v12  ;;  %v1661_v20 = vadd.f32 %v1653_v56, %v1615_v2  ;;  %v1608_v55 = vmul.f32 %v6243_v49, %v5492_v45  ;;  %v5528_v36 = vstv %s5487_s24  ;;  %v6245_v52 = vld [vmem:[#allocation29_spill] sm:$0xff] }
 0x117   : > { %v1825_v62 = vadd.f32 %v1817_v14, %v1779_v28  ;;  %v1570_v34 = vadd.f32 %v1562_v29, %v1532_v19  ;;  %v1654_v59 = vmul.f32 %v6244_v63, %v5495_v3  ;;  %v1791_v21 = vmul.f32 %v6245_v52, %v5517_v44  ;;  %v6246_v19 = vld [vmem:[#allocation11_spill] sm:$0xff] }
 0x118   : > { %3391 = vmatprep.mubr.msk.f32.mxu0 %vm601_vm2, %v1870_v7  ;;  %v1707_v42 = vadd.f32 %v1699_v58, %v1661_v20  ;;  %v1700_v56 = vmul.f32 %v6217_v6, %v5504_v46  ;;  %v1533_v12 = vmul.f32 %v5479_v22, %v4886_v33  ;;  %v1563_v28 = vmul.f32 %v4889_v17, %v5485_v5  ;;  %v6247_v58 = vld [vmem:[#allocation56_spill] sm:$0xff]  ;;  %v6248_v20 = vld [vmem:[#allocation14_spill] sm:$0xff] }
 0x119   : > { %v1871_v2 = vadd.f32 %v1863_v57, %v1825_v62  ;;  %v1616_v14 = vadd.f32 %v1608_v55, %v1570_v34  ;;  %v1609_v29 = vmul.f32 %v6246_v19, %v5492_v45  ;;  %v1837_v7 = vmul.f32 %v6247_v58, %v5528_v36  ;;  %v6249_v57 = vld [vmem:[#allocation24_spill] sm:$0xff]  ;;  %v6250_v34 = vld [vmem:[#allocation25_spill] sm:$0xff] }
 0x11a   : > { %v1753_v31 = vadd.f32 %v1745_v26, %v1707_v42  ;;  %v1746_v49 = vmul.f32 %v6248_v20, %v5510_v43  ;;  %v1792_v6 = vmul.f32 %v6219_v15, %v5517_v44  ;;  %v1838_v55 = vmul.f32 %v6249_v57, %v5528_v36  ;;  %v6254_v20 = vld [vmem:[#allocation50_spill] sm:$0xff] }
 0x11b   : > { %3392 = vmatmul.mubr.msk.f32.gmra.mrb[14].mxu0 %vm601_vm2, %v1871_v2  ;;  %v1662_v33 = vadd.f32 %v1654_v59, %v1616_v14  ;;  %v1571_v17 = vadd.f32 %v1563_v28, %v1533_v12  ;;  %v1655_v62 = vmul.f32 %v4908_v11, %v5495_v3  ;;  %v1534_v63 = vmul.f32 %v5479_v22, %v6250_v34  ;;  %v6251_v59 = vld [vmem:[#allocation12_spill] sm:$0xff]  ;;  %v6252_v11 = vld [vmem:[#allocation43_spill] sm:$0xff]  ;;  %v6255_v57 = vld [vmem:[#allocation54_spill] sm:$0xff] }
 0x11c   : > { %v1799_v26 = vadd.f32 %v1791_v21, %v1753_v31  ;;  %v1564_v42 = vmul.f32 %v4933_v41, %v5485_v5  ;;  %v1610_v15 = vmul.f32 %v4936_v23, %v5492_v45  ;;  %v1701_v14 = vmul.f32 %v6251_v59, %v5504_v46  ;;  %v6257_v34 = vld [vmem:[#allocation55_spill] sm:$0xff] }
 0x11d   : > { %v1708_v52 = vadd.f32 %v1700_v56, %v1662_v33  ;;  %v1617_v2 = vadd.f32 %v1609_v29, %v1571_v17  ;;  %v1747_v12 = vmul.f32 %v4920_v47, %v5510_v43  ;;  %v1793_v21 = vmul.f32 %v6252_v11, %v5517_v44  ;;  %v6253_v47 = vld [vmem:[#allocation42_spill] sm:$0xff] }
 0x11e   : > { %v1845_v28 = vadd.f32 %v1837_v7, %v1799_v26  ;;  %v1572_v19 = vadd.f32 %v1564_v42, %v1534_v63  ;;  %v1656_v31 = vmul.f32 %v6173_v0, %v5495_v3  ;;  %v1839_v23 = vmul.f32 %v4946_v18, %v5528_v36 }
 0x11f   : > { %v1754_v41 = vadd.f32 %v1746_v49, %v1708_v52  ;;  %v1663_v58 = vadd.f32 %v1655_v62, %v1617_v2  ;;  %v1535_v56 = vmul.f32 %v5479_v22, %v6176_v25  ;;  %v1702_v7 = vmul.f32 %v6253_v47, %v5504_v46  ;;  %v6256_v62 = vld [vmem:[#allocation46_spill] sm:$0xff] }
 0x120   : > { %3396 = vmatprep.mubr.msk.f32.mxu0 %vm601_vm2, %v1845_v28  ;;  %v1618_v29 = vadd.f32 %v1610_v15, %v1572_v19  ;;  %v1565_v33 = vmul.f32 %v6254_v20, %v5485_v5  ;;  %v1611_v0 = vmul.f32 %v6255_v57, %v5492_v45  ;;  %v1748_v18 = vmul.f32 %v6256_v62, %v5510_v43  ;;  %v6258_v15 = vld [vmem:[#allocation9_spill] sm:$0xff] }
 0x121   : > { %v1800_v49 = vadd.f32 %v1792_v6, %v1754_v41  ;;  %v1709_v17 = vadd.f32 %v1701_v14, %v1663_v58  ;;  %v1794_v25 = vmul.f32 %v6221_v53, %v5517_v44  ;;  %v1840_v63 = vmul.f32 %v6257_v34, %v5528_v36  ;;  %v6259_v14 = vld [vmem:[#allocation18_spill] sm:$0xff]  ;;  %v6260_v53 = vld [vmem:[#allocation13_spill] sm:$0xff] }
 0x122   : > { %v1664_v26 = vadd.f32 %v1656_v31, %v1618_v29  ;;  %v1573_v42 = vadd.f32 %v1565_v33, %v1535_v56  ;;  %v1657_v52 = vmul.f32 %v6258_v15, %v5495_v3  ;;  %v1536_v6 = vmul.f32 %v5479_v22, %v6225_v32 }
 0x123   : > { %v1846_v2 = vadd.f32 %v1838_v55, %v1800_v49  ;;  %v1755_v59 = vadd.f32 %v1747_v12, %v1709_v17  ;;  %v1566_v28 = vmul.f32 %v6259_v14, %v5485_v5  ;;  %v1703_v31 = vmul.f32 %v6260_v53, %v5504_v46  ;;  %v6261_v55 = vld [vmem:[#allocation15_spill] sm:$0xff] }
 0x124   : > { %v1710_v11 = vadd.f32 %v1702_v7, %v1664_v26  ;;  %v1619_v19 = vadd.f32 %v1611_v0, %v1573_v42  ;;  %v1612_v41 = vmul.f32 %v6228_v39, %v5492_v45  ;;  %v1749_v12 = vmul.f32 %v6261_v55, %v5510_v43 }
 0x125   : > { %3397 = vmatmul.mubr.msk.f32.vlgmr.msra.gmra.mrb[8].mxu0 %vm601_vm2, %v1846_v2  ;;  %v1801_v58 = vadd.f32 %v1793_v21, %v1755_v59  ;;  %v1574_v56 = vadd.f32 %v1566_v28, %v1536_v6  ;;  %v1658_v32 = vmul.f32 %v6229_v51, %v5495_v3  ;;  %v1795_v7 = vmul.f32 %v6230_v54, %v5517_v44  ;;  %v6262_v51 = vld [vmem:[#allocation19_spill] sm:$0xff] }
 0x126   : > { %v1756_v29 = vadd.f32 %v1748_v18, %v1710_v11  ;;  %v1665_v47 = vadd.f32 %v1657_v52, %v1619_v19  ;;  %v1704_v20 = vmul.f32 %v6232_v27, %v5504_v46  ;;  %v1537_v21 = vmul.f32 %v5479_v22, %v6233_v60  ;;  %v6263_v27 = vld [vmem:[#allocation30_spill] sm:$0xff] }
 0x127   : > { %v1847_v33 = vadd.f32 %v1839_v23, %v1801_v58  ;;  %v1620_v39 = vadd.f32 %v1612_v41, %v1574_v56  ;;  %v1567_v57 = vmul.f32 %v6235_v4, %v5485_v5  ;;  %v1841_v17 = vmul.f32 %v6262_v51, %v5528_v36 }
 0x128   : > { %v1802_v0 = vadd.f32 %v1794_v25, %v1756_v29  ;;  %v1711_v49 = vadd.f32 %v1703_v31, %v1665_v47  ;;  %v1613_v62 = vmul.f32 %v6236_v9, %v5492_v45  ;;  %v1750_v23 = vmul.f32 %v6263_v27, %v5510_v43 }
 0x129   : > { %3399 = vmatprep.mubr.msk.f32.mxu0 %vm601_vm2, %v1847_v33  ;;  %v1666_v54 = vadd.f32 %v1658_v32, %v1620_v39  ;;  %v1575_v18 = vadd.f32 %v1567_v57, %v1537_v21  ;;  %v1659_v60 = vmul.f32 %v6200_v50, %v5495_v3  ;;  %v1796_v25 = vmul.f32 %v6198_v40, %v5517_v44 }
 0x12a   : > { %v1848_v26 = vadd.f32 %v1840_v63, %v1802_v0  ;;  %v1757_v4 = vadd.f32 %v1749_v12, %v1711_v49  ;;  %v1705_v34 = vmul.f32 %v5087_v13, %v5504_v46  ;;  %v1538_v15 = vmul.f32 %v5479_v22, %v5093_v16 }
 0x12b   : > { %v1712_v42 = vadd.f32 %v1704_v20, %v1666_v54  ;;  %v1621_v9 = vadd.f32 %v1613_v62, %v1575_v18  ;;  %v1568_v52 = vmul.f32 %v5106_v30, %v5485_v5  ;;  %v1842_v50 = vmul.f32 %v6199_v35, %v5528_v36 }
 0x12c   : > { %3400 = vmatmul.mubr.msk.f32.gmra.mrb[10].mxu0 %vm601_vm2, %v1848_v26  ;;  %v1803_v2 = vadd.f32 %v1795_v7, %v1757_v4  ;;  %v1751_v40 = vmul.f32 %v5090_v24, %v5510_v43  ;;  %v1614_v13 = vmul.f32 %v5114_v8, %v5492_v45  ;;  %v1660_v16 = vmul.f32 %v5117_v10, %v5495_v3 }
 0x12d   : > { %v1758_v63 = vadd.f32 %v1750_v23, %v1712_v42  ;;  %v1667_v59 = vadd.f32 %v1659_v60, %v1621_v9  ;;  %v1576_v6 = vadd.f32 %v1568_v52, %v1538_v15  ;;  %v1797_v30 = vmul.f32 %v5103_v37, %v5517_v44 }
 0x12e   : > { %v1849_v22 = vadd.f32 %v1841_v17, %v1803_v2  ;;  %v1706_v35 = vmul.f32 %v5128_v38, %v5504_v46  ;;  %v1843_v24 = vmul.f32 %v6237_v1, %v5528_v36  ;;  %v1752_v10 = vmul.f32 %v6238_v61, %v5510_v43  ;;  %v6264_v46 = vld [vmem:[#allocation48_spill] sm:$0xff] }
 0x12f   : > { %v1804_v5 = vadd.f32 %v1796_v25, %v1758_v63  ;;  %v1713_v14 = vadd.f32 %v1705_v34, %v1667_v59  ;;  %v1622_v28 = vadd.f32 %v1614_v13, %v1576_v6  ;;  %v1798_v19 = vmul.f32 %v5143_v48, %v5517_v44 }
 0x130   : > { %3402 = vmatprep.mubr.msk.f32.mxu0 %vm601_vm2, %v1849_v22  ;;  %v1844_v31 = vmul.f32 %v6264_v46, %v5528_v36 }
 0x131   : > { %v1850_v8 = vadd.f32 %v1842_v50, %v1804_v5  ;;  %v1759_v45 = vadd.f32 %v1751_v40, %v1713_v14  ;;  %v1668_v11 = vadd.f32 %v1660_v16, %v1622_v28 }
 0x133   : > { %3403 = vmatmul.mubr.msk.f32.gmra.mrb[12].mxu0 %vm601_vm2, %v1850_v8  ;;  %v1805_v37 = vadd.f32 %v1797_v30, %v1759_v45  ;;  %v1714_v3 = vadd.f32 %v1706_v35, %v1668_v11 }
 0x135   : > { %v1851_v53 = vadd.f32 %v1843_v24, %v1805_v37  ;;  %v1760_v38 = vadd.f32 %v1752_v10, %v1714_v3 }
 0x137   : > { %3405 = vmatprep.mubr.msk.f32.mxu0 %vm601_vm2, %v1851_v53  ;;  %v1806_v1 = vadd.f32 %v1798_v19, %v1760_v38  ;;  %v3370_v58 = vpop.f32.mrb[0].mxu1 }
 0x138   : > { %1489 = vrot.lane.b32.xlu0 %v3370_v58, %s3591_s7  ;;  %v1440_v61 = vpop.f32.mrb[1].mxu1 }
 0x139   : > { %v1852_v41 = vadd.f32 %v1844_v31, %v1806_v1 }
 0x13b   : > { %3406 = vmatmul.mubr.msk.f32.gmra.mrb[14].mxu0 %vm601_vm2, %v1852_v41 }
 0x13c   : > { %v3373_v43 = vpop.f32.mrb[2].mxu1  ;;  %1487 = vrot.lane.b32.xlu0 %v1440_v61, %s3591_s7 }
 0x13d   : > { %1493 = vrot.lane.b32.xlu1 %v3373_v43, %s3591_s7  ;;  %v1450_v48 = vpop.f32.mrb[3].mxu1 }
 0x141   : > { %1491 = vrot.lane.b32.xlu1 %v1450_v48, %s3591_s7 }
 0x145   : > { %v3376_v36 = vpop.f32.mrb[4].mxu1 }
 0x146   : > { %v1460_v44 = vpop.f32.mrb[5].mxu1  ;;  %1497 = vrot.lane.b32.xlu1 %v3376_v36, %s3591_s7 }
 0x147   : > { %1495 = vrot.lane.b32.xlu0 %v1460_v44, %s3591_s7 }
 0x14c   : > { %v3379_v55 = vpop.f32.mrb[6].mxu1 }
 0x14d   : > { %v1470_v12 = vpop.f32.mrb[7].mxu1  ;;  %1501 = vrot.lane.b32.xlu1 %v3379_v55, %s3591_s7 }
 0x14e   : > { %1499 = vrot.lane.b32.xlu0 %v1470_v12, %s3591_s7 }
 0x176   : > { %v3426_v56 = vpop.f32.mrb[8].mxu1 }
 0x177   : > { %2759 = vrot.lane.b32.xlu1 %v3426_v56, %s3591_s7  ;;  %v2710_v32 = vpop.f32.mrb[9].mxu1 }
 0x178   : > { %2757 = vrot.lane.b32.xlu0 %v2710_v32, %s3591_s7 }
 0x17c   : > { %v3429_v29 = vpop.f32.mrb[10].mxu1 }
 0x17d   : > { %2763 = vrot.lane.b32.xlu1 %v3429_v29, %s3591_s7  ;;  %v2720_v47 = vpop.f32.mrb[11].mxu1 }
 0x17e   : > { %2761 = vrot.lane.b32.xlu0 %v2720_v47, %s3591_s7 }
 0x183   : > { %v3432_v7 = vpop.f32.mrb[12].mxu1 }
 0x184   : > { %2767 = vrot.lane.b32.xlu1 %v3432_v7, %s3591_s7  ;;  %v2730_v20 = vpop.f32.mrb[13].mxu1 }
 0x185   : > { %2765 = vrot.lane.b32.xlu0 %v2730_v20, %s3591_s7 }
 0x18c   : > { %v3435_v33 = vpop.f32.mrb[14].mxu1 }
 0x18d   : > { %2771 = vrot.lane.b32.xlu1 %v3435_v33, %s3591_s7  ;;  %v2740_v39 = vpop.f32.mrb[15].mxu1 }
 0x18e   : > { %2769 = vrot.lane.b32.xlu0 %v2740_v39, %s3591_s7 }
 0x1aa   : > { %v1490_v21 = vpop.permute.xlu0 %1489 }
 0x1ae   : > { %v1488_v49 = vpop.permute.xlu0 %1487 }
 0x1af   : > { %v1494_v57 = vpop.permute.xlu1 %1493 }
 0x1b3   : > { %v1492_v62 = vpop.permute.xlu1 %1491 }
 0x1b8   : > { %v1498_v27 = vpop.permute.xlu1 %1497 }
 0x1b9   : > { %v1496_v18 = vpop.permute.xlu0 %1495 }
 0x1ba   : > { %v3342_v0 = vpop.f32.mrb[0].mxu0 }
 0x1bb   : > { %862 = vst.msk [vmem:[%s5671_s25 + $0x10] sm:$0xff] %vm860_vm3, %v3342_v0  ;;  %v821_v51 = vpop.f32.mrb[1].mxu0 }
 0x1bc   : > { %861 = vst.msk [vmem:[%s5671_s25] sm:$0xff] %vm860_vm3, %v821_v51 }
 0x1bd   : > { %1513 = vst.msk [vmem:[%s5671_s25 + $0x10] sm:$0xff] %vm1511_vm4, %v1490_v21  ;;  %1512 = vst.msk [vmem:[%s5671_s25] sm:$0xff] %vm1511_vm4, %v1488_v49 }
 0x1bf   : > { %v3345_v17 = vpop.f32.mrb[2].mxu0  ;;  %v1502_v26 = vpop.permute.xlu1 %1501 }
 0x1c0   : > { %864 = vst.msk [vmem:[%s5671_s25 + $0x30] sm:$0xff] %vm860_vm3, %v3345_v17  ;;  %v831_v54 = vpop.f32.mrb[3].mxu0  ;;  %v1500_v25 = vpop.permute.xlu0 %1499 }
 0x1c1   : > { %863 = vst.msk [vmem:[%s5671_s25 + $0x20] sm:$0xff] %vm860_vm3, %v831_v54 }
 0x1c2   : > { %1515 = vst.msk [vmem:[%s5671_s25 + $0x30] sm:$0xff] %vm1511_vm4, %v1494_v57  ;;  %1514 = vst.msk [vmem:[%s5671_s25 + $0x20] sm:$0xff] %vm1511_vm4, %v1492_v62 }
 0x1c7   : > { %v3348_v23 = vpop.f32.mrb[4].mxu0 }
 0x1c8   : > { %866 = vst.msk [vmem:[%s5671_s25 + $0x50] sm:$0xff] %vm860_vm3, %v3348_v23  ;;  %v841_v60 = vpop.f32.mrb[5].mxu0 }
 0x1c9   : > { %865 = vst.msk [vmem:[%s5671_s25 + $0x40] sm:$0xff] %vm860_vm3, %v841_v60 }
 0x1ca   : > { %1517 = vst.msk [vmem:[%s5671_s25 + $0x50] sm:$0xff] %vm1511_vm4, %v1498_v27  ;;  %1516 = vst.msk [vmem:[%s5671_s25 + $0x40] sm:$0xff] %vm1511_vm4, %v1496_v18 }
 0x1ce   : > { %v3351_v4 = vpop.f32.mrb[6].mxu0 }
 0x1cf   : > { %868 = vst.msk [vmem:[%s5671_s25 + $0x70] sm:$0xff] %vm860_vm3, %v3351_v4  ;;  %v851_v34 = vpop.f32.mrb[7].mxu0 }
 0x1d0   : > { %867 = vst.msk [vmem:[%s5671_s25 + $0x60] sm:$0xff] %vm860_vm3, %v851_v34 }
 0x1d1   : > { %1519 = vst.msk [vmem:[%s5671_s25 + $0x70] sm:$0xff] %vm1511_vm4, %v1502_v26  ;;  %1518 = vst.msk [vmem:[%s5671_s25 + $0x60] sm:$0xff] %vm1511_vm4, %v1500_v25 }
 0x1e9   : > { %v2760_v42 = vpop.permute.xlu1 %2759 }
 0x1ea   : > { %v2758_v15 = vpop.permute.xlu0 %2757 }
 0x1ef   : > { %v2764_v2 = vpop.permute.xlu1 %2763 }
 0x1f0   : > { %v2762_v40 = vpop.permute.xlu0 %2761 }
 0x1f6   : > { %v2768_v63 = vpop.permute.xlu1 %2767 }
 0x1f7   : > { %v2766_v6 = vpop.permute.xlu0 %2765 }
 0x1f8   : > { %v3398_v9 = vpop.f32.mrb[8].mxu0 }
 0x1f9   : > { %3161 = vst.msk [vmem:[%s5671_s25 + $0x18] sm:$0xff] %vm860_vm3, %v3398_v9  ;;  %v2091_v52 = vpop.f32.mrb[9].mxu0 }
 0x1fa   : > { %3160 = vst.msk [vmem:[%s5671_s25 + $0x8] sm:$0xff] %vm860_vm3, %v2091_v52 }
 0x1fb   : > { %3243 = vst.msk [vmem:[%s5671_s25 + $0x18] sm:$0xff] %vm1511_vm4, %v2760_v42  ;;  %3242 = vst.msk [vmem:[%s5671_s25 + $0x8] sm:$0xff] %vm1511_vm4, %v2758_v15 }
 0x1ff   : > { %v3401_v50 = vpop.f32.mrb[10].mxu0  ;;  %v2772_v22 = vpop.permute.xlu1 %2771 }
 0x200   : > { %3163 = vst.msk [vmem:[%s5671_s25 + $0x38] sm:$0xff] %vm860_vm3, %v3401_v50  ;;  %v2101_v13 = vpop.f32.mrb[11].mxu0  ;;  %v2770_v5 = vpop.permute.xlu0 %2769 }
 0x201   : > { %3162 = vst.msk [vmem:[%s5671_s25 + $0x28] sm:$0xff] %vm860_vm3, %v2101_v13 }
 0x202   : > { %3245 = vst.msk [vmem:[%s5671_s25 + $0x38] sm:$0xff] %vm1511_vm4, %v2764_v2  ;;  %3244 = vst.msk [vmem:[%s5671_s25 + $0x28] sm:$0xff] %vm1511_vm4, %v2762_v40 }
 0x206   : > { %v3404_v59 = vpop.f32.mrb[12].mxu0 }
 0x207   : > { %3165 = vst.msk [vmem:[%s5671_s25 + $0x58] sm:$0xff] %vm860_vm3, %v3404_v59  ;;  %v2111_v16 = vpop.f32.mrb[13].mxu0 }
 0x208   : > { %3164 = vst.msk [vmem:[%s5671_s25 + $0x48] sm:$0xff] %vm860_vm3, %v2111_v16 }
 0x209   : > { %3247 = vst.msk [vmem:[%s5671_s25 + $0x58] sm:$0xff] %vm1511_vm4, %v2768_v63  ;;  %3246 = vst.msk [vmem:[%s5671_s25 + $0x48] sm:$0xff] %vm1511_vm4, %v2766_v6 }
 0x20e   : > { %v3407_v30 = vpop.f32.mrb[14].mxu0 }
 0x20f   : > { %3167 = vst.msk [vmem:[%s5671_s25 + $0x78] sm:$0xff] %vm860_vm3, %v3407_v30  ;;  %v2121_v14 = vpop.f32.mrb[15].mxu0 }
 0x210   : > { %3166 = vst.msk [vmem:[%s5671_s25 + $0x68] sm:$0xff] %vm860_vm3, %v2121_v14 }
 0x211   : > { %3249 = vst.msk [vmem:[%s5671_s25 + $0x78] sm:$0xff] %vm1511_vm4, %v2772_v22  ;;  %3248 = vst.msk [vmem:[%s5671_s25 + $0x68] sm:$0xff] %vm1511_vm4, %v2770_v5 }
 0x212 PF: > { %s13_s13 = sadd.s32 1, %s3587_s13   ;;  %s6265_s9 = smov %s3579_s11 }
 0x213   : > { %p10_p3 = scmp.ge.s32.totalorder %s13_s13, 6   ;;  %s6266_s10 = smov %s3583_s12 }
 0x214   : > { %s6267_s11 = smov %s6270_s15  ;;  %s6268_s12 = smov %s6274_s16 }
 0x215   :  { %12 = sbr.rel (!%p10_p3) target bundleno = 3 (0x3), region = 71 }
 0x21c   :  { %2829 = vsyncpa [#allocation3], 1 }
 0x21d   :  { %2831 = vsyncpa [#allocation3 + $0x1], 1 }

</bundles_post_ra>
